<compile_context>
chip_gen: v5e
topology: v5e:2x2
jax: 0.10.0
libtpu: 0.0.40
codegen_flags: <defaults>
</compile_context>

<pallas_src>
import functools

import jax
import jax.numpy as jnp
from jax.experimental import pallas as pl
from jax.experimental.pallas import tpu as pltpu


def _round_up(x, m):
    return ((x + m - 1) // m) * m


def _cdiv(a, b):
    return (a + b - 1) // b


def _mm_classifier_kernel(img_ref, txt_ref,
                          w_img_ref, b_img_ref,
                          w1a_ref, w1b_ref, b1_ref,
                          w2_ref, b2_ref,
                          out_ref,
                          img_acc, txt_acc,
                          *, s_img, s_txt, nk_img, nk_txt, nk):
    """Fused multimodal head, one (batch tile, seq chunk) grid step.

    img_ref : (tb, ts_img, D_vit)  image-encoder feature chunk
    txt_ref : (tb, ts_txt, H)      caption-encoder feature chunk
    w_img   : (D_vit, P), b_img: (1, P)        -> images_features Linear
    w1a     : (P, F), w1b: (H, F), b1: (1, F)  -> fc1 split over the concat
    w2      : (F, C_pad), b2: (1, C_pad)       -> fc2 (lane-padded)
    out_ref : (tb, C_pad) logits
    img_acc : (tb, P) f32 running sum of relu(img @ w_img + b_img) over seq
    txt_acc : (tb, H) f32 running sum of caption features over seq
    """
    k = pl.program_id(1)

    @pl.when(k == 0)
    def _init():
        img_acc[...] = jnp.zeros_like(img_acc)
        txt_acc[...] = jnp.zeros_like(txt_acc)

    # ---- image branch: Linear -> ReLU -> (dropout = id, eval) -> running sum
    def _img_step():
        tb_, ts_, dv_ = img_ref.shape
        # ts_ is a multiple of the dtype's sublane tile, so this reshape is a
        # free relayout and the MXU sees M = tb*ts rows per call.
        img = img_ref[...].reshape(tb_ * ts_, dv_)
        proj = jnp.dot(img, w_img_ref[...],
                       preferred_element_type=jnp.float32)          # (tb*ts, P)
        proj = jnp.maximum(proj + b_img_ref[...], 0.0).reshape(tb_, ts_, -1)

        if nk_img * ts_ == s_img:
            img_acc[...] += proj.sum(axis=1)
        else:
            # Only the final chunk holds rows >= s_img (OOB DMA rows hold
            # unspecified data); mask there only, plain sum everywhere else.
            @pl.when(k == nk_img - 1)
            def _masked_sum():
                row = k * ts_ + jax.lax.broadcasted_iota(
                    jnp.int32, (1, ts_, 1), 1)
                img_acc[...] += jnp.where(row < s_img, proj, 0.0).sum(axis=1)

            @pl.when(k != nk_img - 1)
            def _plain_sum():
                img_acc[...] += proj.sum(axis=1)

    if nk_img == nk:
        _img_step()
    else:
        pl.when(k < nk_img)(_img_step)

    # ---- caption branch: running sum over seq
    def _txt_step():
        tb_, ts_, _ = txt_ref.shape
        txt = txt_ref[...].astype(jnp.float32)
        if nk_txt * ts_ == s_txt:
            txt_acc[...] += txt.sum(axis=1)
        else:
            @pl.when(k == nk_txt - 1)
            def _masked_sum():
                row = k * ts_ + jax.lax.broadcasted_iota(
                    jnp.int32, (1, ts_, 1), 1)
                txt_acc[...] += jnp.where(row < s_txt, txt, 0.0).sum(axis=1)

            @pl.when(k != nk_txt - 1)
            def _plain_sum():
                txt_acc[...] += txt.sum(axis=1)

    if nk_txt == nk:
        _txt_step()
    else:
        pl.when(k < nk_txt)(_txt_step)

    # ---- finalize: means, fc1 over the concat (split weights), fc2 -> logits
    @pl.when(k == nk - 1)
    def _finalize():
        img_feat = img_acc[...] * (1.0 / s_img)                      # (tb, P)
        txt_feat = txt_acc[...] * (1.0 / s_txt)                      # (tb, H)
        # TODO(synk): dropout is identity here (eval mode); training-mode
        # dropout would need pltpu.prng_seed + pltpu.prng_random_bits masking.
        h = (jnp.dot(img_feat.astype(w1a_ref.dtype), w1a_ref[...],
                     preferred_element_type=jnp.float32)
             + jnp.dot(txt_feat.astype(w1b_ref.dtype), w1b_ref[...],
                       preferred_element_type=jnp.float32)
             + b1_ref[...])
        logits = jnp.dot(h.astype(w2_ref.dtype), w2_ref[...],
                         preferred_element_type=jnp.float32) + b2_ref[...]
        out_ref[...] = logits.astype(out_ref.dtype)


def multimodal_classifier_forward(img_feats, txt_feats, params, *,
                                  compute_dtype=jnp.bfloat16,
                                  tb=None, ts_img=None, ts_txt=None,
                                  act_buffer_count=None):
    """Pipelined multimodal head.

    img_feats: (B, S_img, Dv) image-encoder features.
    txt_feats: (B, S_txt, H)  caption-encoder features.
    For best performance pass the activations already in `compute_dtype`
    (cast in the encoder epilogue) -- the wrapper never pads or copies them.
    """
    B, S_img, Dv = img_feats.shape
    B2, S_txt, H = txt_feats.shape
    assert B == B2, "batch mismatch between image and caption features"
    P = params["w_img"].shape[1]
    F = params["w1a"].shape[1]
    C = params["w2"].shape[1]

    # Cast activations only if needed (no pad; ragged edges handled in-kernel).
    img = img_feats if img_feats.dtype == compute_dtype else img_feats.astype(compute_dtype)
    txt = txt_feats if txt_feats.dtype == compute_dtype else txt_feats.astype(compute_dtype)
    itm_img = jnp.dtype(img.dtype).itemsize
    itm_txt = jnp.dtype(txt.dtype).itemsize
    sub_img = 8 * max(1, 4 // itm_img)       # sublane tile: 8 f32, 16 bf16
    sub_txt = 8 * max(1, 4 // itm_txt)

    # ---- generation-aware VMEM budget (v5e/v6e: 128 MiB, v7x: 64 MiB phys)
    try:
        phys_vmem = int(pltpu.get_tpu_info().vmem_capacity_bytes)
    except Exception:
        phys_vmem = 64 * 1024 * 1024         # conservative (v7x-sized) fallback
    big_vmem = phys_vmem >= 96 * 1024 * 1024
    ts_cap = 256 if big_vmem else 128        # bigger chunks where VMEM allows
    vmem_cap = int(0.75 * phys_vmem)         # headroom under physical VMEM

    # ---- batch tile: default 32, multiple of 8, and keep >= 2 batch tiles
    #      when B allows so the "parallel" axis shards across both v7x cores.
    if tb is None:
        tb = 32
    tb = max(8, _round_up(min(tb, max(B, 1)), 8))
    if B > 8:
        tb = min(tb, _round_up(_cdiv(B, 2), 8))
    # TODO(synk): for B <= 8 on v7x one core idles; a seq-split across cores
    # with a cross-core combine would be needed to use both TensorCores.

    # ---- seq chunks: balance the two streams so they run out together.
    nk_target = max(_cdiv(S_img, ts_cap), _cdiv(S_txt, ts_cap), 1)
    if ts_img is None:
        ts_img = min(_round_up(_cdiv(S_img, nk_target), sub_img),
                     _round_up(ts_cap, sub_img))
    ts_img = max(sub_img, _round_up(ts_img, sub_img))
    if ts_txt is None:
        ts_txt = min(_round_up(_cdiv(S_txt, nk_target), sub_txt),
                     _round_up(ts_cap, sub_txt))
    ts_txt = max(sub_txt, _round_up(ts_txt, sub_txt))

    nb = _cdiv(B, tb)
    B_pad = nb * tb
    nk_img = _cdiv(S_img, ts_img)
    nk_txt = _cdiv(S_txt, ts_txt)
    nk = max(nk_img, nk_txt)
    Cp = _round_up(C, 128)                   # lane-dense fc2 / output

    # ---- small weights: cast (tiny), lane-pad fc2; biases stay f32.
    w_img = params["w_img"].astype(compute_dtype)
    w1a = params["w1a"].astype(compute_dtype)
    w1b = params["w1b"].astype(compute_dtype)
    w2 = jnp.pad(params["w2"], ((0, 0), (0, Cp - C))).astype(compute_dtype)
    b_img = params["b_img"].reshape(1, P).astype(jnp.float32)
    b1 = params["b1"].reshape(1, F).astype(jnp.float32)
    b2 = jnp.pad(params["b2"].reshape(1, C), ((0, 0), (0, Cp - C))
                 ).astype(jnp.float32)
    w_itm = jnp.dtype(compute_dtype).itemsize

    # ---- VMEM estimate -> scoped limit (per-generation cap).
    abuf = act_buffer_count if act_buffer_count else 2
    est_vmem = (abuf * tb * ts_img * Dv * itm_img
                + abuf * tb * ts_txt * H * itm_txt
                + 2 * (Dv * P + P * F + H * F + F * Cp) * w_itm
                + 2 * (P + F + Cp) * 4
                + tb * (P + H) * 4
                + 2 * tb * Cp * 4
                + tb * ts_img * P * 4)
    vmem_limit = int(min(max(2 * est_vmem, 32 * 1024 * 1024), vmem_cap))

    flops = int(2 * B * S_img * Dv * P + 2 * B * (P * F + H * F + F * Cp))
    bytes_accessed = int(img.size * itm_img + txt.size * itm_txt
                         + (Dv * P + P * F + H * F + F * Cp) * w_itm
                         + (P + F + Cp) * 4
                         + B_pad * Cp * 4)
    cost = pl.CostEstimate(flops=flops, transcendentals=0,
                           bytes_accessed=bytes_accessed)

    kernel = functools.partial(_mm_classifier_kernel,
                               s_img=S_img, s_txt=S_txt,
                               nk_img=nk_img, nk_txt=nk_txt, nk=nk)

    # Clamp the chunk index only if a stream has fewer chunks (user-forced
    # tiles); no re-DMA happens since the block index then repeats, and the
    # compute is skipped via pl.when inside the kernel.
    img_map = ((lambda b, k: (b, k, 0)) if nk_img == nk
               else (lambda b, k: (b, jnp.minimum(k, nk_img - 1), 0)))
    txt_map = ((lambda b, k: (b, k, 0)) if nk_txt == nk
               else (lambda b, k: (b, jnp.minimum(k, nk_txt - 1), 0)))

    def build(use_pipeline_mode):
        wkw = dict(pipeline_mode=pl.Buffered(1)) if use_pipeline_mode else {}
        akw = (dict(pipeline_mode=pl.Buffered(act_buffer_count))
               if (use_pipeline_mode and act_buffer_count) else {})

        def const2(s0, s1):
            return pl.BlockSpec((s0, s1), lambda b, k: (0, 0), **wkw)

        in_specs = [
            pl.BlockSpec((tb, ts_img, Dv), img_map, **akw),
            pl.BlockSpec((tb, ts_txt, H), txt_map, **akw),
            const2(Dv, P), const2(1, P),
            const2(P, F), const2(H, F), const2(1, F),
            const2(F, Cp), const2(1, Cp),
        ]
        return pl.pallas_call(
            kernel,
            out_shape=jax.ShapeDtypeStruct((B_pad, Cp), jnp.float32),
            grid_spec=pltpu.PrefetchScalarGridSpec(
                num_scalar_prefetch=0,
                grid=(nb, nk),
                in_specs=in_specs,
                out_specs=pl.BlockSpec((tb, Cp), lambda b, k: (b, 0)),
                scratch_shapes=[pltpu.VMEM((tb, P), jnp.float32),
                                pltpu.VMEM((tb, H), jnp.float32)],
            ),
            compiler_params=pltpu.CompilerParams(
                dimension_semantics=("parallel", "arbitrary"),
                vmem_limit_bytes=vmem_limit,
                # let XLA fuse an upstream convert into the two activation
                # operands instead of materializing a cast copy in HBM.
                allow_input_fusion=[True, True] + [False] * 7),
            cost_estimate=cost,
        )

    operands = (img, txt, w_img, b_img, w1a, w1b, b1, w2, b2)
    try:
        # Single-buffer the constant weight/bias blocks (they never change
        # block index) -- frees VMEM for larger activation tiles on v7x.
        out_padded = build(True)(*operands)
    except Exception:
        # Graceful fallback if this JAX build does not lower pipeline_mode.
        out_padded = build(False)(*operands)

    return out_padded[:B, :C]


def _reference_forward(img_feats, txt_feats, params):
    """Pure-JAX reference (same semantics as the PyTorch forward, eval mode)."""
    proj = jnp.maximum(img_feats @ params["w_img"] + params["b_img"], 0.0)
    img_feat = proj.mean(axis=1)
    # TODO(synk): real DeBERTa captions have padding tokens; the module's plain
    # mean(dim=1) is reproduced here (no attention-mask-weighted mean).
    txt_feat = txt_feats.mean(axis=1)
    feats = jnp.concatenate([img_feat, txt_feat], axis=-1)
    w1 = jnp.concatenate([params["w1a"], params["w1b"]], axis=0)
    h = feats @ w1 + params["b1"]
    return h @ params["w2"] + params["b2"]


if __name__ == "__main__":
    # Small, TPU-friendly stand-ins for the real dims (ViT num_features=384 ->
    # 128, proj 512 -> 128, DeBERTa hidden 768 -> 128, fc1 out 512 -> 128,
    # num_classes -> 8).  B=12 / ragged S so the OOB-masked edge paths and the
    # two-batch-tile "parallel" axis are both exercised.
    B, S_IMG, D_VIT = 12, 28, 128
    S_TXT, H = 40, 128
    P, F, C = 128, 128, 8

    key = jax.random.PRNGKey(0)
    ks = jax.random.split(key, 9)

    # Deterministic "encoder outputs" (frozen pretrained models are external).
    img_feats = jax.random.normal(ks[0], (B, S_IMG, D_VIT), jnp.float32)
    txt_feats = jax.random.normal(ks[1], (B, S_TXT, H), jnp.float32)

    params = {
        "w_img": jax.random.normal(ks[2], (D_VIT, P), jnp.float32) * 0.05,
        "b_img": jax.random.normal(ks[3], (1, P), jnp.float32) * 0.05,
        "w1a":   jax.random.normal(ks[4], (P, F), jnp.float32) * 0.05,
        "w1b":   jax.random.normal(ks[5], (H, F), jnp.float32) * 0.05,
        "b1":    jax.random.normal(ks[6], (1, F), jnp.float32) * 0.05,
        "w2":    jax.random.normal(ks[7], (F, C), jnp.float32) * 0.05,
        "b2":    jax.random.normal(ks[8], (1, C), jnp.float32) * 0.05,
    }

    ref = _reference_forward(img_feats, txt_feats, params)

    # f32 compute path: bit-faithful to the PyTorch module.  Forced small
    # tiles exercise the multi-chunk pipeline, the unbalanced-stream fallback
    # (nk_img < nk_txt) and the last-chunk masking.
    out_f32 = multimodal_classifier_forward(
        img_feats, txt_feats, params,
        compute_dtype=jnp.float32, tb=8, ts_img=16, ts_txt=16)
    out_f32 = jax.block_until_ready(out_f32)
    assert out_f32.shape == (B, C)
    assert jnp.allclose(out_f32, ref, rtol=1e-3, atol=1e-3), "f32 mismatch vs reference"

    # bf16 streaming path (default tiles): activations are handed to the
    # kernel already in bf16 ("cast in the encoder epilogue"), so the wrapper
    # performs no pad/cast HBM copy at all.
    out_bf16 = multimodal_classifier_forward(
        img_feats.astype(jnp.bfloat16), txt_feats.astype(jnp.bfloat16), params,
        compute_dtype=jnp.bfloat16)
    out_bf16 = jax.block_until_ready(out_bf16)
    assert out_bf16.shape == (B, C)
    assert jnp.allclose(out_bf16, ref, rtol=2e-2, atol=2e-2), "bf16 mismatch vs reference"

    print("KERNEL_OK")
</pallas_src>

<mosaic_0001>
module attributes {stable_mosaic.version = 11 : i64} {
  func.func @_mm_classifier_kernel(%arg0: i32, %arg1: i32, %arg2: memref<8x16x128xf32, #tpu.memory_space<vmem>>, %arg3: memref<8x16x128xf32, #tpu.memory_space<vmem>>, %arg4: memref<128x128xf32, #tpu.memory_space<vmem>>, %arg5: memref<1x128xf32, #tpu.memory_space<vmem>>, %arg6: memref<128x128xf32, #tpu.memory_space<vmem>>, %arg7: memref<128x128xf32, #tpu.memory_space<vmem>>, %arg8: memref<1x128xf32, #tpu.memory_space<vmem>>, %arg9: memref<128x128xf32, #tpu.memory_space<vmem>>, %arg10: memref<1x128xf32, #tpu.memory_space<vmem>>, %arg11: memref<8x128xf32, #tpu.memory_space<vmem>>, %arg12: memref<8x128xf32, #tpu.memory_space<vmem>>, %arg13: memref<8x128xf32, #tpu.memory_space<vmem>>) attributes {dimension_semantics = [#tpu.dimension_semantics<parallel>, #tpu.dimension_semantics<arbitrary>], iteration_bounds = array<i64: 2, 3>, scalar_prefetch = 0 : i64, scratch_operands = 2 : i64, tpu.core_type = #tpu.core_type<tc>, window_params = [{transform_indices = @transform_0, window_bounds = array<i64: 8, 16, 128>}, {transform_indices = @transform_1, window_bounds = array<i64: 8, 16, 128>}, {pipeline_mode = #tpu.pipeline_mode<synchronous>, transform_indices = @transform_2, window_bounds = array<i64: 128, 128>}, {pipeline_mode = #tpu.pipeline_mode<synchronous>, transform_indices = @transform_3, window_bounds = array<i64: 1, 128>}, {pipeline_mode = #tpu.pipeline_mode<synchronous>, transform_indices = @transform_4, window_bounds = array<i64: 128, 128>}, {pipeline_mode = #tpu.pipeline_mode<synchronous>, transform_indices = @transform_5, window_bounds = array<i64: 128, 128>}, {pipeline_mode = #tpu.pipeline_mode<synchronous>, transform_indices = @transform_6, window_bounds = array<i64: 1, 128>}, {pipeline_mode = #tpu.pipeline_mode<synchronous>, transform_indices = @transform_7, window_bounds = array<i64: 128, 128>}, {pipeline_mode = #tpu.pipeline_mode<synchronous>, transform_indices = @transform_8, window_bounds = array<i64: 1, 128>}, {transform_indices = @transform_9, window_bounds = array<i64: 8, 128>}]} {
    %c0_i32 = arith.constant 0 : i32
    %0 = arith.cmpi eq, %arg1, %c0_i32 : i32
    %1 = arith.extui %0 : i1 to i32
    %c0_i32_0 = arith.constant 0 : i32
    %2 = arith.cmpi ne, %1, %c0_i32_0 : i32
    scf.if %2 {
      %cst = arith.constant 0.000000e+00 : f32
      %16 = vector.broadcast %cst : f32 to vector<8x128xf32>
      %c0_10 = arith.constant 0 : index
      %c0_11 = arith.constant 0 : index
      %17 = vector.load %arg12[%c0_10, %c0_11] : memref<8x128xf32, #tpu.memory_space<vmem>>, vector<8x128xf32>
      tpu.vector_store %arg12[%c0_10, %c0_11], %16 {strides = array<i32>} : memref<8x128xf32, #tpu.memory_space<vmem>>, vector<8x128xf32>,
      %cst_12 = arith.constant 0.000000e+00 : f32
      %18 = vector.broadcast %cst_12 : f32 to vector<8x128xf32>
      %c0_13 = arith.constant 0 : index
      %c0_14 = arith.constant 0 : index
      %19 = vector.load %arg13[%c0_13, %c0_14] : memref<8x128xf32, #tpu.memory_space<vmem>>, vector<8x128xf32>
      tpu.vector_store %arg13[%c0_13, %c0_14], %18 {strides = array<i32>} : memref<8x128xf32, #tpu.memory_space<vmem>>, vector<8x128xf32>,
    } else {
    }
    %c2_i32 = arith.constant 2 : i32
    %3 = arith.cmpi slt, %arg1, %c2_i32 : i32
    %4 = arith.extui %3 : i1 to i32
    %c0_i32_1 = arith.constant 0 : i32
    %5 = arith.cmpi ne, %4, %c0_i32_1 : i32
    scf.if %5 {
      %c0_10 = arith.constant 0 : index
      %c0_11 = arith.constant 0 : index
      %c0_12 = arith.constant 0 : index
      %16 = vector.load %arg2[%c0_10, %c0_11, %c0_12] : memref<8x16x128xf32, #tpu.memory_space<vmem>>, vector<8x16x128xf32>
      %17 = vector.shape_cast %16 : vector<8x16x128xf32> to vector<128x128xf32>
      %c0_13 = arith.constant 0 : index
      %c0_14 = arith.constant 0 : index
      %18 = vector.load %arg4[%c0_13, %c0_14] : memref<128x128xf32, #tpu.memory_space<vmem>>, vector<128x128xf32>
      %cst = arith.constant dense<0.000000e+00> : vector<128x128xf32>
      %19 = tpu.matmul %17, %18, %cst {dimension_numbers = #tpu.dot_dimension_numbers<[1], [0], [0], [1], [0, 0, 1, 1], [], []>} : vector<128x128xf32>, vector<128x128xf32>, vector<128x128xf32> -> vector<128x128xf32>
      %c0_15 = arith.constant 0 : index
      %c0_16 = arith.constant 0 : index
      %20 = vector.load %arg5[%c0_15, %c0_16] : memref<1x128xf32, #tpu.memory_space<vmem>>, vector<1x128xf32>
      %21 = vector.broadcast %20 : vector<1x128xf32> to vector<128x128xf32>
      %22 = arith.addf %19, %21 : vector<128x128xf32>
      %cst_17 = arith.constant 0.000000e+00 : f32
      %23 = vector.broadcast %cst_17 : f32 to vector<128x128xf32>
      %24 = arith.maximumf %22, %23 : vector<128x128xf32>
      %25 = vector.shape_cast %24 : vector<128x128xf32> to vector<8x16x128xf32>
      %c1_i32 = arith.constant 1 : i32
      %26 = arith.cmpi eq, %arg1, %c1_i32 : i32
      %27 = arith.extui %26 : i1 to i32
      %c0_i32_18 = arith.constant 0 : i32
      %28 = arith.cmpi ne, %27, %c0_i32_18 : i32
      scf.if %28 {
        %c16_i32 = arith.constant 16 : i32
        %32 = arith.muli %arg1, %c16_i32 : i32
        %33 = tpu.iota {dimensions = array<i32: 1>} : vector<1x16x1xi32>
        %34 = vector.broadcast %32 : i32 to vector<1x16x1xi32>
        %35 = arith.addi %34, %33 : vector<1x16x1xi32>
        %c0_21 = arith.constant 0 : index
        %c0_22 = arith.constant 0 : index
        %36 = vector.load %arg12[%c0_21, %c0_22] : memref<8x128xf32, #tpu.memory_space<vmem>>, vector<8x128xf32>
        %c28_i32 = arith.constant 28 : i32
        %37 = vector.broadcast %c28_i32 : i32 to vector<1x16x1xi32>
        %38 = arith.cmpi slt, %35, %37 : vector<1x16x1xi32>
        %cst_23 = arith.constant 0.000000e+00 : f32
        %39 = vector.shape_cast %38 : vector<1x16x1xi1> to vector<1x16x1xi1>
        %40 = vector.broadcast %39 : vector<1x16x1xi1> to vector<8x16x128xi1>
        %41 = vector.broadcast %cst_23 : f32 to vector<8x16x128xf32>
        %42 = arith.select %40, %25, %41 : vector<8x16x128xi1>, vector<8x16x128xf32>
        %cst_24 = arith.constant dense<0.000000e+00> : vector<8x128xf32>
        %43 = vector.multi_reduction <add>, %42, %cst_24 [1] : vector<8x16x128xf32> to vector<8x128xf32>
        %44 = arith.addf %36, %43 : vector<8x128xf32>
        %c0_25 = arith.constant 0 : index
        %c0_26 = arith.constant 0 : index
        %45 = vector.load %arg12[%c0_25, %c0_26] : memref<8x128xf32, #tpu.memory_space<vmem>>, vector<8x128xf32>
        tpu.vector_store %arg12[%c0_25, %c0_26], %44 {strides = array<i32>} : memref<8x128xf32, #tpu.memory_space<vmem>>, vector<8x128xf32>,
      } else {
      }
      %c1_i32_19 = arith.constant 1 : i32
      %29 = arith.cmpi ne, %arg1, %c1_i32_19 : i32
      %30 = arith.extui %29 : i1 to i32
      %c0_i32_20 = arith.constant 0 : i32
      %31 = arith.cmpi ne, %30, %c0_i32_20 : i32
      scf.if %31 {
        %c0_21 = arith.constant 0 : index
        %c0_22 = arith.constant 0 : index
        %32 = vector.load %arg12[%c0_21, %c0_22] : memref<8x128xf32, #tpu.memory_space<vmem>>, vector<8x128xf32>
        %cst_23 = arith.constant dense<0.000000e+00> : vector<8x128xf32>
        %33 = vector.multi_reduction <add>, %25, %cst_23 [1] : vector<8x16x128xf32> to vector<8x128xf32>
        %34 = arith.addf %32, %33 : vector<8x128xf32>
        %c0_24 = arith.constant 0 : index
        %c0_25 = arith.constant 0 : index
        %35 = vector.load %arg12[%c0_24, %c0_25] : memref<8x128xf32, #tpu.memory_space<vmem>>, vector<8x128xf32>
        tpu.vector_store %arg12[%c0_24, %c0_25], %34 {strides = array<i32>} : memref<8x128xf32, #tpu.memory_space<vmem>>, vector<8x128xf32>,
      } else {
      }
    } else {
    }
    %c0 = arith.constant 0 : index
    %c0_2 = arith.constant 0 : index
    %c0_3 = arith.constant 0 : index
    %6 = vector.load %arg3[%c0, %c0_2, %c0_3] : memref<8x16x128xf32, #tpu.memory_space<vmem>>, vector<8x16x128xf32>
    %c2_i32_4 = arith.constant 2 : i32
    %7 = arith.cmpi eq, %arg1, %c2_i32_4 : i32
    %8 = arith.extui %7 : i1 to i32
    %c0_i32_5 = arith.constant 0 : i32
    %9 = arith.cmpi ne, %8, %c0_i32_5 : i32
    scf.if %9 {
      %c16_i32 = arith.constant 16 : i32
      %16 = arith.muli %arg1, %c16_i32 : i32
      %17 = tpu.iota {dimensions = array<i32: 1>} : vector<1x16x1xi32>
      %18 = vector.broadcast %16 : i32 to vector<1x16x1xi32>
      %19 = arith.addi %18, %17 : vector<1x16x1xi32>
      %c0_10 = arith.constant 0 : index
      %c0_11 = arith.constant 0 : index
      %20 = vector.load %arg13[%c0_10, %c0_11] : memref<8x128xf32, #tpu.memory_space<vmem>>, vector<8x128xf32>
      %c40_i32 = arith.constant 40 : i32
      %21 = vector.broadcast %c40_i32 : i32 to vector<1x16x1xi32>
      %22 = arith.cmpi slt, %19, %21 : vector<1x16x1xi32>
      %cst = arith.constant 0.000000e+00 : f32
      %23 = vector.shape_cast %22 : vector<1x16x1xi1> to vector<1x16x1xi1>
      %24 = vector.broadcast %23 : vector<1x16x1xi1> to vector<8x16x128xi1>
      %25 = vector.broadcast %cst : f32 to vector<8x16x128xf32>
      %26 = arith.select %24, %6, %25 : vector<8x16x128xi1>, vector<8x16x128xf32>
      %cst_12 = arith.constant dense<0.000000e+00> : vector<8x128xf32>
      %27 = vector.multi_reduction <add>, %26, %cst_12 [1] : vector<8x16x128xf32> to vector<8x128xf32>
      %28 = arith.addf %20, %27 : vector<8x128xf32>
      %c0_13 = arith.constant 0 : index
      %c0_14 = arith.constant 0 : index
      %29 = vector.load %arg13[%c0_13, %c0_14] : memref<8x128xf32, #tpu.memory_space<vmem>>, vector<8x128xf32>
      tpu.vector_store %arg13[%c0_13, %c0_14], %28 {strides = array<i32>} : memref<8x128xf32, #tpu.memory_space<vmem>>, vector<8x128xf32>,
    } else {
    }
    %c2_i32_6 = arith.constant 2 : i32
    %10 = arith.cmpi ne, %arg1, %c2_i32_6 : i32
    %11 = arith.extui %10 : i1 to i32
    %c0_i32_7 = arith.constant 0 : i32
    %12 = arith.cmpi ne, %11, %c0_i32_7 : i32
    scf.if %12 {
      %c0_10 = arith.constant 0 : index
      %c0_11 = arith.constant 0 : index
      %16 = vector.load %arg13[%c0_10, %c0_11] : memref<8x128xf32, #tpu.memory_space<vmem>>, vector<8x128xf32>
      %cst = arith.constant dense<0.000000e+00> : vector<8x128xf32>
      %17 = vector.multi_reduction <add>, %6, %cst [1] : vector<8x16x128xf32> to vector<8x128xf32>
      %18 = arith.addf %16, %17 : vector<8x128xf32>
      %c0_12 = arith.constant 0 : index
      %c0_13 = arith.constant 0 : index
      %19 = vector.load %arg13[%c0_12, %c0_13] : memref<8x128xf32, #tpu.memory_space<vmem>>, vector<8x128xf32>
      tpu.vector_store %arg13[%c0_12, %c0_13], %18 {strides = array<i32>} : memref<8x128xf32, #tpu.memory_space<vmem>>, vector<8x128xf32>,
    } else {
    }
    %c2_i32_8 = arith.constant 2 : i32
    %13 = arith.cmpi eq, %arg1, %c2_i32_8 : i32
    %14 = arith.extui %13 : i1 to i32
    %c0_i32_9 = arith.constant 0 : i32
    %15 = arith.cmpi ne, %14, %c0_i32_9 : i32
    scf.if %15 {
      %c0_10 = arith.constant 0 : index
      %c0_11 = arith.constant 0 : index
      %16 = vector.load %arg12[%c0_10, %c0_11] : memref<8x128xf32, #tpu.memory_space<vmem>>, vector<8x128xf32>
      %cst = arith.constant 0.0357142873 : f32
      %17 = vector.broadcast %cst : f32 to vector<8x128xf32>
      %18 = arith.mulf %16, %17 : vector<8x128xf32>
      %c0_12 = arith.constant 0 : index
      %c0_13 = arith.constant 0 : index
      %19 = vector.load %arg13[%c0_12, %c0_13] : memref<8x128xf32, #tpu.memory_space<vmem>>, vector<8x128xf32>
      %cst_14 = arith.constant 2.500000e-02 : f32
      %20 = vector.broadcast %cst_14 : f32 to vector<8x128xf32>
      %21 = arith.mulf %19, %20 : vector<8x128xf32>
      %c0_15 = arith.constant 0 : index
      %c0_16 = arith.constant 0 : index
      %22 = vector.load %arg6[%c0_15, %c0_16] : memref<128x128xf32, #tpu.memory_space<vmem>>, vector<128x128xf32>
      %cst_17 = arith.constant dense<0.000000e+00> : vector<8x128xf32>
      %23 = tpu.matmul %18, %22, %cst_17 {dimension_numbers = #tpu.dot_dimension_numbers<[1], [0], [0], [1], [0, 0, 1, 1], [], []>} : vector<8x128xf32>, vector<128x128xf32>, vector<8x128xf32> -> vector<8x128xf32>
      %c0_18 = arith.constant 0 : index
      %c0_19 = arith.constant 0 : index
      %24 = vector.load %arg7[%c0_18, %c0_19] : memref<128x128xf32, #tpu.memory_space<vmem>>, vector<128x128xf32>
      %cst_20 = arith.constant dense<0.000000e+00> : vector<8x128xf32>
      %25 = tpu.matmul %21, %24, %cst_20 {dimension_numbers = #tpu.dot_dimension_numbers<[1], [0], [0], [1], [0, 0, 1, 1], [], []>} : vector<8x128xf32>, vector<128x128xf32>, vector<8x128xf32> -> vector<8x128xf32>
      %26 = arith.addf %23, %25 : vector<8x128xf32>
      %c0_21 = arith.constant 0 : index
      %c0_22 = arith.constant 0 : index
      %27 = vector.load %arg8[%c0_21, %c0_22] : memref<1x128xf32, #tpu.memory_space<vmem>>, vector<1x128xf32>
      %28 = vector.broadcast %27 : vector<1x128xf32> to vector<8x128xf32>
      %29 = arith.addf %26, %28 : vector<8x128xf32>
      %c0_23 = arith.constant 0 : index
      %c0_24 = arith.constant 0 : index
      %30 = vector.load %arg9[%c0_23, %c0_24] : memref<128x128xf32, #tpu.memory_space<vmem>>, vector<128x128xf32>
      %cst_25 = arith.constant dense<0.000000e+00> : vector<8x128xf32>
      %31 = tpu.matmul %29, %30, %cst_25 {dimension_numbers = #tpu.dot_dimension_numbers<[1], [0], [0], [1], [0, 0, 1, 1], [], []>} : vector<8x128xf32>, vector<128x128xf32>, vector<8x128xf32> -> vector<8x128xf32>
      %c0_26 = arith.constant 0 : index
      %c0_27 = arith.constant 0 : index
      %32 = vector.load %arg10[%c0_26, %c0_27] : memref<1x128xf32, #tpu.memory_space<vmem>>, vector<1x128xf32>
      %33 = vector.broadcast %32 : vector<1x128xf32> to vector<8x128xf32>
      %34 = arith.addf %31, %33 : vector<8x128xf32>
      %c0_28 = arith.constant 0 : index
      %c0_29 = arith.constant 0 : index
      %35 = vector.load %arg11[%c0_28, %c0_29] : memref<8x128xf32, #tpu.memory_space<vmem>>, vector<8x128xf32>
      tpu.vector_store %arg11[%c0_28, %c0_29], %34 {strides = array<i32>} : memref<8x128xf32, #tpu.memory_space<vmem>>, vector<8x128xf32>,
    } else {
    }
    return
  }
  func.func @transform_0(%arg0: i32, %arg1: i32) -> (i32, i32, i32) {
    %c1_i32 = arith.constant 1 : i32
    %0 = arith.minsi %arg1, %c1_i32 : i32
    %c0_i32 = arith.constant 0 : i32
    %c0_i32_0 = arith.constant 0 : i32
    return %arg0, %0, %c0_i32 : i32, i32, i32
  }
  func.func @transform_1(%arg0: i32, %arg1: i32) -> (i32, i32, i32) {
    %c0_i32 = arith.constant 0 : i32
    %c0_i32_0 = arith.constant 0 : i32
    return %arg0, %arg1, %c0_i32 : i32, i32, i32
  }
  func.func @transform_2(%arg0: i32, %arg1: i32) -> (i32, i32) {
    %c0_i32 = arith.constant 0 : i32
    %c0_i32_0 = arith.constant 0 : i32
    %c0_i32_1 = arith.constant 0 : i32
    return %c0_i32, %c0_i32_0 : i32, i32
  }
  func.func @transform_3(%arg0: i32, %arg1: i32) -> (i32, i32) {
    %c0_i32 = arith.constant 0 : i32
    %c0_i32_0 = arith.constant 0 : i32
    %c0_i32_1 = arith.constant 0 : i32
    return %c0_i32, %c0_i32_0 : i32, i32
  }
  func.func @transform_4(%arg0: i32, %arg1: i32) -> (i32, i32) {
    %c0_i32 = arith.constant 0 : i32
    %c0_i32_0 = arith.constant 0 : i32
    %c0_i32_1 = arith.constant 0 : i32
    return %c0_i32, %c0_i32_0 : i32, i32
  }
  func.func @transform_5(%arg0: i32, %arg1: i32) -> (i32, i32) {
    %c0_i32 = arith.constant 0 : i32
    %c0_i32_0 = arith.constant 0 : i32
    %c0_i32_1 = arith.constant 0 : i32
    return %c0_i32, %c0_i32_0 : i32, i32
  }
  func.func @transform_6(%arg0: i32, %arg1: i32) -> (i32, i32) {
    %c0_i32 = arith.constant 0 : i32
    %c0_i32_0 = arith.constant 0 : i32
    %c0_i32_1 = arith.constant 0 : i32
    return %c0_i32, %c0_i32_0 : i32, i32
  }
  func.func @transform_7(%arg0: i32, %arg1: i32) -> (i32, i32) {
    %c0_i32 = arith.constant 0 : i32
    %c0_i32_0 = arith.constant 0 : i32
    %c0_i32_1 = arith.constant 0 : i32
    return %c0_i32, %c0_i32_0 : i32, i32
  }
  func.func @transform_8(%arg0: i32, %arg1: i32) -> (i32, i32) {
    %c0_i32 = arith.constant 0 : i32
    %c0_i32_0 = arith.constant 0 : i32
    %c0_i32_1 = arith.constant 0 : i32
    return %c0_i32, %c0_i32_0 : i32, i32
  }
  func.func @transform_9(%arg0: i32, %arg1: i32) -> (i32, i32) {
    %c0_i32 = arith.constant 0 : i32
    %c0_i32_0 = arith.constant 0 : i32
    return %arg0, %c0_i32 : i32, i32
  }
}

module attributes {stable_mosaic.version = 11 : i64} {
  func.func @_mm_classifier_kernel(%arg0: i32, %arg1: i32, %arg2: memref<8x16x128xf32, #tpu.memory_space<vmem>>, %arg3: memref<8x16x128xf32, #tpu.memory_space<vmem>>, %arg4: memref<128x128xf32, #tpu.memory_space<vmem>>, %arg5: memref<1x128xf32, #tpu.memory_space<vmem>>, %arg6: memref<128x128xf32, #tpu.memory_space<vmem>>, %arg7: memref<128x128xf32, #tpu.memory_space<vmem>>, %arg8: memref<1x128xf32, #tpu.memory_space<vmem>>, %arg9: memref<128x128xf32, #tpu.memory_space<vmem>>, %arg10: memref<1x128xf32, #tpu.memory_space<vmem>>, %arg11: memref<8x128xf32, #tpu.memory_space<vmem>>, %arg12: memref<8x128xf32, #tpu.memory_space<vmem>>, %arg13: memref<8x128xf32, #tpu.memory_space<vmem>>) attributes {dimension_semantics = [#tpu.dimension_semantics<parallel>, #tpu.dimension_semantics<arbitrary>], iteration_bounds = array<i64: 2, 3>, scalar_prefetch = 0 : i64, scratch_operands = 2 : i64, tpu.core_type = #tpu.core_type<tc>, window_params = [{transform_indices = @transform_0, window_bounds = array<i64: 8, 16, 128>}, {transform_indices = @transform_1, window_bounds = array<i64: 8, 16, 128>}, {pipeline_mode = #tpu.pipeline_mode<synchronous>, transform_indices = @transform_2, window_bounds = array<i64: 128, 128>}, {pipeline_mode = #tpu.pipeline_mode<synchronous>, transform_indices = @transform_3, window_bounds = array<i64: 1, 128>}, {pipeline_mode = #tpu.pipeline_mode<synchronous>, transform_indices = @transform_4, window_bounds = array<i64: 128, 128>}, {pipeline_mode = #tpu.pipeline_mode<synchronous>, transform_indices = @transform_5, window_bounds = array<i64: 128, 128>}, {pipeline_mode = #tpu.pipeline_mode<synchronous>, transform_indices = @transform_6, window_bounds = array<i64: 1, 128>}, {pipeline_mode = #tpu.pipeline_mode<synchronous>, transform_indices = @transform_7, window_bounds = array<i64: 128, 128>}, {pipeline_mode = #tpu.pipeline_mode<synchronous>, transform_indices = @transform_8, window_bounds = array<i64: 1, 128>}, {transform_indices = @transform_9, window_bounds = array<i64: 8, 128>}]} {
    %c0_i32 = arith.constant 0 : i32
    %0 = arith.cmpi eq, %arg1, %c0_i32 : i32
    %1 = arith.extui %0 : i1 to i32
    %c0_i32_0 = arith.constant 0 : i32
    %2 = arith.cmpi ne, %1, %c0_i32_0 : i32
    scf.if %2 {
      %cst = arith.constant 0.000000e+00 : f32
      %16 = vector.broadcast %cst : f32 to vector<8x128xf32>
      %c0_10 = arith.constant 0 : index
      %c0_11 = arith.constant 0 : index
      %17 = vector.load %arg12[%c0_10, %c0_11] : memref<8x128xf32, #tpu.memory_space<vmem>>, vector<8x128xf32>
      tpu.vector_store %arg12[%c0_10, %c0_11], %16 {strides = array<i32>} : memref<8x128xf32, #tpu.memory_space<vmem>>, vector<8x128xf32>,
      %cst_12 = arith.constant 0.000000e+00 : f32
      %18 = vector.broadcast %cst_12 : f32 to vector<8x128xf32>
      %c0_13 = arith.constant 0 : index
      %c0_14 = arith.constant 0 : index
      %19 = vector.load %arg13[%c0_13, %c0_14] : memref<8x128xf32, #tpu.memory_space<vmem>>, vector<8x128xf32>
      tpu.vector_store %arg13[%c0_13, %c0_14], %18 {strides = array<i32>} : memref<8x128xf32, #tpu.memory_space<vmem>>, vector<8x128xf32>,
    } else {
    }
    %c2_i32 = arith.constant 2 : i32
    %3 = arith.cmpi slt, %arg1, %c2_i32 : i32
    %4 = arith.extui %3 : i1 to i32
    %c0_i32_1 = arith.constant 0 : i32
    %5 = arith.cmpi ne, %4, %c0_i32_1 : i32
    scf.if %5 {
      %c0_10 = arith.constant 0 : index
      %c0_11 = arith.constant 0 : index
      %c0_12 = arith.constant 0 : index
      %16 = vector.load %arg2[%c0_10, %c0_11, %c0_12] : memref<8x16x128xf32, #tpu.memory_space<vmem>>, vector<8x16x128xf32>
      %17 = vector.shape_cast %16 : vector<8x16x128xf32> to vector<128x128xf32>
      %c0_13 = arith.constant 0 : index
      %c0_14 = arith.constant 0 : index
      %18 = vector.load %arg4[%c0_13, %c0_14] : memref<128x128xf32, #tpu.memory_space<vmem>>, vector<128x128xf32>
      %cst = arith.constant dense<0.000000e+00> : vector<128x128xf32>
      %19 = tpu.matmul %17, %18, %cst {dimension_numbers = #tpu.dot_dimension_numbers<[1], [0], [0], [1], [0, 0, 1, 1], [], []>} : vector<128x128xf32>, vector<128x128xf32>, vector<128x128xf32> -> vector<128x128xf32>
      %c0_15 = arith.constant 0 : index
      %c0_16 = arith.constant 0 : index
      %20 = vector.load %arg5[%c0_15, %c0_16] : memref<1x128xf32, #tpu.memory_space<vmem>>, vector<1x128xf32>
      %21 = vector.broadcast %20 : vector<1x128xf32> to vector<128x128xf32>
      %22 = arith.addf %19, %21 : vector<128x128xf32>
      %cst_17 = arith.constant 0.000000e+00 : f32
      %23 = vector.broadcast %cst_17 : f32 to vector<128x128xf32>
      %24 = arith.maximumf %22, %23 : vector<128x128xf32>
      %25 = vector.shape_cast %24 : vector<128x128xf32> to vector<8x16x128xf32>
      %c1_i32 = arith.constant 1 : i32
      %26 = arith.cmpi eq, %arg1, %c1_i32 : i32
      %27 = arith.extui %26 : i1 to i32
      %c0_i32_18 = arith.constant 0 : i32
      %28 = arith.cmpi ne, %27, %c0_i32_18 : i32
      scf.if %28 {
        %c16_i32 = arith.constant 16 : i32
        %32 = arith.muli %arg1, %c16_i32 : i32
        %33 = tpu.iota {dimensions = array<i32: 1>} : vector<1x16x1xi32>
        %34 = vector.broadcast %32 : i32 to vector<1x16x1xi32>
        %35 = arith.addi %34, %33 : vector<1x16x1xi32>
        %c0_21 = arith.constant 0 : index
        %c0_22 = arith.constant 0 : index
        %36 = vector.load %arg12[%c0_21, %c0_22] : memref<8x128xf32, #tpu.memory_space<vmem>>, vector<8x128xf32>
        %c28_i32 = arith.constant 28 : i32
        %37 = vector.broadcast %c28_i32 : i32 to vector<1x16x1xi32>
        %38 = arith.cmpi slt, %35, %37 : vector<1x16x1xi32>
        %cst_23 = arith.constant 0.000000e+00 : f32
        %39 = vector.shape_cast %38 : vector<1x16x1xi1> to vector<1x16x1xi1>
        %40 = vector.broadcast %39 : vector<1x16x1xi1> to vector<8x16x128xi1>
        %41 = vector.broadcast %cst_23 : f32 to vector<8x16x128xf32>
        %42 = arith.select %40, %25, %41 : vector<8x16x128xi1>, vector<8x16x128xf32>
        %cst_24 = arith.constant dense<0.000000e+00> : vector<8x128xf32>
        %43 = vector.multi_reduction <add>, %42, %cst_24 [1] : vector<8x16x128xf32> to vector<8x128xf32>
        %44 = arith.addf %36, %43 : vector<8x128xf32>
        %c0_25 = arith.constant 0 : index
        %c0_26 = arith.constant 0 : index
        %45 = vector.load %arg12[%c0_25, %c0_26] : memref<8x128xf32, #tpu.memory_space<vmem>>, vector<8x128xf32>
        tpu.vector_store %arg12[%c0_25, %c0_26], %44 {strides = array<i32>} : memref<8x128xf32, #tpu.memory_space<vmem>>, vector<8x128xf32>,
      } else {
      }
      %c1_i32_19 = arith.constant 1 : i32
      %29 = arith.cmpi ne, %arg1, %c1_i32_19 : i32
      %30 = arith.extui %29 : i1 to i32
      %c0_i32_20 = arith.constant 0 : i32
      %31 = arith.cmpi ne, %30, %c0_i32_20 : i32
      scf.if %31 {
        %c0_21 = arith.constant 0 : index
        %c0_22 = arith.constant 0 : index
        %32 = vector.load %arg12[%c0_21, %c0_22] : memref<8x128xf32, #tpu.memory_space<vmem>>, vector<8x128xf32>
        %cst_23 = arith.constant dense<0.000000e+00> : vector<8x128xf32>
        %33 = vector.multi_reduction <add>, %25, %cst_23 [1] : vector<8x16x128xf32> to vector<8x128xf32>
        %34 = arith.addf %32, %33 : vector<8x128xf32>
        %c0_24 = arith.constant 0 : index
        %c0_25 = arith.constant 0 : index
        %35 = vector.load %arg12[%c0_24, %c0_25] : memref<8x128xf32, #tpu.memory_space<vmem>>, vector<8x128xf32>
        tpu.vector_store %arg12[%c0_24, %c0_25], %34 {strides = array<i32>} : memref<8x128xf32, #tpu.memory_space<vmem>>, vector<8x128xf32>,
      } else {
      }
    } else {
    }
    %c0 = arith.constant 0 : index
    %c0_2 = arith.constant 0 : index
    %c0_3 = arith.constant 0 : index
    %6 = vector.load %arg3[%c0, %c0_2, %c0_3] : memref<8x16x128xf32, #tpu.memory_space<vmem>>, vector<8x16x128xf32>
    %c2_i32_4 = arith.constant 2 : i32
    %7 = arith.cmpi eq, %arg1, %c2_i32_4 : i32
    %8 = arith.extui %7 : i1 to i32
    %c0_i32_5 = arith.constant 0 : i32
    %9 = arith.cmpi ne, %8, %c0_i32_5 : i32
    scf.if %9 {
      %c16_i32 = arith.constant 16 : i32
      %16 = arith.muli %arg1, %c16_i32 : i32
      %17 = tpu.iota {dimensions = array<i32: 1>} : vector<1x16x1xi32>
      %18 = vector.broadcast %16 : i32 to vector<1x16x1xi32>
      %19 = arith.addi %18, %17 : vector<1x16x1xi32>
      %c0_10 = arith.constant 0 : index
      %c0_11 = arith.constant 0 : index
      %20 = vector.load %arg13[%c0_10, %c0_11] : memref<8x128xf32, #tpu.memory_space<vmem>>, vector<8x128xf32>
      %c40_i32 = arith.constant 40 : i32
      %21 = vector.broadcast %c40_i32 : i32 to vector<1x16x1xi32>
      %22 = arith.cmpi slt, %19, %21 : vector<1x16x1xi32>
      %cst = arith.constant 0.000000e+00 : f32
      %23 = vector.shape_cast %22 : vector<1x16x1xi1> to vector<1x16x1xi1>
      %24 = vector.broadcast %23 : vector<1x16x1xi1> to vector<8x16x128xi1>
      %25 = vector.broadcast %cst : f32 to vector<8x16x128xf32>
      %26 = arith.select %24, %6, %25 : vector<8x16x128xi1>, vector<8x16x128xf32>
      %cst_12 = arith.constant dense<0.000000e+00> : vector<8x128xf32>
      %27 = vector.multi_reduction <add>, %26, %cst_12 [1] : vector<8x16x128xf32> to vector<8x128xf32>
      %28 = arith.addf %20, %27 : vector<8x128xf32>
      %c0_13 = arith.constant 0 : index
      %c0_14 = arith.constant 0 : index
      %29 = vector.load %arg13[%c0_13, %c0_14] : memref<8x128xf32, #tpu.memory_space<vmem>>, vector<8x128xf32>
      tpu.vector_store %arg13[%c0_13, %c0_14], %28 {strides = array<i32>} : memref<8x128xf32, #tpu.memory_space<vmem>>, vector<8x128xf32>,
    } else {
    }
    %c2_i32_6 = arith.constant 2 : i32
    %10 = arith.cmpi ne, %arg1, %c2_i32_6 : i32
    %11 = arith.extui %10 : i1 to i32
    %c0_i32_7 = arith.constant 0 : i32
    %12 = arith.cmpi ne, %11, %c0_i32_7 : i32
    scf.if %12 {
      %c0_10 = arith.constant 0 : index
      %c0_11 = arith.constant 0 : index
      %16 = vector.load %arg13[%c0_10, %c0_11] : memref<8x128xf32, #tpu.memory_space<vmem>>, vector<8x128xf32>
      %cst = arith.constant dense<0.000000e+00> : vector<8x128xf32>
      %17 = vector.multi_reduction <add>, %6, %cst [1] : vector<8x16x128xf32> to vector<8x128xf32>
      %18 = arith.addf %16, %17 : vector<8x128xf32>
      %c0_12 = arith.constant 0 : index
      %c0_13 = arith.constant 0 : index
      %19 = vector.load %arg13[%c0_12, %c0_13] : memref<8x128xf32, #tpu.memory_space<vmem>>, vector<8x128xf32>
      tpu.vector_store %arg13[%c0_12, %c0_13], %18 {strides = array<i32>} : memref<8x128xf32, #tpu.memory_space<vmem>>, vector<8x128xf32>,
    } else {
    }
    %c2_i32_8 = arith.constant 2 : i32
    %13 = arith.cmpi eq, %arg1, %c2_i32_8 : i32
    %14 = arith.extui %13 : i1 to i32
    %c0_i32_9 = arith.constant 0 : i32
    %15 = arith.cmpi ne, %14, %c0_i32_9 : i32
    scf.if %15 {
      %c0_10 = arith.constant 0 : index
      %c0_11 = arith.constant 0 : index
      %16 = vector.load %arg12[%c0_10, %c0_11] : memref<8x128xf32, #tpu.memory_space<vmem>>, vector<8x128xf32>
      %cst = arith.constant 0.0357142873 : f32
      %17 = vector.broadcast %cst : f32 to vector<8x128xf32>
      %18 = arith.mulf %16, %17 : vector<8x128xf32>
      %c0_12 = arith.constant 0 : index
      %c0_13 = arith.constant 0 : index
      %19 = vector.load %arg13[%c0_12, %c0_13] : memref<8x128xf32, #tpu.memory_space<vmem>>, vector<8x128xf32>
      %cst_14 = arith.constant 2.500000e-02 : f32
      %20 = vector.broadcast %cst_14 : f32 to vector<8x128xf32>
      %21 = arith.mulf %19, %20 : vector<8x128xf32>
      %c0_15 = arith.constant 0 : index
      %c0_16 = arith.constant 0 : index
      %22 = vector.load %arg6[%c0_15, %c0_16] : memref<128x128xf32, #tpu.memory_space<vmem>>, vector<128x128xf32>
      %cst_17 = arith.constant dense<0.000000e+00> : vector<8x128xf32>
      %23 = tpu.matmul %18, %22, %cst_17 {dimension_numbers = #tpu.dot_dimension_numbers<[1], [0], [0], [1], [0, 0, 1, 1], [], []>} : vector<8x128xf32>, vector<128x128xf32>, vector<8x128xf32> -> vector<8x128xf32>
      %c0_18 = arith.constant 0 : index
      %c0_19 = arith.constant 0 : index
      %24 = vector.load %arg7[%c0_18, %c0_19] : memref<128x128xf32, #tpu.memory_space<vmem>>, vector<128x128xf32>
      %cst_20 = arith.constant dense<0.000000e+00> : vector<8x128xf32>
      %25 = tpu.matmul %21, %24, %cst_20 {dimension_numbers = #tpu.dot_dimension_numbers<[1], [0], [0], [1], [0, 0, 1, 1], [], []>} : vector<8x128xf32>, vector<128x128xf32>, vector<8x128xf32> -> vector<8x128xf32>
      %26 = arith.addf %23, %25 : vector<8x128xf32>
      %c0_21 = arith.constant 0 : index
      %c0_22 = arith.constant 0 : index
      %27 = vector.load %arg8[%c0_21, %c0_22] : memref<1x128xf32, #tpu.memory_space<vmem>>, vector<1x128xf32>
      %28 = vector.broadcast %27 : vector<1x128xf32> to vector<8x128xf32>
      %29 = arith.addf %26, %28 : vector<8x128xf32>
      %c0_23 = arith.constant 0 : index
      %c0_24 = arith.constant 0 : index
      %30 = vector.load %arg9[%c0_23, %c0_24] : memref<128x128xf32, #tpu.memory_space<vmem>>, vector<128x128xf32>
      %cst_25 = arith.constant dense<0.000000e+00> : vector<8x128xf32>
      %31 = tpu.matmul %29, %30, %cst_25 {dimension_numbers = #tpu.dot_dimension_numbers<[1], [0], [0], [1], [0, 0, 1, 1], [], []>} : vector<8x128xf32>, vector<128x128xf32>, vector<8x128xf32> -> vector<8x128xf32>
      %c0_26 = arith.constant 0 : index
      %c0_27 = arith.constant 0 : index
      %32 = vector.load %arg10[%c0_26, %c0_27] : memref<1x128xf32, #tpu.memory_space<vmem>>, vector<1x128xf32>
      %33 = vector.broadcast %32 : vector<1x128xf32> to vector<8x128xf32>
      %34 = arith.addf %31, %33 : vector<8x128xf32>
      %c0_28 = arith.constant 0 : index
      %c0_29 = arith.constant 0 : index
      %35 = vector.load %arg11[%c0_28, %c0_29] : memref<8x128xf32, #tpu.memory_space<vmem>>, vector<8x128xf32>
      tpu.vector_store %arg11[%c0_28, %c0_29], %34 {strides = array<i32>} : memref<8x128xf32, #tpu.memory_space<vmem>>, vector<8x128xf32>,
    } else {
    }
    return
  }
  func.func @transform_0(%arg0: i32, %arg1: i32) -> (i32, i32, i32) {
    %c1_i32 = arith.constant 1 : i32
    %0 = arith.minsi %arg1, %c1_i32 : i32
    %c0_i32 = arith.constant 0 : i32
    %c0_i32_0 = arith.constant 0 : i32
    return %arg0, %0, %c0_i32 : i32, i32, i32
  }
  func.func @transform_1(%arg0: i32, %arg1: i32) -> (i32, i32, i32) {
    %c0_i32 = arith.constant 0 : i32
    %c0_i32_0 = arith.constant 0 : i32
    return %arg0, %arg1, %c0_i32 : i32, i32, i32
  }
  func.func @transform_2(%arg0: i32, %arg1: i32) -> (i32, i32) {
    %c0_i32 = arith.constant 0 : i32
    %c0_i32_0 = arith.constant 0 : i32
    %c0_i32_1 = arith.constant 0 : i32
    return %c0_i32, %c0_i32_0 : i32, i32
  }
  func.func @transform_3(%arg0: i32, %arg1: i32) -> (i32, i32) {
    %c0_i32 = arith.constant 0 : i32
    %c0_i32_0 = arith.constant 0 : i32
    %c0_i32_1 = arith.constant 0 : i32
    return %c0_i32, %c0_i32_0 : i32, i32
  }
  func.func @transform_4(%arg0: i32, %arg1: i32) -> (i32, i32) {
    %c0_i32 = arith.constant 0 : i32
    %c0_i32_0 = arith.constant 0 : i32
    %c0_i32_1 = arith.constant 0 : i32
    return %c0_i32, %c0_i32_0 : i32, i32
  }
  func.func @transform_5(%arg0: i32, %arg1: i32) -> (i32, i32) {
    %c0_i32 = arith.constant 0 : i32
    %c0_i32_0 = arith.constant 0 : i32
    %c0_i32_1 = arith.constant 0 : i32
    return %c0_i32, %c0_i32_0 : i32, i32
  }
  func.func @transform_6(%arg0: i32, %arg1: i32) -> (i32, i32) {
    %c0_i32 = arith.constant 0 : i32
    %c0_i32_0 = arith.constant 0 : i32
    %c0_i32_1 = arith.constant 0 : i32
    return %c0_i32, %c0_i32_0 : i32, i32
  }
  func.func @transform_7(%arg0: i32, %arg1: i32) -> (i32, i32) {
    %c0_i32 = arith.constant 0 : i32
    %c0_i32_0 = arith.constant 0 : i32
    %c0_i32_1 = arith.constant 0 : i32
    return %c0_i32, %c0_i32_0 : i32, i32
  }
  func.func @transform_8(%arg0: i32, %arg1: i32) -> (i32, i32) {
    %c0_i32 = arith.constant 0 : i32
    %c0_i32_0 = arith.constant 0 : i32
    %c0_i32_1 = arith.constant 0 : i32
    return %c0_i32, %c0_i32_0 : i32, i32
  }
  func.func @transform_9(%arg0: i32, %arg1: i32) -> (i32, i32) {
    %c0_i32 = arith.constant 0 : i32
    %c0_i32_0 = arith.constant 0 : i32
    return %arg0, %c0_i32 : i32, i32
  }
}

</mosaic_0001>

<bundles_post_ra>
// kernel: tpu_custom_call.1
= control target key start
LH: loop header
LB: loop body
LE: loop exit
PB: predicated region body
PF: predicated region fallthrough
CT: control target
= control target key end

     0   :  { %s2632_s0 = inlined_call_operand.hbm [shape: f32[12,28,128], index: 0, kind: input, shape index: {}]   ;;  %s2633_s1 = inlined_call_operand.hbm [shape: f32[12,40,128], index: 1, kind: input, shape index: {}]   ;;  %s2634_s2 = inlined_call_operand.hbm [shape: f32[128,128], index: 2, kind: input, shape index: {}]   ;;  %s2635_s3 = inlined_call_operand.vmem [shape: f32[1,128], index: 3, kind: input, shape index: {}]   ;;  %s2636_s4 = inlined_call_operand.hbm [shape: f32[128,128], index: 4, kind: input, shape index: {}]   ;;  %s2637_s5 = inlined_call_operand.hbm [shape: f32[128,128], index: 5, kind: input, shape index: {}]   ;;  %s2638_s6 = inlined_call_operand.vmem [shape: f32[1,128], index: 6, kind: input, shape index: {}]   ;;  %s2639_s7 = inlined_call_operand.hbm [shape: f32[128,128], index: 7, kind: input, shape index: {}]   ;;  %s2640_s8 = inlined_call_operand.vmem [shape: f32[1,128], index: 8, kind: input, shape index: {}]   ;;  %s2641_s9 = inlined_call_operand.hbm [shape: f32[16,128], index: 9, kind: output, shape index: {}]  }
   0x1   :  { %2664 = sst [smem:[#allocation42_spill]] %s2632_s0 }
   0x2   :  { %2665 = sst [smem:[#allocation43_spill]] %s2634_s2 }
   0x3   :  { %2666 = sst [smem:[#allocation44_spill]] %s2635_s3 }
   0x4   :  { %2667 = sst [smem:[#allocation45_spill]] %s2636_s4 }
   0x5   :  { %2668 = sst [smem:[#allocation46_spill]] %s2637_s5 }
   0x6   :  { %2669 = sst [smem:[#allocation47_spill]] %s2638_s6 }
   0x7   :  { %2670 = sst [smem:[#allocation48_spill]] %s2640_s8 }
   0x8   :  { %2671 = sst [smem:[#allocation49_spill]] %s2641_s9 }
   0x9   :  { %14 = vsyncpa [#allocation5], 0 }
   0xa   :  { %16 = vsyncpa [#allocation5 + $0x1], 0 }
   0xb   :  { %17 = vsyncpa [#allocation8], 0 }
   0xc   :  { %19 = vsyncpa [#allocation8 + $0x1], 0 }
   0xd   :  { %20 = vsyncpa [#allocation11], 0 }
   0xe   :  { %21 = vsyncpa [#allocation14], 0 }
   0xf   :  { %22 = vsyncpa [#allocation6], 0 }
  0x10   :  { %24 = vsyncpa [#allocation6 + $0x1], 0  ;;  %s2045_s30 = smov 0   ;;  %s2047_s10 = smov 0  }
  0x11   :  { %s2049_s11 = smov 0   ;;  %s2051_s12 = smov 0  }
  0x12   :  { %s2053_s13 = smov 0   ;;  %s2055_s14 = smov 0  }
  0x13   :  { %s2057_s15 = smov 0   ;;  %s2059_s16 = smov 0  }
  0x14   :  { %s2061_s17 = smov 0   ;;  %s2063_s18 = smov 0  }
  0x15   :  { %s2065_s19 = smov 0   ;;  %s2067_s20 = smov 0  }
  0x16   :  { %s2069_s21 = smov 0   ;;  %s2071_s22 = smov 0  }
  0x17 LB: > { %2672 = sst [smem:[#allocation26_spill]] %s1923_s30  ;;  %s2116_s23 = sadd.s32 4294967295, %s1975_s22   ;;  %s1975_s22 = sphi %s2071_s22, %s30_s22   ;;  %s1971_s21 = sphi %s2069_s21, %s2749_s21   ;;  %s1967_s20 = sphi %s2067_s20, %s2748_s20   ;;  %s1963_s19 = sphi %s2065_s19, %s2747_s19   ;;  %s1959_s18 = sphi %s2063_s18, %s2746_s18   ;;  %s1955_s17 = sphi %s2061_s17, %s2745_s17   ;;  %s1951_s16 = sphi %s2059_s16, %s2744_s16   ;;  %s1947_s15 = sphi %s2057_s15, %s2743_s15   ;;  %s1943_s14 = sphi %s2055_s14, %s2742_s14   ;;  %s1939_s13 = sphi %s2053_s13, %s2741_s13   ;;  %s1935_s12 = sphi %s2051_s12, %s2734_s12   ;;  %s1931_s11 = sphi %s2049_s11, %s2740_s11   ;;  %s1927_s10 = sphi %s2047_s10, %s2732_s10   ;;  %s1923_s30 = sphi %s2045_s30, %s2731_s30  }
  0x18   : > { %2673 = sst [smem:[#allocation27_spill]] %s1927_s10  ;;  %s39_s25 = sadd.s32 1, %s1967_s20 }
  0x19   : > { %2674 = sst [smem:[#allocation28_spill]] %s1931_s11  ;;  %s42_s26 = sadd.s32 1, %s1971_s21 }
  0x1a   : > { %2675 = sst [smem:[#allocation29_spill]] %s1939_s13  ;;  %p40_p0 = scmp.ge.s32.totalorder %s39_s25, 3 }
  0x1b   : > { %2676 = sst [smem:[#allocation30_spill]] %s1959_s18  ;;  %p46_p1 = scmp.lt.s32.totalorder %s1967_s20, 1 }
  0x1c   : > { %2677 = sst [smem:[#allocation31_spill]] %s1963_s19  ;;  %s55_s27 = sadd.s32 1, %s1955_s17 }
  0x1d   : > { %2678 = sst [smem:[#allocation32_spill]] %s2116_s23  ;;  %p62_p2 = scmp.ne.s32.totalorder %s1955_s17, %s1951_s16 }
  0x1e   : > { %s2751_s25 = smov (%p40_p0, %s39_s25), 0  ;;  %s2753_s26 = smov (!%p40_p0, %s42_s26), %s1971_s21 }
  0x1f   : > { %2679 = sst [smem:[#allocation33_spill]] %s2751_s25  ;;  %p44_p3 = scmp.ge.s32.totalorder %s2753_s26, 2 }
  0x20   : > { %s2129_s28 = scalar_select %p46_p1, %s1967_s20, 1 }
  0x21   : > { %p48_p4 = scmp.lt.s32.totalorder %s2751_s25, 1  ;;  %p63_p5 = scmp.eq.s32.totalorder %s1975_s22, 0 }
  0x22   : > { %p68_p6 = scmp.ne.s32.totalorder %s1951_s16, %s1947_s15  ;;  %s2755_s26 = smov (%p44_p3, %s2753_s26), 0 }
  0x23   : > { %2680 = sst [smem:[#allocation34_spill]] %s2755_s26  ;;  %s50_s24 = ssub.s32 %s1971_s21, %s2755_s26 }
  0x24   : > { %s49_s29 = scalar_select %p48_p4, %s2751_s25, 1 }
  0x25   : > { %p2142_p7 = por %p63_p5, %p62_p2  ;;  %p69_p8 = scmp.eq.s32.totalorder %s2116_s23, 0 }
  0x26   : > { %s51_s19 = ssub.s32 %s2129_s28, %s49_s29  ;;  %s79_s8 = ssub.s32 %s1967_s20, %s2751_s25 }
  0x27   : > { %s52_s15 = sor.u32 %s51_s19, %s50_s24  ;;  %p2152_p10 = por %p69_p8, %p68_p6 }
  0x28   : > { %p53_p9 = scmp.eq.s32.totalorder %s52_s15, 0  ;;  %s80_s6 = sor.u32 %s79_s8, %s50_s24 }
  0x29   : > { %s2682_s26 = scalar_select %p2152_p10, 1, 0 }
  0x2a   : > { %s83_s29 = sadd.s32 1, %s1943_s14  ;;  %p81_p11 = scmp.eq.s32.totalorder %s80_s6, 0 }
  0x2b   : > { %2683 = sst [smem:[#allocation35_spill]] %s2682_s26  ;;  %p90_p12 = scmp.ne.s32.totalorder %s1943_s14, %s1939_s13 }
  0x2c   : > { %s2158_s3 = scalar_select %p53_p9, %s1955_s17, %s55_s27  }
  0x2d   : > { %p96_p13 = scmp.ne.s32.totalorder %s1939_s13, %s1935_s12  ;;  %p254_p0 = scmp.eq.s32.totalorder %s50_s24, 0 }
  0x2e   : > { %2684 = sst [smem:[#allocation36_spill]] %s2158_s3  ;;  %p2169_p1 = por %p90_p12, %p63_p5 }
  0x2f   : > { %s2165_s19 = scalar_select %p81_p11, %s1943_s14, %s83_s29  }
  0x30   : > { %p2175_p2 = por %p96_p13, %p69_p8  ;;  %s256_s27 = sadd.s32 1, %s1931_s11 }
  0x31   : > { %2685 = sst [smem:[#allocation37_spill]] %s2165_s19  ;;  %p266_p3 = scmp.ne.s32.totalorder %s1931_s11, %s1927_s10 }
  0x32   : > { %s2687_s8 = scalar_select %p2175_p2, 1, 0 }
  0x33   : > { %s2183_s25 = scalar_select %p254_p0, %s1931_s11, %s256_s27  }
  0x34   : > { %2688 = sst [smem:[#allocation38_spill]] %s2687_s8  ;;  %p267_p4 = scmp.eq.s32.totalorder %s2116_s23, 5 }
  0x35   : > { %2689 = sst [smem:[#allocation39_spill]] %s2183_s25  ;;  %p272_p6 = scmp.ne.s32.totalorder %s1927_s10, %s1923_s30 }
  0x36   : > { %s2690_s6 = sadd.s32 4294967294, %s1975_s22   ;;  %p1414_p11 = scmp.ge.s32.totalorder %s1975_s22, 1 }
  0x37   : > { %p273_p9 = scmp.eq.s32.totalorder %s2690_s6, 5  ;;  %p2191_p10 = por %p267_p4, %p266_p3 }
  0x38   : > { %p280_p5 = scmp.lt.s32.totalorder %s1975_s22, 7  ;;  %s2696_s4 = sld [smem:[#allocation45_spill]] }
  0x39   : > { %s2691_s12 = scalar_select %p2191_p10, 1, 0 }
  0x3a   : > { %p2196_p12 = por %p273_p9, %p272_p6  ;;  %p2200_p13 = pnand %p1414_p11, %p280_p5 }
  0x3b   : > { %2692 = sst [smem:[#allocation40_spill]] %s2691_s12  ;;  %s1977_s25 = smov [#allocation10]  }
  0x3c   : > { %s2693_s24 = scalar_select %p2196_p12, 1, 0 }
  0x3d   : > { %p1534_p0 = pneg %p2200_p13  ;;  %s310_s11 = sshll.u32 %s1977_s25, 4  ;;  %s311_s11 = int_to_ptr.vmem [resolvable:$true] %s310_s11 }
  0x3e   : > { %2694 = sst [smem:[#allocation41_spill]] %s2693_s24  ;;  %s308_s19 = sshll.u32 %s2696_s4, 4  ;;  %s309_s19 = int_to_ptr.hbm [resolvable:$true] %s308_s19 }
  0x3f   : > { %p2211_p3 = pnand %p1534_p0, %p69_p8  ;;  %s1978_s24 = smov 128  }
  0x40   : > { %s1979_s30 = smov 8   ;;  %s2698_s2 = sld [smem:[#allocation43_spill]] }
  0x41   : > { %1540 = dma.hbm_to_vmem [thread:$0]  (!%p2211_p3), %s309_s19, 2048, %s311_s11, [#allocation11], %s1978_s24, %s1978_s24, %s1979_s30  }
  0x42   : > { %s1980_s12 = smov [#allocation9]   ;;  %s2699_s5 = sld [smem:[#allocation46_spill]] }
  0x43   : > { %s293_s18 = sshll.u32 %s1980_s12, 4  ;;  %s339_s11 = sshll.u32 %s2639_s7, 4  ;;  %s294_s18 = int_to_ptr.vmem [resolvable:$true] %s293_s18  ;;  %s340_s11 = int_to_ptr.hbm [resolvable:$true] %s339_s11 }
  0x44   : > { %s1981_s19 = smov [#allocation12]   ;;  %s1982_s3 = smov [#allocation13]  }
  0x45   : > { %s324_s26 = sshll.u32 %s1981_s19, 4  ;;  %s341_s12 = sshll.u32 %s1982_s3, 4  ;;  %s325_s26 = int_to_ptr.vmem [resolvable:$true] %s324_s26  ;;  %s342_s12 = int_to_ptr.vmem [resolvable:$true] %s341_s12 }
  0x46   : > { %s291_s4 = sshll.u32 %s2698_s2, 4  ;;  %p1419_p4 = scmp.ge.s32.totalorder %s1975_s22, 6  ;;  %s292_s4 = int_to_ptr.hbm [resolvable:$true] %s291_s4 }
  0x47   : > { %1537 = dma.hbm_to_vmem [thread:$0]  (!%p2211_p3), %s292_s4, 2048, %s294_s18, [#allocation8], %s1978_s24, %s1978_s24, %s1979_s30  }
  0x48   : > { %s322_s13 = sshll.u32 %s2699_s5, 4  ;;  %354 = sbr.rel (%p1419_p4) target bundleno = 134 (0x86), region = 44  ;;  %s323_s13 = int_to_ptr.hbm [resolvable:$true] %s322_s13 }
  0x49   : > { %1543 = dma.hbm_to_vmem [thread:$0]  (!%p2211_p3), %s323_s13, 2048, %s325_s26, [#allocation11], %s1978_s24, %s1978_s24, %s1979_s30  }
  0x4a   : > { %1546 = dma.hbm_to_vmem [thread:$0]  (!%p2211_p3), %s340_s11, 2048, %s342_s12, [#allocation14], %s1978_s24, %s1978_s24, %s1979_s30  }
  0x4d   : > { %357 = sbr.rel (!%p2142_p7) target bundleno = 104 (0x68), region = 48 }
  0x52   : > { %s358_s4 = sand.u32 1, %s1955_s17   ;;  %s1421_s10 = sshll.u32 %s1971_s21, 3 }
  0x53   : > { %s1420_s18 = sshll.u32 %s358_s4, 7  ;;  %s1422_s23 = sshll.u32 %s2129_s28, 1 }
  0x54   : > { %s367_s8 = ssub.s32 12, %s1421_s10  ;;  %s2241_s24 = scalar_lea.sflag [#allocation5], %s358_s4 }
  0x55   : > { %p368_p6 = scmp.lt.s32.totalorder %s367_s8, 8  ;;  %s362_s9 = scalar_lea.vmem [#allocation4], %s1420_s18 }
  0x57   : > { %s2757_s8 = smov (!%p368_p6, %s367_s8), 8 }
  0x58   : > { %s1463_s13 = sshll.u32 %s2757_s8, 4 }
  0x59   : > { %s372_s30 = ssub.s32 128, %s1463_s13 }
  0x5a   : > { %s373_s26 = sshll.u32 %s372_s30, 4 }
  0x5b   : > { %374 = vsyncadd %s2241_s24, %s373_s26  ;;  %p2244_p7 = scmp.ne.s32.totalorder %s1463_s13, 0  ;;  %s1464_s28 = sshll.u32 %s1971_s21, 5 }
  0x5c   : > { %s377_s27 = sadd.s32 %s1464_s28, %s1422_s23  ;;  %s385_s25 = sld [smem:[#allocation0]]  }
  0x5d   : > { %s1427_s11 = sshll.u32 %s377_s27, 3  ;;  %s395_s19 = sshll.u32 %s362_s9, 4  ;;  %s396_s19 = int_to_ptr.vmem [resolvable:$true] %s395_s19 }
  0x5e   : > { %s2701_s0 = sld [smem:[#allocation42_spill]]  ;;  %s1431_s30 = sshll.u32 %s2757_s8, 8 }
  0x5f   : > { %s1983_s18 = smov 512   ;;  %s1984_s26 = smov 256  }
  0x60   : > { %402 = sst [smem:[#allocation17]] %s1983_s18  ;;  %s1985_s23 = smov 2  }
  0x61   : > { %404 = sst [smem:[#allocation17 + $0x1]] %s1984_s26  ;;  %s1986_s28 = smov 128  }
  0x62   : > { %s1429_s13 = sshll.u32 %s385_s25, 26  ;;  %406 = sst [smem:[#allocation17 + $0x2]] %s1985_s23 }
  0x63   : > { %s1430_s2 = sadd.s32 134217728, %s1429_s13  ;;  %408 = sst [smem:[#allocation17 + $0x3]] %s1986_s28 }
  0x64   : > { %s379_s10 = scalar_lea.hbm %s2701_s0, %s1427_s11  ;;  %410 = sst [smem:[#allocation17 + $0x4]] %s1986_s28 }
  0x65   : > { %s393_s4 = sshll.u32 %s379_s10, 4  ;;  %s1987_s9 = smov 8   ;;  %s394_s4 = int_to_ptr.hbm [resolvable:$true] %s393_s4 }
  0x66   : > { %412 = sst [smem:[#allocation17 + $0x5]] %s1987_s9  ;;  %s1988_s27 = smov [#allocation16]  }
  0x67   : > { %414 = dma.general (%p2244_p7), %s394_s4, %s1431_s30, %s396_s19, %s2241_s24, %s1988_s27, [#allocation17], %s1430_s2, 0  }
  0x68 PF: > { %417 = sbr.rel (!%p2169_p1) target bundleno = 134 (0x86), region = 52 }
  0x6d   : > { %s418_s8 = sand.u32 1, %s1975_s22   ;;  %s420_s25 = sand.u32 1, %s1943_s14  }
  0x6e   : > { %s1432_s11 = sshll.u32 %s420_s25, 7  ;;  %s1433_s3 = sshll.u32 %s1971_s21, 3 }
  0x6f   : > { %s1434_s12 = sshll.u32 %s1967_s20, 1  ;;  %s425_s10 = ssub.s32 12, %s1433_s3 }
  0x70   : > { %p426_p9 = scmp.lt.s32.totalorder %s425_s10, 8  ;;  %s429_s18 = ssub.s32 5, %s1434_s12 }
  0x71   : > { %p430_p11 = scmp.lt.s32.totalorder %s429_s18, 2  ;;  %s2265_s19 = scalar_lea.sflag [#allocation8], %s418_s8 }
  0x72   : > { %s2759_s10 = smov (!%p426_p9, %s425_s10), 8  ;;  %s422_s4 = scalar_lea.vmem [#allocation7], %s1432_s11 }
  0x73   : > { %s2761_s18 = smov (!%p430_p11, %s429_s18), 2  ;;  %s1435_s2 = sshll.u32 %s2759_s10, 3 }
  0x74   : > { %s2262_s24 = smul.u32 %s1435_s2, %s2761_s18 }
  0x76   : > { %s433_s15 = ssub.s32 128, %s2262_s24 }
  0x77   : > { %s434_s6 = sshll.u32 %s433_s15, 4 }
  0x78   : > { %435 = vsyncadd %s2265_s19, %s434_s6  ;;  %p1436_p1 = scmp.ne.s32.totalorder %s2262_s24, 0  ;;  %s1513_s30 = smul.u32 40, %s1971_s21 }
  0x79   : > { %s1439_s13 = sshll.u32 %s2761_s18, 3  ;;  %s447_s26 = sld [smem:[#allocation0]]  }
  0x7a   : > { %s438_s23 = sadd.s32 %s1513_s30, %s1434_s12  ;;  %s442_s28 = smul.u32 %s1439_s13, %s2759_s10 }
  0x7b   : > { %s1438_s9 = sshll.u32 %s438_s23, 3  ;;  %s457_s27 = sshll.u32 %s422_s4, 4  ;;  %s458_s27 = int_to_ptr.vmem [resolvable:$true] %s457_s27 }
  0x7c   : > { %s440_s2 = scalar_lea.hbm %s2633_s1, %s1438_s9  ;;  %s459_s11 = sshll.u32 %s442_s28, 4 }
  0x7d   : > { %s455_s8 = sshll.u32 %s440_s2, 4  ;;  %s1989_s6 = smov 640   ;;  %s456_s8 = int_to_ptr.hbm [resolvable:$true] %s455_s8 }
  0x7e   : > { %464 = sst [smem:[#allocation19]] %s1989_s6  ;;  %s1990_s5 = smov 256  }
  0x7f   : > { %s1440_s15 = sshll.u32 %s447_s26, 26  ;;  %466 = sst [smem:[#allocation19 + $0x1]] %s1990_s5 }
  0x80   : > { %s1441_s0 = sadd.s32 134217728, %s1440_s15  ;;  %468 = sst [smem:[#allocation19 + $0x2]] %s2761_s18 }
  0x81   : > { %s1991_s12 = smov 128   ;;  %s1992_s10 = smov 8  }
  0x82   : > { %470 = sst [smem:[#allocation19 + $0x3]] %s1991_s12  ;;  %s1993_s4 = smov [#allocation18]  }
  0x83   : > { %472 = sst [smem:[#allocation19 + $0x4]] %s1991_s12 }
  0x84   : > { %474 = sst [smem:[#allocation19 + $0x5]] %s1992_s10 }
  0x85   : > { %476 = dma.general (%p1436_p1), %s456_s8, %s459_s11, %s458_s27, %s2265_s19, %s1993_s4, [#allocation19], %s1441_s0, 0  }
  0x86 PF: > { %482 = sbr.rel (%p2200_p13) target bundleno = 863 (0x35f), region = 56  ;;  %s2702_s30 = sld [smem:[#allocation35_spill]] (!%p2200_p13) }
  0x87   : > { %s484_s13 = sand.u32 (!%p2200_p13), 1, %s1951_s16  }
  0x88   : > { %s1443_s26 = sshll.u32 (!%p2200_p13), %s484_s13, 7  ;;  %s485_s23 = scalar_lea.sflag (!%p2200_p13), [#allocation5], %s484_s13 }
  0x89   : > { %s2279_s5 = scalar_lea.vmem (!%p2200_p13), [#allocation4], %s1443_s26 }
  0x8c   : > { %p2703_p5 = scmp.ne.s32.totalorder %s2702_s30, 0 }
  0x8e   : > { %1898 = dma.done.wait (%p2703_p5), %s485_s23, 2048  }
  0x8f   : > { %1900 = vsyncadd (%p2703_p5), %s485_s23, 4294965248  ;;  %s2704_s18 = sld [smem:[#allocation32_spill]] }
  0x90   : > { %s2705_s24 = sld [smem:[#allocation29_spill]] }
  0x95   : > { %s494_s19 = sand.u32 1, %s2704_s18  }
  0x96   : > { %s496_s28 = sand.u32 1, %s2705_s24   ;;  %s495_s29 = scalar_lea.sflag [#allocation8], %s494_s19 }
  0x97   : > { %s1444_s9 = sshll.u32 %s496_s28, 7 }
  0x98   : > { %s2287_s27 = scalar_lea.vmem [#allocation7], %s1444_s9 }
  0x99   : > { %1902 = dma.done.wait (%p2175_p2), %s495_s29, 2048  }
  0x9a   : > { %1904 = vsyncadd (%p2175_p2), %s495_s29, 4294965248 }
  0x9b   : > { %1906 = dma.done.wait (%p69_p8), [#allocation8], 2048  }
  0x9c   : > { %1908 = vsyncadd (%p69_p8), [#allocation8], 4294965248 }
  0x9d   : > { %1910 = dma.done.wait (%p69_p8), [#allocation11], 4096  }
  0x9e   : > { %1912 = vsyncadd (%p69_p8), [#allocation11], 4294963200 }
  0x9f   : > { %1914 = dma.done.wait (%p69_p8), [#allocation14], 2048  }
  0xa0   : > { %1916 = vsyncadd (%p69_p8), [#allocation14], 4294965248  ;;  %s2707_s25 = sld [smem:[#allocation27_spill]] }
  0xa1   : > { %s2708_s11 = sld [smem:[#allocation30_spill]] }
  0xa6   : > { %s556_s3 = sand.u32 1, %s2707_s25  }
  0xa7   : > { %s2308_s2 = sshll.u32 %s556_s3, 3  ;;  %p1450_p2 = scmp.ne.s32.totalorder %s2708_s11, 0 }
  0xa8   : > { %s558_s8 = scalar_lea.vmem [#allocation15], %s2308_s2 }
  0xa9   : > { %581 = sbr.rel (%p1450_p2) target bundleno = 177 (0xb1), region = 84 }
  0xae   : > { %v1994_v0 = vmov 0.0  }
  0xaf   : > { %582 = vst [vmem:[#allocation2] sm:$0xff] %v1994_v0 }
  0xb0   : > { %583 = vst [vmem:[#allocation3] sm:$0xff] %v1994_v0 }
  0xb1 PF: > { %s2709_s15 = sld [smem:[#allocation30_spill]] }
  0xb7   : > { %p1451_p13 = scmp.ge.s32.totalorder %s2709_s15, 2 }
  0xb8   : > { %s2710_s10 = sld [smem:[#allocation44_spill]] (!%p1451_p13) }
  0xb9   : > { %587 = sbr.rel (%p1451_p13) target bundleno = 454 (0x1c6), region = 88  ;;  %s2711_s4 = sld [smem:[#allocation30_spill]] (!%p1451_p13) }
  0xbe   : > { %v619_v1 = vld [vmem:[#allocation9 + $0x78] sm:$0xff]  ;;  %v618_v2 = vld [vmem:[#allocation9 + $0x70] sm:$0xff]  ;;  %v617_v3 = vld [vmem:[#allocation9 + $0x68] sm:$0xff] }
  0xbf   : > { %1466 = vmatpush.msra.mxu2 %v619_v1  ;;  %1467 = vmatpush.msra.mxu3 %v619_v1  ;;  %v616_v4 = vld [vmem:[#allocation9 + $0x60] sm:$0xff]  ;;  %v615_v5 = vld [vmem:[#allocation9 + $0x58] sm:$0xff]  ;;  %v614_v6 = vld [vmem:[#allocation9 + $0x50] sm:$0xff]  ;;  %p1452_p8 = scmp.ne.s32.totalorder %s2711_s4, 1 }
  0xc0   : > { %624 = vmatpush.msra.mxu0 %v619_v1  ;;  %1465 = vmatpush.msra.mxu1 %v619_v1  ;;  %v613_v7 = vld [vmem:[#allocation9 + $0x48] sm:$0xff]  ;;  %v612_v8 = vld [vmem:[#allocation9 + $0x40] sm:$0xff]  ;;  %v611_v9 = vld [vmem:[#allocation9 + $0x38] sm:$0xff]  ;;  %s2712_s30 = sld [smem:[#allocation30_spill]] (!%p1452_p8) }
  0xc1   : > { %1469 = vmatpush.msra.mxu2 %v618_v2  ;;  %1470 = vmatpush.msra.mxu3 %v618_v2  ;;  %v610_v10 = vld [vmem:[#allocation9 + $0x30] sm:$0xff]  ;;  %v609_v11 = vld [vmem:[#allocation9 + $0x28] sm:$0xff]  ;;  %v608_v12 = vld [vmem:[#allocation9 + $0x20] sm:$0xff] }
  0xc2   : > { %625 = vmatpush.msra.mxu0 %v618_v2  ;;  %1468 = vmatpush.msra.mxu1 %v618_v2  ;;  %v607_v13 = vld [vmem:[#allocation9 + $0x18] sm:$0xff]  ;;  %v606_v14 = vld [vmem:[#allocation9 + $0x10] sm:$0xff]  ;;  %v605_v15 = vld [vmem:[#allocation9 + $0x8] sm:$0xff] }
  0xc3   : > { %1472 = vmatpush.msra.mxu2 %v617_v3  ;;  %1473 = vmatpush.msra.mxu3 %v617_v3  ;;  %v604_v16 = vld [vmem:[#allocation9] sm:$0xff]  ;;  %v597_v21 = vld [vmem:[%s2279_s5 + $0x48] sm:$0xff]  ;;  %v598_v25 = vld [vmem:[%s2279_s5 + $0x50] sm:$0xff] }
  0xc4   : > { %626 = vmatpush.msra.mxu0 %v617_v3  ;;  %1471 = vmatpush.msra.mxu1 %v617_v3  ;;  %v596_v17 = vld [vmem:[%s2279_s5 + $0x40] sm:$0xff]  ;;  %v601_v22 = vld [vmem:[%s2279_s5 + $0x68] sm:$0xff]  ;;  %v602_v26 = vld [vmem:[%s2279_s5 + $0x70] sm:$0xff] }
  0xc5   : > { %1475 = vmatpush.msra.mxu2 %v616_v4  ;;  %1476 = vmatpush.msra.mxu3 %v616_v4  ;;  %v600_v18 = vld [vmem:[%s2279_s5 + $0x60] sm:$0xff]  ;;  %v589_v23 = vld [vmem:[%s2279_s5 + $0x8] sm:$0xff]  ;;  %v590_v27 = vld [vmem:[%s2279_s5 + $0x10] sm:$0xff] }
  0xc6   : > { %627 = vmatpush.msra.mxu0 %v616_v4  ;;  %1474 = vmatpush.msra.mxu1 %v616_v4  ;;  %v588_v19 = vld [vmem:[%s2279_s5] sm:$0xff]  ;;  %v593_v24 = vld [vmem:[%s2279_s5 + $0x28] sm:$0xff]  ;;  %v594_v28 = vld [vmem:[%s2279_s5 + $0x30] sm:$0xff]  ;;  %s1453_s13 = sshll.u32 (!%p1452_p8), %s2712_s30, 4 }
  0xc7   : > { %1478 = vmatpush.msra.mxu2 %v615_v5  ;;  %1479 = vmatpush.msra.mxu3 %v615_v5  ;;  %v592_v20 = vld [vmem:[%s2279_s5 + $0x20] sm:$0xff]  ;;  %v599_v29 = vld [vmem:[%s2279_s5 + $0x58] sm:$0xff]  ;;  %v1690_v33 = vld [vmem:[%s2710_s10] ss:$0 sm:$0xff] }
  0xc8   : > { %628 = vmatpush.msra.mxu0 %v615_v5  ;;  %1477 = vmatpush.msra.mxu1 %v615_v5  ;;  %v603_v30 = vld [vmem:[%s2279_s5 + $0x78] sm:$0xff] }
  0xc9   : > { %1481 = vmatpush.msra.mxu2 %v614_v6  ;;  %1482 = vmatpush.msra.mxu3 %v614_v6  ;;  %v591_v31 = vld [vmem:[%s2279_s5 + $0x18] sm:$0xff] }
  0xca   : > { %629 = vmatpush.msra.mxu0 %v614_v6  ;;  %1480 = vmatpush.msra.mxu1 %v614_v6  ;;  %v595_v32 = vld [vmem:[%s2279_s5 + $0x38] sm:$0xff] }
  0xcb   : > { %1484 = vmatpush.msra.mxu2 %v613_v7  ;;  %1485 = vmatpush.msra.mxu3 %v613_v7 }
  0xcc   : > { %630 = vmatpush.msra.mxu0 %v613_v7  ;;  %1483 = vmatpush.msra.mxu1 %v613_v7 }
  0xcd   : > { %1487 = vmatpush.msra.mxu2 %v612_v8  ;;  %1488 = vmatpush.msra.mxu3 %v612_v8 }
  0xce   : > { %631 = vmatpush.msra.mxu0 %v612_v8  ;;  %1486 = vmatpush.msra.mxu1 %v612_v8 }
  0xcf   : > { %1490 = vmatpush.msra.mxu2 %v611_v9  ;;  %1491 = vmatpush.msra.mxu3 %v611_v9 }
  0xd0   : > { %632 = vmatpush.msra.mxu0 %v611_v9  ;;  %1489 = vmatpush.msra.mxu1 %v611_v9 }
  0xd1   : > { %1493 = vmatpush.msra.mxu2 %v610_v10  ;;  %1494 = vmatpush.msra.mxu3 %v610_v10 }
  0xd2   : > { %633 = vmatpush.msra.mxu0 %v610_v10  ;;  %1492 = vmatpush.msra.mxu1 %v610_v10 }
  0xd3   : > { %1496 = vmatpush.msra.mxu2 %v609_v11  ;;  %1497 = vmatpush.msra.mxu3 %v609_v11 }
  0xd4   : > { %634 = vmatpush.msra.mxu0 %v609_v11  ;;  %1495 = vmatpush.msra.mxu1 %v609_v11 }
  0xd5   : > { %1499 = vmatpush.msra.mxu2 %v608_v12  ;;  %1500 = vmatpush.msra.mxu3 %v608_v12 }
  0xd6   : > { %635 = vmatpush.msra.mxu0 %v608_v12  ;;  %1498 = vmatpush.msra.mxu1 %v608_v12 }
  0xd7   : > { %1502 = vmatpush.msra.mxu2 %v607_v13  ;;  %1503 = vmatpush.msra.mxu3 %v607_v13 }
  0xd8   : > { %636 = vmatpush.msra.mxu0 %v607_v13  ;;  %1501 = vmatpush.msra.mxu1 %v607_v13 }
  0xd9   : > { %1505 = vmatpush.msra.mxu2 %v606_v14  ;;  %1506 = vmatpush.msra.mxu3 %v606_v14 }
  0xda   : > { %637 = vmatpush.msra.mxu0 %v606_v14  ;;  %1504 = vmatpush.msra.mxu1 %v606_v14 }
  0xdb   : > { %1508 = vmatpush.msra.mxu2 %v605_v15  ;;  %1509 = vmatpush.msra.mxu3 %v605_v15 }
  0xdc   : > { %638 = vmatpush.msra.mxu0 %v605_v15  ;;  %1507 = vmatpush.msra.mxu1 %v605_v15 }
  0xdd   : > { %1511 = vmatpush.msra.mxu2 %v604_v16  ;;  %1512 = vmatpush.msra.mxu3 %v604_v16 }
  0xde   : > { %664 = vmatmul.f32.vlgmr.msra.gmra.mxu2 %v596_v17  ;;  %676 = vmatmul.f32.vlgmr.msra.gmra.mxu3 %v600_v18 }
  0xdf   : > { %639 = vmatpush.msra.mxu0 %v604_v16  ;;  %1510 = vmatpush.msra.mxu1 %v604_v16 }
  0xe0   : > { %640 = vmatmul.f32.vlgmr.msra.gmra.mxu0 %v588_v19  ;;  %652 = vmatmul.f32.vlgmr.msra.gmra.mxu1 %v592_v20 }
  0xe6   : > { %667 = vmatmul.f32.gmra.mxu2 %v597_v21  ;;  %679 = vmatmul.f32.gmra.mxu3 %v601_v22 }
  0xe8   : > { %643 = vmatmul.f32.gmra.mxu0 %v589_v23  ;;  %655 = vmatmul.f32.gmra.mxu1 %v593_v24 }
  0xee   : > { %670 = vmatmul.f32.gmra.mxu2 %v598_v25  ;;  %682 = vmatmul.f32.gmra.mxu3 %v602_v26 }
  0xf0   : > { %646 = vmatmul.f32.gmra.mxu0 %v590_v27  ;;  %658 = vmatmul.f32.gmra.mxu1 %v594_v28 }
  0xf6   : > { %673 = vmatmul.f32.gmra.mxu2 %v599_v29  ;;  %685 = vmatmul.f32.gmra.mxu3 %v603_v30 }
  0xf8   : > { %649 = vmatmul.f32.gmra.mxu0 %v591_v31  ;;  %661 = vmatmul.f32.gmra.mxu1 %v595_v32 }
 0x15d   : > { %v641_v34 = vpop.f32.mrf.mxu0  ;;  %v653_v35 = vpop.f32.mrf.mxu1 }
 0x15e   : > { %v2332_v36 = vadd.f32 %v1690_v33, %v641_v34  ;;  %v2334_v37 = vadd.f32 %v1690_v33, %v653_v35 }
 0x160   : > { %v689_v38 = vmax.f32 %v2332_v36, 0.0  ;;  %v693_v39 = vmax.f32 %v2334_v37, 0.0 }
 0x161   : > { %v665_v40 = vpop.f32.mrf.mxu2  ;;  %v677_v41 = vpop.f32.mrf.mxu3 }
 0x162   : > { %v2338_v42 = vadd.f32 %v1690_v33, %v665_v40  ;;  %v2340_v43 = vadd.f32 %v1690_v33, %v677_v41 }
 0x164   : > { %v697_v44 = vmax.f32 %v2338_v42, 0.0  ;;  %v701_v45 = vmax.f32 %v2340_v43, 0.0 }
 0x165   : > { %v644_v46 = vpop.f32.mrf.mxu0  ;;  %v656_v47 = vpop.f32.mrf.mxu1 }
 0x166   : > { %v2344_v48 = vadd.f32 %v1690_v33, %v644_v46  ;;  %v2346_v49 = vadd.f32 %v1690_v33, %v656_v47 }
 0x168   : > { %v690_v50 = vmax.f32 %v2344_v48, 0.0  ;;  %v694_v51 = vmax.f32 %v2346_v49, 0.0 }
 0x169   : > { %v668_v52 = vpop.f32.mrf.mxu2  ;;  %v680_v53 = vpop.f32.mrf.mxu3 }
 0x16a   : > { %v2350_v54 = vadd.f32 %v1690_v33, %v668_v52  ;;  %v2352_v55 = vadd.f32 %v1690_v33, %v680_v53 }
 0x16c   : > { %v698_v56 = vmax.f32 %v2350_v54, 0.0  ;;  %v2662_v57 = vmax.f32 %v2352_v55, 0.0 }
 0x16d   : > { %v647_v58 = vpop.f32.mrf.mxu0  ;;  %v659_v59 = vpop.f32.mrf.mxu1 }
 0x16e   : > { %v2356_v60 = vadd.f32 %v1690_v33, %v647_v58  ;;  %v2358_v61 = vadd.f32 %v1690_v33, %v659_v59 }
 0x170   : > { %v691_v62 = vmax.f32 %v2356_v60, 0.0  ;;  %v695_v63 = vmax.f32 %v2358_v61, 0.0 }
 0x171   : > { %v671_v0 = vpop.f32.mrf.mxu2  ;;  %v683_v1 = vpop.f32.mrf.mxu3 }
 0x172   : > { %v2362_v2 = vadd.f32 %v1690_v33, %v671_v0  ;;  %v2364_v3 = vadd.f32 %v1690_v33, %v683_v1 }
 0x174   : > { %v699_v4 = vmax.f32 %v2362_v2, 0.0  ;;  %v2661_v5 = vmax.f32 %v2364_v3, 0.0 }
 0x175   : > { %v650_v6 = vpop.f32.mrf.mxu0  ;;  %v662_v7 = vpop.f32.mrf.mxu1 }
 0x176   : > { %v2368_v8 = vadd.f32 %v1690_v33, %v650_v6  ;;  %v2370_v9 = vadd.f32 %v1690_v33, %v662_v7 }
 0x178   : > { %v692_v10 = vmax.f32 %v2368_v8, 0.0  ;;  %v696_v11 = vmax.f32 %v2370_v9, 0.0  ;;  %708 = sbr.rel (%p1452_p8) target bundleno = 416 (0x1a0), region = 92 }
 0x179   : > { %v674_v12 = vpop.f32.mrf.mxu2  ;;  %v686_v13 = vpop.f32.mrf.mxu3 }
 0x17a   : > { %v2374_v14 = vadd.f32 %v1690_v33, %v674_v12  ;;  %v2376_v15 = vadd.f32 %v1690_v33, %v686_v13 }
 0x17c   : > { %v700_v16 = vmax.f32 %v2374_v14, 0.0  ;;  %v2663_v17 = vmax.f32 %v2376_v15, 0.0 }
 0x17d   : > { %v710_v18 = vlaneseq  ;;  %v713_v19 = vstv %s1453_s13  ;;  %vm803_vm2 = vcmask 1041409   ;;  %vm805_vm3 = vcmask 1042434  }
 0x17e   : > { %vm807_vm4 = vcmask 1043459   ;;  %vm809_vm5 = vcmask 1044484   ;;  %vm811_vm6 = vcmask 1045509   ;;  %vm813_vm7 = vcmask 1046534  }
 0x17f   : > { %v711_v20 = vshrl.u32 %v710_v18, 7  ;;  %vm815_vm8 = vcmask 1047559  }
 0x181   : > { %v712_v21 = vadd.s32 8, %v711_v20  ;;  %v714_v22 = vadd.s32 %v713_v19, %v711_v20 }
 0x183   : > { %v715_v23 = vadd.s32 %v713_v19, %v712_v21  ;;  %vm717_vm0 = vcmp.lt.s32.totalorder %v714_v22, 28 }
 0x184   : > { %v723_v24 = vsel %vm717_vm0, %v689_v38, 0.0  ;;  %v725_v25 = vsel %vm717_vm0, %v691_v62, 0.0  ;;  %v727_v26 = vsel %vm717_vm0, %v693_v39, 0.0  ;;  %v729_v27 = vsel %vm717_vm0, %v695_v63, 0.0 }
 0x185   : > { %vm718_vm1 = vcmp.lt.s32.totalorder %v715_v23, 28  ;;  %v731_v28 = vsel %vm717_vm0, %v697_v44, 0.0  ;;  %v733_v29 = vsel %vm717_vm0, %v699_v4, 0.0  ;;  %v735_v30 = vsel %vm717_vm0, %v701_v45, 0.0 }
 0x186   : > { %v724_v31 = vsel %vm718_vm1, %v690_v50, 0.0  ;;  %v726_v32 = vsel %vm718_vm1, %v692_v10, 0.0  ;;  %v728_v33 = vsel %vm718_vm1, %v694_v51, 0.0  ;;  %v730_v34 = vsel %vm718_vm1, %v696_v11, 0.0 }
 0x187   : > { %v732_v35 = vsel %vm718_vm1, %v698_v56, 0.0  ;;  %v734_v40 = vsel %vm718_vm1, %v700_v16, 0.0  ;;  %v736_v41 = vsel %vm718_vm1, %v2662_v57, 0.0  ;;  %v737_v46 = vsel %vm717_vm0, %v2661_v5, 0.0 }
 0x188   : > { %v738_v47 = vsel %vm718_vm1, %v2663_v17, 0.0  ;;  %v739_v52 = vadd.f32 %v724_v31, %v723_v24  ;;  %v746_v53 = vadd.f32 %v726_v32, %v725_v25  ;;  %v753_v58 = vadd.f32 %v728_v33, %v727_v26 }
 0x189   : > { %v760_v59 = vadd.f32 %v730_v34, %v729_v27  ;;  %v767_v0 = vadd.f32 %v732_v35, %v731_v28  ;;  %v774_v1 = vadd.f32 %v734_v40, %v733_v29  ;;  %v781_v6 = vadd.f32 %v736_v41, %v735_v30 }
 0x18a   : > { %v740_v7 = vrot.slane %v739_v52, 4  ;;  %v747_v12 = vrot.slane %v746_v53, 4  ;;  %v754_v13 = vrot.slane %v753_v58, 4  ;;  %v788_v18 = vadd.f32 %v738_v47, %v737_v46 }
 0x18b   : > { %v761_v19 = vrot.slane %v760_v59, 4  ;;  %v768_v20 = vrot.slane %v767_v0, 4  ;;  %v775_v21 = vrot.slane %v774_v1, 4  ;;  %v782_v23 = vrot.slane %v781_v6, 4 }
 0x18c   : > { %v741_v22 = vadd.f32 %v740_v7, %v739_v52  ;;  %v748_v5 = vadd.f32 %v747_v12, %v746_v53  ;;  %v755_v57 = vadd.f32 %v754_v13, %v753_v58  ;;  %v789_v17 = vrot.slane %v788_v18, 4 }
 0x18d   : > { %v762_v24 = vadd.f32 %v761_v19, %v760_v59  ;;  %v769_v25 = vadd.f32 %v768_v20, %v767_v0  ;;  %v776_v26 = vadd.f32 %v775_v21, %v774_v1  ;;  %v783_v27 = vadd.f32 %v782_v23, %v781_v6 }
 0x18e   : > { %v742_v28 = vrot.slane %v741_v22, 2  ;;  %v749_v29 = vrot.slane %v748_v5, 2  ;;  %v756_v30 = vrot.slane %v755_v57, 2  ;;  %v790_v31 = vadd.f32 %v789_v17, %v788_v18 }
 0x18f   : > { %v763_v32 = vrot.slane %v762_v24, 2  ;;  %v770_v33 = vrot.slane %v769_v25, 2  ;;  %v777_v34 = vrot.slane %v776_v26, 2  ;;  %v784_v35 = vrot.slane %v783_v27, 2 }
 0x190   : > { %v743_v40 = vadd.f32 %v742_v28, %v741_v22  ;;  %v750_v41 = vadd.f32 %v749_v29, %v748_v5  ;;  %v757_v46 = vadd.f32 %v756_v30, %v755_v57  ;;  %v791_v47 = vrot.slane %v790_v31, 2  ;;  %v716_v30 = vld [vmem:[#allocation2] sm:$0xff] }
 0x191   : > { %v764_v52 = vadd.f32 %v763_v32, %v762_v24  ;;  %v771_v53 = vadd.f32 %v770_v33, %v769_v25  ;;  %v778_v58 = vadd.f32 %v777_v34, %v776_v26  ;;  %v785_v7 = vadd.f32 %v784_v35, %v783_v27 }
 0x192   : > { %v744_v59 = vrot.slane %v743_v40, 1  ;;  %v751_v0 = vrot.slane %v750_v41, 1  ;;  %v758_v1 = vrot.slane %v757_v46, 1  ;;  %v792_v6 = vadd.f32 %v791_v47, %v790_v31 }
 0x193   : > { %v765_v12 = vrot.slane %v764_v52, 1  ;;  %v772_v13 = vrot.slane %v771_v53, 1  ;;  %v779_v19 = vrot.slane %v778_v58, 1  ;;  %v786_v17 = vrot.slane %v785_v7, 1 }
 0x194   : > { %v745_v18 = vadd.f32 %v744_v59, %v743_v40  ;;  %v752_v20 = vadd.f32 %v751_v0, %v750_v41  ;;  %v759_v21 = vadd.f32 %v758_v1, %v757_v46  ;;  %v793_v23 = vrot.slane %v792_v6, 1 }
 0x195   : > { %v766_v22 = vadd.f32 %v765_v12, %v764_v52  ;;  %v773_v5 = vadd.f32 %v772_v13, %v771_v53  ;;  %v780_v57 = vadd.f32 %v779_v19, %v778_v58  ;;  %v787_v25 = vadd.f32 %v786_v17, %v785_v7 }
 0x196   : > { %v804_v24 = vsel %vm803_vm2, %v752_v20, %v745_v18  ;;  %v794_v27 = vadd.f32 %v793_v23, %v792_v6 }
 0x197   : > { %v806_v26 = vsel %vm805_vm3, %v759_v21, %v804_v24 }
 0x198   : > { %v808_v28 = vsel %vm807_vm4, %v766_v22, %v806_v26 }
 0x199   : > { %v810_v29 = vsel %vm809_vm5, %v773_v5, %v808_v28 }
 0x19a   : > { %v812_v31 = vsel %vm811_vm6, %v780_v57, %v810_v29 }
 0x19b   : > { %v814_v32 = vsel %vm813_vm7, %v787_v25, %v812_v31 }
 0x19c   : > { %v816_v33 = vsel %vm815_vm8, %v794_v27, %v814_v32 }
 0x19d   : > { %v818_v34 = vadd.f32 %v816_v33, %v716_v30 }
 0x19f   : > { %819 = vst [vmem:[#allocation2] sm:$0xff] %v818_v34 }
 0x1a0 PF: > { %s2713_s26 = sld [smem:[#allocation30_spill]] }
 0x1a6   : > { %p1454_p0 = scmp.eq.s32.totalorder %s2713_s26, 1 }
 0x1a8   : > { %823 = sbr.rel (%p1454_p0) target bundleno = 454 (0x1c6), region = 96 }
 0x1ad   : > { %v825_v35 = vadd.f32 %v690_v50, %v689_v38  ;;  %v832_v40 = vadd.f32 %v692_v10, %v691_v62  ;;  %v839_v41 = vadd.f32 %v694_v51, %v693_v39  ;;  %v846_v46 = vadd.f32 %v696_v11, %v695_v63  ;;  %v824_v34 = vld [vmem:[#allocation2] sm:$0xff] }
 0x1ae   : > { %v853_v36 = vadd.f32 %v698_v56, %v697_v44  ;;  %v860_v38 = vadd.f32 %v700_v16, %v699_v4  ;;  %v2714_v37 = vmax.f32 %v2352_v55, 0.0  ;;  %v2715_v48 = vmax.f32 %v2364_v3, 0.0 }
 0x1af   : > { %v2716_v49 = vmax.f32 %v2376_v15, 0.0  ;;  %v826_v51 = vrot.slane %v825_v35, 4  ;;  %v833_v42 = vrot.slane %v832_v40, 4  ;;  %v840_v60 = vrot.slane %v839_v41, 4 }
 0x1b0   : > { %v867_v39 = vadd.f32 %v2714_v37, %v701_v45  ;;  %v847_v54 = vrot.slane %v846_v46, 4  ;;  %v854_v44 = vrot.slane %v853_v36, 4  ;;  %v861_v56 = vrot.slane %v860_v38, 4 }
 0x1b1   : > { %v874_v50 = vadd.f32 %v2716_v49, %v2715_v48  ;;  %v827_v63 = vadd.f32 %v826_v51, %v825_v35  ;;  %v834_v2 = vadd.f32 %v833_v42, %v832_v40  ;;  %v841_v4 = vadd.f32 %v840_v60, %v839_v41 }
 0x1b2   : > { %v868_v61 = vrot.slane %v867_v39, 4  ;;  %v848_v43 = vadd.f32 %v847_v54, %v846_v46  ;;  %v855_v8 = vadd.f32 %v854_v44, %v853_v36  ;;  %v862_v55 = vadd.f32 %v861_v56, %v860_v38 }
 0x1b3   : > { %v875_v62 = vrot.slane %v874_v50, 4  ;;  %v828_v3 = vrot.slane %v827_v63, 2  ;;  %v835_v10 = vrot.slane %v834_v2, 2  ;;  %v842_v11 = vrot.slane %v841_v4, 2 }
 0x1b4   : > { %v869_v45 = vadd.f32 %v868_v61, %v867_v39  ;;  %v849_v14 = vrot.slane %v848_v43, 2  ;;  %v856_v15 = vrot.slane %v855_v8, 2  ;;  %v863_v16 = vrot.slane %v862_v55, 2 }
 0x1b5   : > { %v876_v9 = vadd.f32 %v875_v62, %v874_v50  ;;  %v829_v53 = vadd.f32 %v828_v3, %v827_v63  ;;  %v836_v58 = vadd.f32 %v835_v10, %v834_v2  ;;  %v843_v7 = vadd.f32 %v842_v11, %v841_v4 }
 0x1b6   : > { %v870_v47 = vrot.slane %v869_v45, 2  ;;  %v850_v59 = vadd.f32 %v849_v14, %v848_v43  ;;  %v857_v0 = vadd.f32 %v856_v15, %v855_v8  ;;  %v864_v1 = vadd.f32 %v863_v16, %v862_v55 }
 0x1b7   : > { %v877_v52 = vrot.slane %v876_v9, 2  ;;  %v830_v13 = vrot.slane %v829_v53, 1  ;;  %v837_v19 = vrot.slane %v836_v58, 1  ;;  %v844_v17 = vrot.slane %v843_v7, 1 }
 0x1b8   : > { %v871_v6 = vadd.f32 %v870_v47, %v869_v45  ;;  %v851_v18 = vrot.slane %v850_v59, 1  ;;  %v858_v20 = vrot.slane %v857_v0, 1  ;;  %v865_v21 = vrot.slane %v864_v1, 1 }
 0x1b9   : > { %v878_v12 = vadd.f32 %v877_v52, %v876_v9  ;;  %v831_v23 = vadd.f32 %v830_v13, %v829_v53  ;;  %v838_v22 = vadd.f32 %v837_v19, %v836_v58  ;;  %v845_v5 = vadd.f32 %v844_v17, %v843_v7 }
 0x1ba   : > { %v872_v57 = vrot.slane %v871_v6, 1  ;;  %v852_v24 = vadd.f32 %v851_v18, %v850_v59  ;;  %v859_v26 = vadd.f32 %v858_v20, %v857_v0  ;;  %vm889_vm9 = vcmask 1041409  }
 0x1bb   : > { %v879_v25 = vrot.slane %v878_v12, 1  ;;  %vm891_vm10 = vcmask 1042434   ;;  %vm893_vm11 = vcmask 1043459   ;;  %v866_v27 = vadd.f32 %v865_v21, %v864_v1 }
 0x1bc   : > { %v890_v28 = vsel %vm889_vm9, %v838_v22, %v831_v23  ;;  %vm895_vm12 = vcmask 1044484   ;;  %v873_v29 = vadd.f32 %v872_v57, %v871_v6  ;;  %vm897_vm13 = vcmask 1045509  }
 0x1bd   : > { %v892_v30 = vsel %vm891_vm10, %v845_v5, %v890_v28  ;;  %v880_v31 = vadd.f32 %v879_v25, %v878_v12  ;;  %vm899_vm14 = vcmask 1046534   ;;  %vm901_vm15 = vcmask 1047559  }
 0x1be   : > { %v894_v32 = vsel %vm893_vm11, %v852_v24, %v892_v30 }
 0x1bf   : > { %v896_v33 = vsel %vm895_vm12, %v859_v26, %v894_v32 }
 0x1c0   : > { %v898_v35 = vsel %vm897_vm13, %v866_v27, %v896_v33 }
 0x1c1   : > { %v900_v40 = vsel %vm899_vm14, %v873_v29, %v898_v35 }
 0x1c2   : > { %v902_v41 = vsel %vm901_vm15, %v880_v31, %v900_v40 }
 0x1c3   : > { %v904_v46 = vadd.f32 %v902_v41, %v824_v34 }
 0x1c5   : > { %905 = vst [vmem:[#allocation2] sm:$0xff] %v904_v46 }
 0x1c6 PF: > { %v2458_v36 = vld [vmem:[%s2287_s27] sm:$0xff]  ;;  %v2461_v38 = vld [vmem:[%s2287_s27 + $0x8] sm:$0xff]  ;;  %v2464_v37 = vld [vmem:[%s2287_s27 + $0x10] sm:$0xff]  ;;  %s2717_s23 = sld [smem:[#allocation30_spill]] }
 0x1c7   : > { %v2467_v39 = vld [vmem:[%s2287_s27 + $0x18] sm:$0xff]  ;;  %v2470_v48 = vld [vmem:[%s2287_s27 + $0x20] sm:$0xff]  ;;  %v2473_v49 = vld [vmem:[%s2287_s27 + $0x28] sm:$0xff] }
 0x1c8   : > { %v2476_v50 = vld [vmem:[%s2287_s27 + $0x30] sm:$0xff]  ;;  %v2479_v51 = vld [vmem:[%s2287_s27 + $0x38] sm:$0xff]  ;;  %v2482_v42 = vld [vmem:[%s2287_s27 + $0x40] sm:$0xff] }
 0x1c9   : > { %v2485_v60 = vld [vmem:[%s2287_s27 + $0x48] sm:$0xff]  ;;  %v2488_v54 = vld [vmem:[%s2287_s27 + $0x50] sm:$0xff]  ;;  %v2491_v44 = vld [vmem:[%s2287_s27 + $0x58] sm:$0xff] }
 0x1ca   : > { %v2494_v56 = vld [vmem:[%s2287_s27 + $0x60] sm:$0xff]  ;;  %v2497_v61 = vld [vmem:[%s2287_s27 + $0x68] sm:$0xff]  ;;  %v2500_v62 = vld [vmem:[%s2287_s27 + $0x70] sm:$0xff] }
 0x1cb   : > { %v2503_v63 = vld [vmem:[%s2287_s27 + $0x78] sm:$0xff] }
 0x1cc   : > { %p1455_p3 = scmp.ne.s32.totalorder %s2717_s23, 2 }
 0x1cd   : > { %s2718_s5 = sld [smem:[#allocation30_spill]] (!%p1455_p3) }
 0x1ce   : > { %925 = sbr.rel (%p1455_p3) target bundleno = 502 (0x1f6), region = 100 }
 0x1d3   : > { %s1456_s18 = sshll.u32 %s2718_s5, 4  ;;  %v927_v2 = vlaneseq  ;;  %vm1020_vm2 = vcmask 1041409   ;;  %vm1022_vm3 = vcmask 1042434   ;;  %vm1024_vm4 = vcmask 1043459  }
 0x1d4   : > { %v930_v4 = vstv %s1456_s18  ;;  %vm1026_vm5 = vcmask 1044484   ;;  %vm1028_vm6 = vcmask 1045509   ;;  %vm1030_vm7 = vcmask 1046534  }
 0x1d5   : > { %v928_v43 = vshrl.u32 %v927_v2, 7  ;;  %vm1032_vm8 = vcmask 1047559  }
 0x1d7   : > { %v929_v8 = vadd.s32 8, %v928_v43  ;;  %v931_v55 = vadd.s32 %v930_v4, %v928_v43 }
 0x1d9   : > { %v932_v45 = vadd.s32 %v930_v4, %v929_v8  ;;  %vm934_vm0 = vcmp.lt.s32.totalorder %v931_v55, 40 }
 0x1da   : > { %v940_v9 = vsel %vm934_vm0, %v2458_v36, 0.0  ;;  %v942_v3 = vsel %vm934_vm0, %v2464_v37, 0.0  ;;  %v944_v10 = vsel %vm934_vm0, %v2470_v48, 0.0  ;;  %v946_v11 = vsel %vm934_vm0, %v2476_v50, 0.0 }
 0x1db   : > { %vm935_vm1 = vcmp.lt.s32.totalorder %v932_v45, 40  ;;  %v948_v14 = vsel %vm934_vm0, %v2482_v42, 0.0  ;;  %v950_v15 = vsel %vm934_vm0, %v2488_v54, 0.0  ;;  %v952_v16 = vsel %vm934_vm0, %v2494_v56, 0.0 }
 0x1dc   : > { %v941_v47 = vsel %vm935_vm1, %v2461_v38, 0.0  ;;  %v943_v52 = vsel %vm935_vm1, %v2467_v39, 0.0  ;;  %v945_v53 = vsel %vm935_vm1, %v2473_v49, 0.0  ;;  %v947_v58 = vsel %vm935_vm1, %v2479_v51, 0.0 }
 0x1dd   : > { %v949_v7 = vsel %vm935_vm1, %v2485_v60, 0.0  ;;  %v951_v59 = vsel %vm935_vm1, %v2491_v44, 0.0  ;;  %v953_v0 = vsel %vm935_vm1, %v2497_v61, 0.0  ;;  %v954_v1 = vsel %vm934_vm0, %v2500_v62, 0.0 }
 0x1de   : > { %v955_v6 = vsel %vm935_vm1, %v2503_v63, 0.0  ;;  %v956_v12 = vadd.f32 %v941_v47, %v940_v9  ;;  %v963_v13 = vadd.f32 %v943_v52, %v942_v3  ;;  %v970_v19 = vadd.f32 %v945_v53, %v944_v10 }
 0x1df   : > { %v977_v17 = vadd.f32 %v947_v58, %v946_v11  ;;  %v984_v18 = vadd.f32 %v949_v7, %v948_v14  ;;  %v991_v20 = vadd.f32 %v951_v59, %v950_v15  ;;  %v998_v21 = vadd.f32 %v953_v0, %v952_v16 }
 0x1e0   : > { %v957_v23 = vrot.slane %v956_v12, 4  ;;  %v964_v22 = vrot.slane %v963_v13, 4  ;;  %v971_v5 = vrot.slane %v970_v19, 4  ;;  %v1005_v57 = vadd.f32 %v955_v6, %v954_v1 }
 0x1e1   : > { %v978_v24 = vrot.slane %v977_v17, 4  ;;  %v985_v25 = vrot.slane %v984_v18, 4  ;;  %v992_v26 = vrot.slane %v991_v20, 4  ;;  %v999_v27 = vrot.slane %v998_v21, 4 }
 0x1e2   : > { %v958_v28 = vadd.f32 %v957_v23, %v956_v12  ;;  %v965_v29 = vadd.f32 %v964_v22, %v963_v13  ;;  %v972_v30 = vadd.f32 %v971_v5, %v970_v19  ;;  %v1006_v31 = vrot.slane %v1005_v57, 4 }
 0x1e3   : > { %v979_v32 = vadd.f32 %v978_v24, %v977_v17  ;;  %v986_v33 = vadd.f32 %v985_v25, %v984_v18  ;;  %v993_v34 = vadd.f32 %v992_v26, %v991_v20  ;;  %v1000_v35 = vadd.f32 %v999_v27, %v998_v21  ;;  %v933_v25 = vld [vmem:[#allocation3] sm:$0xff] }
 0x1e4   : > { %v959_v40 = vrot.slane %v958_v28, 2  ;;  %v966_v41 = vrot.slane %v965_v29, 2  ;;  %v973_v46 = vrot.slane %v972_v30, 2  ;;  %v1007_v2 = vadd.f32 %v1006_v31, %v1005_v57 }
 0x1e5   : > { %v980_v4 = vrot.slane %v979_v32, 2  ;;  %v987_v43 = vrot.slane %v986_v33, 2  ;;  %v994_v8 = vrot.slane %v993_v34, 2  ;;  %v1001_v55 = vrot.slane %v1000_v35, 2 }
 0x1e6   : > { %v960_v45 = vadd.f32 %v959_v40, %v958_v28  ;;  %v967_v9 = vadd.f32 %v966_v41, %v965_v29  ;;  %v974_v3 = vadd.f32 %v973_v46, %v972_v30  ;;  %v1008_v10 = vrot.slane %v1007_v2, 2 }
 0x1e7   : > { %v981_v11 = vadd.f32 %v980_v4, %v979_v32  ;;  %v988_v14 = vadd.f32 %v987_v43, %v986_v33  ;;  %v995_v15 = vadd.f32 %v994_v8, %v993_v34  ;;  %v1002_v16 = vadd.f32 %v1001_v55, %v1000_v35 }
 0x1e8   : > { %v961_v47 = vrot.slane %v960_v45, 1  ;;  %v968_v52 = vrot.slane %v967_v9, 1  ;;  %v975_v53 = vrot.slane %v974_v3, 1  ;;  %v1009_v58 = vadd.f32 %v1008_v10, %v1007_v2 }
 0x1e9   : > { %v982_v7 = vrot.slane %v981_v11, 1  ;;  %v989_v59 = vrot.slane %v988_v14, 1  ;;  %v996_v0 = vrot.slane %v995_v15, 1  ;;  %v1003_v1 = vrot.slane %v1002_v16, 1 }
 0x1ea   : > { %v962_v6 = vadd.f32 %v961_v47, %v960_v45  ;;  %v969_v12 = vadd.f32 %v968_v52, %v967_v9  ;;  %v976_v13 = vadd.f32 %v975_v53, %v974_v3  ;;  %v1010_v19 = vrot.slane %v1009_v58, 1 }
 0x1eb   : > { %v983_v17 = vadd.f32 %v982_v7, %v981_v11  ;;  %v990_v18 = vadd.f32 %v989_v59, %v988_v14  ;;  %v997_v20 = vadd.f32 %v996_v0, %v995_v15  ;;  %v1004_v23 = vadd.f32 %v1003_v1, %v1002_v16 }
 0x1ec   : > { %v1021_v21 = vsel %vm1020_vm2, %v969_v12, %v962_v6  ;;  %v1011_v5 = vadd.f32 %v1010_v19, %v1009_v58 }
 0x1ed   : > { %v1023_v22 = vsel %vm1022_vm3, %v976_v13, %v1021_v21 }
 0x1ee   : > { %v1025_v57 = vsel %vm1024_vm4, %v983_v17, %v1023_v22 }
 0x1ef   : > { %v1027_v24 = vsel %vm1026_vm5, %v990_v18, %v1025_v57 }
 0x1f0   : > { %v1029_v26 = vsel %vm1028_vm6, %v997_v20, %v1027_v24 }
 0x1f1   : > { %v1031_v27 = vsel %vm1030_vm7, %v1004_v23, %v1029_v26 }
 0x1f2   : > { %v1033_v28 = vsel %vm1032_vm8, %v1011_v5, %v1031_v27 }
 0x1f3   : > { %v1035_v29 = vadd.f32 %v1033_v28, %v933_v25 }
 0x1f5   : > { %1036 = vst [vmem:[#allocation3] sm:$0xff] %v1035_v29 }
 0x1f6 PF: > { %s2719_s24 = sld [smem:[#allocation30_spill]] }
 0x1fc   : > { %p1457_p4 = scmp.eq.s32.totalorder %s2719_s24, 2 }
 0x1fe   : > { %1040 = sbr.rel (%p1457_p4) target bundleno = 539 (0x21b), region = 104 }
 0x203   : > { %v1042_v30 = vadd.f32 %v2461_v38, %v2458_v36  ;;  %v1049_v31 = vadd.f32 %v2467_v39, %v2464_v37  ;;  %v1056_v32 = vadd.f32 %v2473_v49, %v2470_v48  ;;  %v1063_v33 = vadd.f32 %v2479_v51, %v2476_v50  ;;  %v1041_v26 = vld [vmem:[#allocation3] sm:$0xff] }
 0x204   : > { %v1070_v34 = vadd.f32 %v2485_v60, %v2482_v42  ;;  %v1077_v35 = vadd.f32 %v2491_v44, %v2488_v54  ;;  %v1084_v40 = vadd.f32 %v2497_v61, %v2494_v56  ;;  %v1091_v36 = vadd.f32 %v2503_v63, %v2500_v62 }
 0x205   : > { %v1043_v38 = vrot.slane %v1042_v30, 4  ;;  %v1050_v37 = vrot.slane %v1049_v31, 4  ;;  %v1057_v39 = vrot.slane %v1056_v32, 4  ;;  %v1064_v41 = vrot.slane %v1063_v33, 4 }
 0x206   : > { %v1071_v48 = vrot.slane %v1070_v34, 4  ;;  %v1078_v49 = vrot.slane %v1077_v35, 4  ;;  %v1085_v46 = vrot.slane %v1084_v40, 4  ;;  %v1092_v50 = vrot.slane %v1091_v36, 4 }
 0x207   : > { %v1044_v51 = vadd.f32 %v1043_v38, %v1042_v30  ;;  %v1051_v2 = vadd.f32 %v1050_v37, %v1049_v31  ;;  %v1058_v42 = vadd.f32 %v1057_v39, %v1056_v32  ;;  %v1065_v60 = vadd.f32 %v1064_v41, %v1063_v33 }
 0x208   : > { %v1072_v4 = vadd.f32 %v1071_v48, %v1070_v34  ;;  %v1079_v54 = vadd.f32 %v1078_v49, %v1077_v35  ;;  %v1086_v44 = vadd.f32 %v1085_v46, %v1084_v40  ;;  %v1093_v43 = vadd.f32 %v1092_v50, %v1091_v36 }
 0x209   : > { %v1045_v56 = vrot.slane %v1044_v51, 2  ;;  %v1052_v61 = vrot.slane %v1051_v2, 2  ;;  %v1059_v8 = vrot.slane %v1058_v42, 2  ;;  %v1066_v62 = vrot.slane %v1065_v60, 2 }
 0x20a   : > { %v1073_v63 = vrot.slane %v1072_v4, 2  ;;  %v1080_v55 = vrot.slane %v1079_v54, 2  ;;  %v1087_v45 = vrot.slane %v1086_v44, 2  ;;  %v1094_v9 = vrot.slane %v1093_v43, 2 }
 0x20b   : > { %v1046_v3 = vadd.f32 %v1045_v56, %v1044_v51  ;;  %v1053_v10 = vadd.f32 %v1052_v61, %v1051_v2  ;;  %v1060_v11 = vadd.f32 %v1059_v8, %v1058_v42  ;;  %v1067_v14 = vadd.f32 %v1066_v62, %v1065_v60 }
 0x20c   : > { %v1074_v15 = vadd.f32 %v1073_v63, %v1072_v4  ;;  %v1081_v16 = vadd.f32 %v1080_v55, %v1079_v54  ;;  %v1088_v47 = vadd.f32 %v1087_v45, %v1086_v44  ;;  %v1095_v52 = vadd.f32 %v1094_v9, %v1093_v43 }
 0x20d   : > { %v1047_v53 = vrot.slane %v1046_v3, 1  ;;  %v1054_v58 = vrot.slane %v1053_v10, 1  ;;  %v1061_v7 = vrot.slane %v1060_v11, 1  ;;  %v1068_v59 = vrot.slane %v1067_v14, 1 }
 0x20e   : > { %v1075_v0 = vrot.slane %v1074_v15, 1  ;;  %v1082_v1 = vrot.slane %v1081_v16, 1  ;;  %v1089_v19 = vrot.slane %v1088_v47, 1  ;;  %v1096_v18 = vrot.slane %v1095_v52, 1 }
 0x20f   : > { %v1048_v6 = vadd.f32 %v1047_v53, %v1046_v3  ;;  %v1055_v12 = vadd.f32 %v1054_v58, %v1053_v10  ;;  %v1062_v13 = vadd.f32 %v1061_v7, %v1060_v11  ;;  %v1069_v17 = vadd.f32 %v1068_v59, %v1067_v14 }
 0x210   : > { %v1076_v20 = vadd.f32 %v1075_v0, %v1074_v15  ;;  %vm1106_vm9 = vcmask 1041409   ;;  %vm1108_vm10 = vcmask 1042434   ;;  %vm1110_vm11 = vcmask 1043459  }
 0x211   : > { %v1083_v21 = vadd.f32 %v1082_v1, %v1081_v16  ;;  %v1107_v23 = vsel %vm1106_vm9, %v1055_v12, %v1048_v6  ;;  %vm1112_vm12 = vcmask 1044484   ;;  %v1090_v22 = vadd.f32 %v1089_v19, %v1088_v47 }
 0x212   : > { %v1109_v5 = vsel %vm1108_vm10, %v1062_v13, %v1107_v23  ;;  %vm1114_vm13 = vcmask 1045509   ;;  %v1097_v57 = vadd.f32 %v1096_v18, %v1095_v52  ;;  %vm1116_vm14 = vcmask 1046534  }
 0x213   : > { %v1111_v24 = vsel %vm1110_vm11, %v1069_v17, %v1109_v5  ;;  %vm1118_vm15 = vcmask 1047559  }
 0x214   : > { %v1113_v25 = vsel %vm1112_vm12, %v1076_v20, %v1111_v24 }
 0x215   : > { %v1115_v27 = vsel %vm1114_vm13, %v1083_v21, %v1113_v25 }
 0x216   : > { %v1117_v28 = vsel %vm1116_vm14, %v1090_v22, %v1115_v27 }
 0x217   : > { %v1119_v29 = vsel %vm1118_vm15, %v1097_v57, %v1117_v28 }
 0x218   : > { %v1121_v30 = vadd.f32 %v1119_v29, %v1041_v26 }
 0x21a   : > { %1122 = vst [vmem:[#allocation3] sm:$0xff] %v1121_v30 }
 0x21b PF: > { %1125 = sbr.rel (%p1455_p3) target bundleno = 842 (0x34a), region = 108  ;;  %s2721_s9 = sld [smem:[#allocation47_spill]] (!%p1455_p3) }
 0x21c   : > { %s2722_s25 = sld [smem:[#allocation48_spill]] (!%p1455_p3) }
 0x220   : > { %v1161_v31 = vld [vmem:[#allocation12 + $0x78] sm:$0xff]  ;;  %v1160_v33 = vld [vmem:[#allocation12 + $0x70] sm:$0xff]  ;;  %v1159_v35 = vld [vmem:[#allocation12 + $0x68] sm:$0xff] }
 0x221   : > { %v1145_v32 = vld [vmem:[#allocation10 + $0x78] sm:$0xff]  ;;  %1162 = vmatpush.msra.mxu0 %v1161_v31  ;;  %v1144_v34 = vld [vmem:[#allocation10 + $0x70] sm:$0xff]  ;;  %v1143_v40 = vld [vmem:[#allocation10 + $0x68] sm:$0xff] }
 0x222   : > { %1182 = vmatpush.msra.mxu1 %v1145_v32  ;;  %v1158_v36 = vld [vmem:[#allocation12 + $0x60] sm:$0xff]  ;;  %v1157_v37 = vld [vmem:[#allocation12 + $0x58] sm:$0xff]  ;;  %v1156_v41 = vld [vmem:[#allocation12 + $0x50] sm:$0xff] }
 0x223   : > { %1163 = vmatpush.msra.mxu0 %v1160_v33  ;;  %v1142_v38 = vld [vmem:[#allocation10 + $0x60] sm:$0xff]  ;;  %v1141_v39 = vld [vmem:[#allocation10 + $0x58] sm:$0xff]  ;;  %v1140_v48 = vld [vmem:[#allocation10 + $0x50] sm:$0xff] }
 0x224   : > { %1183 = vmatpush.msra.mxu1 %v1144_v34  ;;  %v1155_v49 = vld [vmem:[#allocation12 + $0x48] sm:$0xff]  ;;  %v1222_v50 = vld [vmem:[#allocation13 + $0x78] sm:$0xff]  ;;  %v1221_v51 = vld [vmem:[#allocation13 + $0x70] sm:$0xff] }
 0x225   : > { %1164 = vmatpush.msra.mxu0 %v1159_v35  ;;  %v1139_v46 = vld [vmem:[#allocation10 + $0x48] sm:$0xff]  ;;  %v1154_v2 = vld [vmem:[#allocation12 + $0x40] sm:$0xff]  ;;  %1227 = vmatpush.msra.mxu2 %v1222_v50  ;;  %v1153_v4 = vld [vmem:[#allocation12 + $0x38] sm:$0xff] }
 0x226   : > { %1184 = vmatpush.msra.mxu1 %v1143_v40  ;;  %v1138_v42 = vld [vmem:[#allocation10 + $0x40] sm:$0xff]  ;;  %v1220_v60 = vld [vmem:[#allocation13 + $0x68] sm:$0xff]  ;;  %v1137_v54 = vld [vmem:[#allocation10 + $0x38] sm:$0xff] }
 0x227   : > { %1165 = vmatpush.msra.mxu0 %v1158_v36  ;;  %1228 = vmatpush.msra.mxu2 %v1221_v51  ;;  %v1219_v44 = vld [vmem:[#allocation13 + $0x60] sm:$0xff]  ;;  %v1152_v43 = vld [vmem:[#allocation12 + $0x30] sm:$0xff]  ;;  %v1218_v61 = vld [vmem:[#allocation13 + $0x58] sm:$0xff] }
 0x228   : > { %1185 = vmatpush.msra.mxu1 %v1142_v38  ;;  %v1136_v56 = vld [vmem:[#allocation10 + $0x30] sm:$0xff]  ;;  %v1151_v8 = vld [vmem:[#allocation12 + $0x28] sm:$0xff]  ;;  %v1150_v55 = vld [vmem:[#allocation12 + $0x20] sm:$0xff] }
 0x229   : > { %1166 = vmatpush.msra.mxu0 %v1157_v37  ;;  %1229 = vmatpush.msra.mxu2 %v1220_v60  ;;  %v1135_v62 = vld [vmem:[#allocation10 + $0x28] sm:$0xff]  ;;  %v1217_v63 = vld [vmem:[#allocation13 + $0x50] sm:$0xff]  ;;  %v1134_v45 = vld [vmem:[#allocation10 + $0x20] sm:$0xff] }
 0x22a   : > { %1186 = vmatpush.msra.mxu1 %v1141_v39  ;;  %v1216_v9 = vld [vmem:[#allocation13 + $0x48] sm:$0xff]  ;;  %v1149_v3 = vld [vmem:[#allocation12 + $0x18] sm:$0xff]  ;;  %v1215_v11 = vld [vmem:[#allocation13 + $0x40] sm:$0xff] }
 0x22b   : > { %1167 = vmatpush.msra.mxu0 %v1156_v41  ;;  %1230 = vmatpush.msra.mxu2 %v1219_v44  ;;  %v1133_v10 = vld [vmem:[#allocation10 + $0x18] sm:$0xff]  ;;  %v1148_v14 = vld [vmem:[#allocation12 + $0x10] sm:$0xff]  ;;  %v1147_v53 = vld [vmem:[#allocation12 + $0x8] sm:$0xff] }
 0x22c   : > { %1187 = vmatpush.msra.mxu1 %v1140_v48  ;;  %v1132_v15 = vld [vmem:[#allocation10 + $0x10] sm:$0xff]  ;;  %v1128_v16 = vld [vmem:[#allocation3] sm:$0xff]  ;;  %v1131_v58 = vld [vmem:[#allocation10 + $0x8] sm:$0xff] }
 0x22d   : > { %1168 = vmatpush.msra.mxu0 %v1155_v49  ;;  %1231 = vmatpush.msra.mxu2 %v1218_v61  ;;  %v1126_v47 = vld [vmem:[#allocation2] sm:$0xff]  ;;  %v1214_v52 = vld [vmem:[#allocation13 + $0x38] sm:$0xff]  ;;  %v1146_v59 = vld [vmem:[#allocation12] sm:$0xff]  ;;  %v1129_v1 = vmul.f32 0.025, %v1128_v16 }
 0x22e   : > { %1188 = vmatpush.msra.mxu1 %v1139_v46  ;;  %v1213_v7 = vld [vmem:[#allocation13 + $0x30] sm:$0xff]  ;;  %v1130_v0 = vld [vmem:[#allocation10] sm:$0xff]  ;;  %v1127_v6 = vmul.f32 0.035714287, %v1126_v47  ;;  %v1212_v12 = vld [vmem:[#allocation13 + $0x28] sm:$0xff] }
 0x22f   : > { %1169 = vmatpush.msra.mxu0 %v1154_v2  ;;  %1232 = vmatpush.msra.mxu2 %v1217_v63  ;;  %v1211_v13 = vld [vmem:[#allocation13 + $0x20] sm:$0xff]  ;;  %v1210_v19 = vld [vmem:[#allocation13 + $0x18] sm:$0xff]  ;;  %v1209_v17 = vld [vmem:[#allocation13 + $0x10] sm:$0xff] }
 0x230   : > { %1189 = vmatpush.msra.mxu1 %v1138_v42  ;;  %v1208_v18 = vld [vmem:[#allocation13 + $0x8] sm:$0xff]  ;;  %v1207_v20 = vld [vmem:[#allocation13] sm:$0xff]  ;;  %v1691_v21 = vld [vmem:[%s2721_s9] ss:$0 sm:$0xff] }
 0x231   : > { %1170 = vmatpush.msra.mxu0 %v1153_v4  ;;  %1233 = vmatpush.msra.mxu2 %v1216_v9  ;;  %v1692_v24 = vld [vmem:[%s2722_s25] ss:$0 sm:$0xff] }
 0x232   : > { %1190 = vmatpush.msra.mxu1 %v1137_v54 }
 0x233   : > { %1171 = vmatpush.msra.mxu0 %v1152_v43  ;;  %1234 = vmatpush.msra.mxu2 %v1215_v11 }
 0x234   : > { %1191 = vmatpush.msra.mxu1 %v1136_v56 }
 0x235   : > { %1172 = vmatpush.msra.mxu0 %v1151_v8  ;;  %1235 = vmatpush.msra.mxu2 %v1214_v52 }
 0x236   : > { %1192 = vmatpush.msra.mxu1 %v1135_v62 }
 0x237   : > { %1173 = vmatpush.msra.mxu0 %v1150_v55  ;;  %1236 = vmatpush.msra.mxu2 %v1213_v7 }
 0x238   : > { %1193 = vmatpush.msra.mxu1 %v1134_v45 }
 0x239   : > { %1174 = vmatpush.msra.mxu0 %v1149_v3  ;;  %1237 = vmatpush.msra.mxu2 %v1212_v12 }
 0x23a   : > { %1194 = vmatpush.msra.mxu1 %v1133_v10 }
 0x23b   : > { %1175 = vmatpush.msra.mxu0 %v1148_v14  ;;  %1238 = vmatpush.msra.mxu2 %v1211_v13 }
 0x23c   : > { %1195 = vmatpush.msra.mxu1 %v1132_v15 }
 0x23d   : > { %1176 = vmatpush.msra.mxu0 %v1147_v53  ;;  %1239 = vmatpush.msra.mxu2 %v1210_v19 }
 0x23e   : > { %1196 = vmatpush.msra.mxu1 %v1131_v58 }
 0x23f   : > { %1177 = vmatpush.msra.mxu0 %v1146_v59  ;;  %1240 = vmatpush.msra.mxu2 %v1209_v17 }
 0x240   : > { %1197 = vmatpush.msra.mxu1 %v1130_v0  ;;  %1178 = vmatmul.f32.vlgmr.msra.gmra.mxu0 %v1129_v1 }
 0x241   : > { %1198 = vmatmul.f32.vlgmr.msra.gmra.mxu1 %v1127_v6  ;;  %1241 = vmatpush.msra.mxu2 %v1208_v18 }
 0x243   : > { %1242 = vmatpush.msra.mxu2 %v1207_v20 }
 0x2bd   : > { %v1179_v23 = vpop.f32.mrf.mxu0 }
 0x2be   : > { %v1199_v22 = vpop.f32.mrf.mxu1 }
 0x2bf   : > { %v1200_v5 = vadd.f32 %v1199_v22, %v1179_v23 }
 0x2c1   : > { %v1206_v57 = vadd.f32 %v1691_v21, %v1200_v5 }
 0x2c3   : > { %1243 = vmatmul.f32.vlgmr.msra.gmra.mxu2 %v1206_v57 }
 0x346   : > { %v1244_v25 = vpop.f32.mrf.mxu2 }
 0x347   : > { %v1245_v26 = vadd.f32 %v1692_v24, %v1244_v25 }
 0x349   : > { %1247 = vst [vmem:[%s558_s8] sm:$0xff] %v1245_v26 }
 0x34a PF: > { %s2723_s11 = sld [smem:[#allocation31_spill]]  ;;  %s1261_s23 = sshll.u32 %s558_s8, 4  ;;  %s1262_s23 = int_to_ptr.vmem [resolvable:$true] %s1261_s23 }
 0x34b   : > { %s2726_s30 = sld [smem:[#allocation49_spill]]  ;;  %s1249_s18 = scalar_lea.sflag [#allocation6], %s556_s3 }
 0x350   : > { %s1460_s12 = sshll.u32 %s2723_s11, 3 }
 0x351   : > { %s2727_s26 = smov %s2726_s30  ;;  %s1259_s13 = scalar_lea.hbm %s2726_s30, %s1460_s12 }
 0x352   : > { %s1263_s5 = sshll.u32 %s1259_s13, 4  ;;  %s1833_s9 = scalar_lea.hbm %s2727_s26, 16  ;;  %s1264_s5 = int_to_ptr.hbm [resolvable:$true] %s1263_s5 }
 0x353   : > { %s1827_s24 = sshra.s32 %s1264_s5, 4  ;;  %s1828_s24 = int_to_ptr.hbm [resolvable:$true] %s1827_s24 }
 0x354   : > { %s1829_s0 = scalar_lea.hbm %s1828_s24, 8  ;;  %p1834_p11 = scmp.lt.s32.totalorder %s1828_s24, %s2727_s26 }
 0x355   : > { %p1830_p6 = scmp.ne.s32.totalorder %s1828_s24, %s1829_s0  ;;  %p1835_p1 = scmp.lt.s32.totalorder %s1833_s9, %s1829_s0 }
 0x357   : > { %p1831_p7 = pnand %p1830_p6, %p2191_p10  ;;  %p1836_p5 = por %p1835_p1, %p1834_p11 }
 0x359   : > { %p1832_p9 = pneg %p1831_p7 }
 0x35b   : > { %p1837_p2 = pnand %p1836_p5, %p1832_p9 }
 0x35d   : > { %1840 = shalt.err (!%p1837_p2)
}
 0x35e   : > { %1532 = dma.vmem_to_hbm [thread:$0]  (%p2191_p10), %s1262_s23, 128, %s1264_s5, %s1249_s18  }
 0x35f PF: > { %s2728_s3 = sld [smem:[#allocation26_spill]]  ;;  %p1559_p13 = scmp.ge.s32.totalorder %s1975_s22, 2 }
 0x361   : > { %p1548_p8 = pnand %p1559_p13, %p2196_p12 }
 0x363   : > { %p1549_p0 = pneg %p1548_p8 }
 0x365   : > { %s1275_s8 = sand.u32 1, %s2728_s3  }
 0x366   : > { %s1276_s25 = scalar_lea.sflag [#allocation6], %s1275_s8 }
 0x367   : > { %1918 = dma.done.wait (%p1549_p0), %s1276_s25, 128  }
 0x368   : > { %1920 = vsyncadd (%p1549_p0), %s1276_s25, 4294967168  ;;  %s30_s22 = sadd.s32 1, %s1975_s22   ;;  %s2731_s30 = sld [smem:[#allocation27_spill]] }
 0x369   : > { %p2585_p3 = scmp.ge.s32.totalorder %s30_s22, 8   ;;  %s2732_s10 = sld [smem:[#allocation28_spill]] }
 0x36a   : > { %s2733_s15 = sld [smem:[#allocation39_spill]]  ;;  %s2741_s13 = smov %s1943_s14 }
 0x36b   : > { %s2734_s12 = sld [smem:[#allocation29_spill]]  ;;  %s2746_s18 = smov %s1967_s20 }
 0x36c   : > { %s2735_s6 = sld [smem:[#allocation37_spill]]  ;;  %s2747_s19 = smov %s1971_s21 }
 0x36d   : > { %s2736_s4 = sld [smem:[#allocation36_spill]] }
 0x36e   : > { %s2737_s23 = sld [smem:[#allocation33_spill]] }
 0x36f   : > { %s2738_s5 = sld [smem:[#allocation34_spill]] }
 0x370   : > { %s2740_s11 = smov %s2733_s15  ;;  %s2743_s15 = smov %s1951_s16 }
 0x371   : > { %s2744_s16 = smov %s1955_s17  ;;  %29 = sbr.rel (!%p2585_p3) target bundleno = 23 (0x17), region = 168 }
 0x372   : > { %s2742_s14 = smov %s2735_s6 }
 0x373   : > { %s2745_s17 = smov %s2736_s4 }
 0x374   : > { %s2748_s20 = smov %s2737_s23 }
 0x375   : > { %s2749_s21 = smov %s2738_s5 }
 0x376   :  { %1282 = vsyncpa [#allocation5], 1 }
 0x377   :  { %1284 = vsyncpa [#allocation5 + $0x1], 1 }
 0x378   :  { %1285 = vsyncpa [#allocation8], 1 }
 0x379   :  { %1287 = vsyncpa [#allocation8 + $0x1], 1 }
 0x37a   :  { %1288 = vsyncpa [#allocation11], 1 }
 0x37b   :  { %1289 = vsyncpa [#allocation14], 1 }
 0x37c   :  { %1290 = vsyncpa [#allocation6], 1 }
 0x37d   :  { %1292 = vsyncpa [#allocation6 + $0x1], 1 }

// kernel: tpu_custom_call.1
= control target key start
LH: loop header
LB: loop body
LE: loop exit
PB: predicated region body
PF: predicated region fallthrough
CT: control target
= control target key end

     0   :  { %s2632_s0 = inlined_call_operand.hbm [shape: f32[12,28,128], index: 0, kind: input, shape index: {}]   ;;  %s2633_s1 = inlined_call_operand.hbm [shape: f32[12,40,128], index: 1, kind: input, shape index: {}]   ;;  %s2634_s2 = inlined_call_operand.hbm [shape: f32[128,128], index: 2, kind: input, shape index: {}]   ;;  %s2635_s3 = inlined_call_operand.vmem [shape: f32[1,128], index: 3, kind: input, shape index: {}]   ;;  %s2636_s4 = inlined_call_operand.hbm [shape: f32[128,128], index: 4, kind: input, shape index: {}]   ;;  %s2637_s5 = inlined_call_operand.hbm [shape: f32[128,128], index: 5, kind: input, shape index: {}]   ;;  %s2638_s6 = inlined_call_operand.vmem [shape: f32[1,128], index: 6, kind: input, shape index: {}]   ;;  %s2639_s7 = inlined_call_operand.hbm [shape: f32[128,128], index: 7, kind: input, shape index: {}]   ;;  %s2640_s8 = inlined_call_operand.vmem [shape: f32[1,128], index: 8, kind: input, shape index: {}]   ;;  %s2641_s9 = inlined_call_operand.hbm [shape: f32[16,128], index: 9, kind: output, shape index: {}]  }
   0x1   :  { %2664 = sst [smem:[#allocation42_spill]] %s2632_s0 }
   0x2   :  { %2665 = sst [smem:[#allocation43_spill]] %s2634_s2 }
   0x3   :  { %2666 = sst [smem:[#allocation44_spill]] %s2635_s3 }
   0x4   :  { %2667 = sst [smem:[#allocation45_spill]] %s2636_s4 }
   0x5   :  { %2668 = sst [smem:[#allocation46_spill]] %s2637_s5 }
   0x6   :  { %2669 = sst [smem:[#allocation47_spill]] %s2638_s6 }
   0x7   :  { %2670 = sst [smem:[#allocation48_spill]] %s2640_s8 }
   0x8   :  { %2671 = sst [smem:[#allocation49_spill]] %s2641_s9 }
   0x9   :  { %14 = vsyncpa [#allocation5], 0 }
   0xa   :  { %16 = vsyncpa [#allocation5 + $0x1], 0 }
   0xb   :  { %17 = vsyncpa [#allocation8], 0 }
   0xc   :  { %19 = vsyncpa [#allocation8 + $0x1], 0 }
   0xd   :  { %20 = vsyncpa [#allocation11], 0 }
   0xe   :  { %21 = vsyncpa [#allocation14], 0 }
   0xf   :  { %22 = vsyncpa [#allocation6], 0 }
  0x10   :  { %24 = vsyncpa [#allocation6 + $0x1], 0  ;;  %s2045_s30 = smov 0   ;;  %s2047_s10 = smov 0  }
  0x11   :  { %s2049_s11 = smov 0   ;;  %s2051_s12 = smov 0  }
  0x12   :  { %s2053_s13 = smov 0   ;;  %s2055_s14 = smov 0  }
  0x13   :  { %s2057_s15 = smov 0   ;;  %s2059_s16 = smov 0  }
  0x14   :  { %s2061_s17 = smov 0   ;;  %s2063_s18 = smov 0  }
  0x15   :  { %s2065_s19 = smov 0   ;;  %s2067_s20 = smov 0  }
  0x16   :  { %s2069_s21 = smov 0   ;;  %s2071_s22 = smov 0  }
  0x17 LB: > { %2672 = sst [smem:[#allocation26_spill]] %s1923_s30  ;;  %s2116_s23 = sadd.s32 4294967295, %s1975_s22   ;;  %s1975_s22 = sphi %s2071_s22, %s30_s22   ;;  %s1971_s21 = sphi %s2069_s21, %s2749_s21   ;;  %s1967_s20 = sphi %s2067_s20, %s2748_s20   ;;  %s1963_s19 = sphi %s2065_s19, %s2747_s19   ;;  %s1959_s18 = sphi %s2063_s18, %s2746_s18   ;;  %s1955_s17 = sphi %s2061_s17, %s2745_s17   ;;  %s1951_s16 = sphi %s2059_s16, %s2744_s16   ;;  %s1947_s15 = sphi %s2057_s15, %s2743_s15   ;;  %s1943_s14 = sphi %s2055_s14, %s2742_s14   ;;  %s1939_s13 = sphi %s2053_s13, %s2741_s13   ;;  %s1935_s12 = sphi %s2051_s12, %s2734_s12   ;;  %s1931_s11 = sphi %s2049_s11, %s2740_s11   ;;  %s1927_s10 = sphi %s2047_s10, %s2732_s10   ;;  %s1923_s30 = sphi %s2045_s30, %s2731_s30  }
  0x18   : > { %2673 = sst [smem:[#allocation27_spill]] %s1927_s10  ;;  %s39_s25 = sadd.s32 1, %s1967_s20 }
  0x19   : > { %2674 = sst [smem:[#allocation28_spill]] %s1931_s11  ;;  %s42_s26 = sadd.s32 1, %s1971_s21 }
  0x1a   : > { %2675 = sst [smem:[#allocation29_spill]] %s1939_s13  ;;  %p40_p0 = scmp.ge.s32.totalorder %s39_s25, 3 }
  0x1b   : > { %2676 = sst [smem:[#allocation30_spill]] %s1959_s18  ;;  %p46_p1 = scmp.lt.s32.totalorder %s1967_s20, 1 }
  0x1c   : > { %2677 = sst [smem:[#allocation31_spill]] %s1963_s19  ;;  %s55_s27 = sadd.s32 1, %s1955_s17 }
  0x1d   : > { %2678 = sst [smem:[#allocation32_spill]] %s2116_s23  ;;  %p62_p2 = scmp.ne.s32.totalorder %s1955_s17, %s1951_s16 }
  0x1e   : > { %s2751_s25 = smov (%p40_p0, %s39_s25), 0  ;;  %s2753_s26 = smov (!%p40_p0, %s42_s26), %s1971_s21 }
  0x1f   : > { %2679 = sst [smem:[#allocation33_spill]] %s2751_s25  ;;  %p44_p3 = scmp.ge.s32.totalorder %s2753_s26, 2 }
  0x20   : > { %s2129_s28 = scalar_select %p46_p1, %s1967_s20, 1 }
  0x21   : > { %p48_p4 = scmp.lt.s32.totalorder %s2751_s25, 1  ;;  %p63_p5 = scmp.eq.s32.totalorder %s1975_s22, 0 }
  0x22   : > { %p68_p6 = scmp.ne.s32.totalorder %s1951_s16, %s1947_s15  ;;  %s2755_s26 = smov (%p44_p3, %s2753_s26), 0 }
  0x23   : > { %2680 = sst [smem:[#allocation34_spill]] %s2755_s26  ;;  %s50_s24 = ssub.s32 %s1971_s21, %s2755_s26 }
  0x24   : > { %s49_s29 = scalar_select %p48_p4, %s2751_s25, 1 }
  0x25   : > { %p2142_p7 = por %p63_p5, %p62_p2  ;;  %p69_p8 = scmp.eq.s32.totalorder %s2116_s23, 0 }
  0x26   : > { %s51_s19 = ssub.s32 %s2129_s28, %s49_s29  ;;  %s79_s8 = ssub.s32 %s1967_s20, %s2751_s25 }
  0x27   : > { %s52_s15 = sor.u32 %s51_s19, %s50_s24  ;;  %p2152_p10 = por %p69_p8, %p68_p6 }
  0x28   : > { %p53_p9 = scmp.eq.s32.totalorder %s52_s15, 0  ;;  %s80_s6 = sor.u32 %s79_s8, %s50_s24 }
  0x29   : > { %s2682_s26 = scalar_select %p2152_p10, 1, 0 }
  0x2a   : > { %s83_s29 = sadd.s32 1, %s1943_s14  ;;  %p81_p11 = scmp.eq.s32.totalorder %s80_s6, 0 }
  0x2b   : > { %2683 = sst [smem:[#allocation35_spill]] %s2682_s26  ;;  %p90_p12 = scmp.ne.s32.totalorder %s1943_s14, %s1939_s13 }
  0x2c   : > { %s2158_s3 = scalar_select %p53_p9, %s1955_s17, %s55_s27  }
  0x2d   : > { %p96_p13 = scmp.ne.s32.totalorder %s1939_s13, %s1935_s12  ;;  %p254_p0 = scmp.eq.s32.totalorder %s50_s24, 0 }
  0x2e   : > { %2684 = sst [smem:[#allocation36_spill]] %s2158_s3  ;;  %p2169_p1 = por %p90_p12, %p63_p5 }
  0x2f   : > { %s2165_s19 = scalar_select %p81_p11, %s1943_s14, %s83_s29  }
  0x30   : > { %p2175_p2 = por %p96_p13, %p69_p8  ;;  %s256_s27 = sadd.s32 1, %s1931_s11 }
  0x31   : > { %2685 = sst [smem:[#allocation37_spill]] %s2165_s19  ;;  %p266_p3 = scmp.ne.s32.totalorder %s1931_s11, %s1927_s10 }
  0x32   : > { %s2687_s8 = scalar_select %p2175_p2, 1, 0 }
  0x33   : > { %s2183_s25 = scalar_select %p254_p0, %s1931_s11, %s256_s27  }
  0x34   : > { %2688 = sst [smem:[#allocation38_spill]] %s2687_s8  ;;  %p267_p4 = scmp.eq.s32.totalorder %s2116_s23, 5 }
  0x35   : > { %2689 = sst [smem:[#allocation39_spill]] %s2183_s25  ;;  %p272_p6 = scmp.ne.s32.totalorder %s1927_s10, %s1923_s30 }
  0x36   : > { %s2690_s6 = sadd.s32 4294967294, %s1975_s22   ;;  %p1414_p11 = scmp.ge.s32.totalorder %s1975_s22, 1 }
  0x37   : > { %p273_p9 = scmp.eq.s32.totalorder %s2690_s6, 5  ;;  %p2191_p10 = por %p267_p4, %p266_p3 }
  0x38   : > { %p280_p5 = scmp.lt.s32.totalorder %s1975_s22, 7  ;;  %s2696_s4 = sld [smem:[#allocation45_spill]] }
  0x39   : > { %s2691_s12 = scalar_select %p2191_p10, 1, 0 }
  0x3a   : > { %p2196_p12 = por %p273_p9, %p272_p6  ;;  %p2200_p13 = pnand %p1414_p11, %p280_p5 }
  0x3b   : > { %2692 = sst [smem:[#allocation40_spill]] %s2691_s12  ;;  %s1977_s25 = smov [#allocation10]  }
  0x3c   : > { %s2693_s24 = scalar_select %p2196_p12, 1, 0 }
  0x3d   : > { %p1534_p0 = pneg %p2200_p13  ;;  %s310_s11 = sshll.u32 %s1977_s25, 4  ;;  %s311_s11 = int_to_ptr.vmem [resolvable:$true] %s310_s11 }
  0x3e   : > { %2694 = sst [smem:[#allocation41_spill]] %s2693_s24  ;;  %s308_s19 = sshll.u32 %s2696_s4, 4  ;;  %s309_s19 = int_to_ptr.hbm [resolvable:$true] %s308_s19 }
  0x3f   : > { %p2211_p3 = pnand %p1534_p0, %p69_p8  ;;  %s1978_s24 = smov 128  }
  0x40   : > { %s1979_s30 = smov 8   ;;  %s2698_s2 = sld [smem:[#allocation43_spill]] }
  0x41   : > { %1540 = dma.hbm_to_vmem [thread:$0]  (!%p2211_p3), %s309_s19, 2048, %s311_s11, [#allocation11], %s1978_s24, %s1978_s24, %s1979_s30  }
  0x42   : > { %s1980_s12 = smov [#allocation9]   ;;  %s2699_s5 = sld [smem:[#allocation46_spill]] }
  0x43   : > { %s293_s18 = sshll.u32 %s1980_s12, 4  ;;  %s339_s11 = sshll.u32 %s2639_s7, 4  ;;  %s294_s18 = int_to_ptr.vmem [resolvable:$true] %s293_s18  ;;  %s340_s11 = int_to_ptr.hbm [resolvable:$true] %s339_s11 }
  0x44   : > { %s1981_s19 = smov [#allocation12]   ;;  %s1982_s3 = smov [#allocation13]  }
  0x45   : > { %s324_s26 = sshll.u32 %s1981_s19, 4  ;;  %s341_s12 = sshll.u32 %s1982_s3, 4  ;;  %s325_s26 = int_to_ptr.vmem [resolvable:$true] %s324_s26  ;;  %s342_s12 = int_to_ptr.vmem [resolvable:$true] %s341_s12 }
  0x46   : > { %s291_s4 = sshll.u32 %s2698_s2, 4  ;;  %p1419_p4 = scmp.ge.s32.totalorder %s1975_s22, 6  ;;  %s292_s4 = int_to_ptr.hbm [resolvable:$true] %s291_s4 }
  0x47   : > { %1537 = dma.hbm_to_vmem [thread:$0]  (!%p2211_p3), %s292_s4, 2048, %s294_s18, [#allocation8], %s1978_s24, %s1978_s24, %s1979_s30  }
  0x48   : > { %s322_s13 = sshll.u32 %s2699_s5, 4  ;;  %354 = sbr.rel (%p1419_p4) target bundleno = 134 (0x86), region = 44  ;;  %s323_s13 = int_to_ptr.hbm [resolvable:$true] %s322_s13 }
  0x49   : > { %1543 = dma.hbm_to_vmem [thread:$0]  (!%p2211_p3), %s323_s13, 2048, %s325_s26, [#allocation11], %s1978_s24, %s1978_s24, %s1979_s30  }
  0x4a   : > { %1546 = dma.hbm_to_vmem [thread:$0]  (!%p2211_p3), %s340_s11, 2048, %s342_s12, [#allocation14], %s1978_s24, %s1978_s24, %s1979_s30  }
  0x4d   : > { %357 = sbr.rel (!%p2142_p7) target bundleno = 104 (0x68), region = 48 }
  0x52   : > { %s358_s4 = sand.u32 1, %s1955_s17   ;;  %s1421_s10 = sshll.u32 %s1971_s21, 3 }
  0x53   : > { %s1420_s18 = sshll.u32 %s358_s4, 7  ;;  %s1422_s23 = sshll.u32 %s2129_s28, 1 }
  0x54   : > { %s367_s8 = ssub.s32 12, %s1421_s10  ;;  %s2241_s24 = scalar_lea.sflag [#allocation5], %s358_s4 }
  0x55   : > { %p368_p6 = scmp.lt.s32.totalorder %s367_s8, 8  ;;  %s362_s9 = scalar_lea.vmem [#allocation4], %s1420_s18 }
  0x57   : > { %s2757_s8 = smov (!%p368_p6, %s367_s8), 8 }
  0x58   : > { %s1463_s13 = sshll.u32 %s2757_s8, 4 }
  0x59   : > { %s372_s30 = ssub.s32 128, %s1463_s13 }
  0x5a   : > { %s373_s26 = sshll.u32 %s372_s30, 4 }
  0x5b   : > { %374 = vsyncadd %s2241_s24, %s373_s26  ;;  %p2244_p7 = scmp.ne.s32.totalorder %s1463_s13, 0  ;;  %s1464_s28 = sshll.u32 %s1971_s21, 5 }
  0x5c   : > { %s377_s27 = sadd.s32 %s1464_s28, %s1422_s23  ;;  %s385_s25 = sld [smem:[#allocation0]]  }
  0x5d   : > { %s1427_s11 = sshll.u32 %s377_s27, 3  ;;  %s395_s19 = sshll.u32 %s362_s9, 4  ;;  %s396_s19 = int_to_ptr.vmem [resolvable:$true] %s395_s19 }
  0x5e   : > { %s2701_s0 = sld [smem:[#allocation42_spill]]  ;;  %s1431_s30 = sshll.u32 %s2757_s8, 8 }
  0x5f   : > { %s1983_s18 = smov 512   ;;  %s1984_s26 = smov 256  }
  0x60   : > { %402 = sst [smem:[#allocation17]] %s1983_s18  ;;  %s1985_s23 = smov 2  }
  0x61   : > { %404 = sst [smem:[#allocation17 + $0x1]] %s1984_s26  ;;  %s1986_s28 = smov 128  }
  0x62   : > { %s1429_s13 = sshll.u32 %s385_s25, 26  ;;  %406 = sst [smem:[#allocation17 + $0x2]] %s1985_s23 }
  0x63   : > { %s1430_s2 = sadd.s32 134217728, %s1429_s13  ;;  %408 = sst [smem:[#allocation17 + $0x3]] %s1986_s28 }
  0x64   : > { %s379_s10 = scalar_lea.hbm %s2701_s0, %s1427_s11  ;;  %410 = sst [smem:[#allocation17 + $0x4]] %s1986_s28 }
  0x65   : > { %s393_s4 = sshll.u32 %s379_s10, 4  ;;  %s1987_s9 = smov 8   ;;  %s394_s4 = int_to_ptr.hbm [resolvable:$true] %s393_s4 }
  0x66   : > { %412 = sst [smem:[#allocation17 + $0x5]] %s1987_s9  ;;  %s1988_s27 = smov [#allocation16]  }
  0x67   : > { %414 = dma.general (%p2244_p7), %s394_s4, %s1431_s30, %s396_s19, %s2241_s24, %s1988_s27, [#allocation17], %s1430_s2, 0  }
  0x68 PF: > { %417 = sbr.rel (!%p2169_p1) target bundleno = 134 (0x86), region = 52 }
  0x6d   : > { %s418_s8 = sand.u32 1, %s1975_s22   ;;  %s420_s25 = sand.u32 1, %s1943_s14  }
  0x6e   : > { %s1432_s11 = sshll.u32 %s420_s25, 7  ;;  %s1433_s3 = sshll.u32 %s1971_s21, 3 }
  0x6f   : > { %s1434_s12 = sshll.u32 %s1967_s20, 1  ;;  %s425_s10 = ssub.s32 12, %s1433_s3 }
  0x70   : > { %p426_p9 = scmp.lt.s32.totalorder %s425_s10, 8  ;;  %s429_s18 = ssub.s32 5, %s1434_s12 }
  0x71   : > { %p430_p11 = scmp.lt.s32.totalorder %s429_s18, 2  ;;  %s2265_s19 = scalar_lea.sflag [#allocation8], %s418_s8 }
  0x72   : > { %s2759_s10 = smov (!%p426_p9, %s425_s10), 8  ;;  %s422_s4 = scalar_lea.vmem [#allocation7], %s1432_s11 }
  0x73   : > { %s2761_s18 = smov (!%p430_p11, %s429_s18), 2  ;;  %s1435_s2 = sshll.u32 %s2759_s10, 3 }
  0x74   : > { %s2262_s24 = smul.u32 %s1435_s2, %s2761_s18 }
  0x76   : > { %s433_s15 = ssub.s32 128, %s2262_s24 }
  0x77   : > { %s434_s6 = sshll.u32 %s433_s15, 4 }
  0x78   : > { %435 = vsyncadd %s2265_s19, %s434_s6  ;;  %p1436_p1 = scmp.ne.s32.totalorder %s2262_s24, 0  ;;  %s1513_s30 = smul.u32 40, %s1971_s21 }
  0x79   : > { %s1439_s13 = sshll.u32 %s2761_s18, 3  ;;  %s447_s26 = sld [smem:[#allocation0]]  }
  0x7a   : > { %s438_s23 = sadd.s32 %s1513_s30, %s1434_s12  ;;  %s442_s28 = smul.u32 %s1439_s13, %s2759_s10 }
  0x7b   : > { %s1438_s9 = sshll.u32 %s438_s23, 3  ;;  %s457_s27 = sshll.u32 %s422_s4, 4  ;;  %s458_s27 = int_to_ptr.vmem [resolvable:$true] %s457_s27 }
  0x7c   : > { %s440_s2 = scalar_lea.hbm %s2633_s1, %s1438_s9  ;;  %s459_s11 = sshll.u32 %s442_s28, 4 }
  0x7d   : > { %s455_s8 = sshll.u32 %s440_s2, 4  ;;  %s1989_s6 = smov 640   ;;  %s456_s8 = int_to_ptr.hbm [resolvable:$true] %s455_s8 }
  0x7e   : > { %464 = sst [smem:[#allocation19]] %s1989_s6  ;;  %s1990_s5 = smov 256  }
  0x7f   : > { %s1440_s15 = sshll.u32 %s447_s26, 26  ;;  %466 = sst [smem:[#allocation19 + $0x1]] %s1990_s5 }
  0x80   : > { %s1441_s0 = sadd.s32 134217728, %s1440_s15  ;;  %468 = sst [smem:[#allocation19 + $0x2]] %s2761_s18 }
  0x81   : > { %s1991_s12 = smov 128   ;;  %s1992_s10 = smov 8  }
  0x82   : > { %470 = sst [smem:[#allocation19 + $0x3]] %s1991_s12  ;;  %s1993_s4 = smov [#allocation18]  }
  0x83   : > { %472 = sst [smem:[#allocation19 + $0x4]] %s1991_s12 }
  0x84   : > { %474 = sst [smem:[#allocation19 + $0x5]] %s1992_s10 }
  0x85   : > { %476 = dma.general (%p1436_p1), %s456_s8, %s459_s11, %s458_s27, %s2265_s19, %s1993_s4, [#allocation19], %s1441_s0, 0  }
  0x86 PF: > { %482 = sbr.rel (%p2200_p13) target bundleno = 863 (0x35f), region = 56  ;;  %s2702_s30 = sld [smem:[#allocation35_spill]] (!%p2200_p13) }
  0x87   : > { %s484_s13 = sand.u32 (!%p2200_p13), 1, %s1951_s16  }
  0x88   : > { %s1443_s26 = sshll.u32 (!%p2200_p13), %s484_s13, 7  ;;  %s485_s23 = scalar_lea.sflag (!%p2200_p13), [#allocation5], %s484_s13 }
  0x89   : > { %s2279_s5 = scalar_lea.vmem (!%p2200_p13), [#allocation4], %s1443_s26 }
  0x8c   : > { %p2703_p5 = scmp.ne.s32.totalorder %s2702_s30, 0 }
  0x8e   : > { %1898 = dma.done.wait (%p2703_p5), %s485_s23, 2048  }
  0x8f   : > { %1900 = vsyncadd (%p2703_p5), %s485_s23, 4294965248  ;;  %s2704_s18 = sld [smem:[#allocation32_spill]] }
  0x90   : > { %s2705_s24 = sld [smem:[#allocation29_spill]] }
  0x95   : > { %s494_s19 = sand.u32 1, %s2704_s18  }
  0x96   : > { %s496_s28 = sand.u32 1, %s2705_s24   ;;  %s495_s29 = scalar_lea.sflag [#allocation8], %s494_s19 }
  0x97   : > { %s1444_s9 = sshll.u32 %s496_s28, 7 }
  0x98   : > { %s2287_s27 = scalar_lea.vmem [#allocation7], %s1444_s9 }
  0x99   : > { %1902 = dma.done.wait (%p2175_p2), %s495_s29, 2048  }
  0x9a   : > { %1904 = vsyncadd (%p2175_p2), %s495_s29, 4294965248 }
  0x9b   : > { %1906 = dma.done.wait (%p69_p8), [#allocation8], 2048  }
  0x9c   : > { %1908 = vsyncadd (%p69_p8), [#allocation8], 4294965248 }
  0x9d   : > { %1910 = dma.done.wait (%p69_p8), [#allocation11], 4096  }
  0x9e   : > { %1912 = vsyncadd (%p69_p8), [#allocation11], 4294963200 }
  0x9f   : > { %1914 = dma.done.wait (%p69_p8), [#allocation14], 2048  }
  0xa0   : > { %1916 = vsyncadd (%p69_p8), [#allocation14], 4294965248  ;;  %s2707_s25 = sld [smem:[#allocation27_spill]] }
  0xa1   : > { %s2708_s11 = sld [smem:[#allocation30_spill]] }
  0xa6   : > { %s556_s3 = sand.u32 1, %s2707_s25  }
  0xa7   : > { %s2308_s2 = sshll.u32 %s556_s3, 3  ;;  %p1450_p2 = scmp.ne.s32.totalorder %s2708_s11, 0 }
  0xa8   : > { %s558_s8 = scalar_lea.vmem [#allocation15], %s2308_s2 }
  0xa9   : > { %581 = sbr.rel (%p1450_p2) target bundleno = 177 (0xb1), region = 84 }
  0xae   : > { %v1994_v0 = vmov 0.0  }
  0xaf   : > { %582 = vst [vmem:[#allocation2] sm:$0xff] %v1994_v0 }
  0xb0   : > { %583 = vst [vmem:[#allocation3] sm:$0xff] %v1994_v0 }
  0xb1 PF: > { %s2709_s15 = sld [smem:[#allocation30_spill]] }
  0xb7   : > { %p1451_p13 = scmp.ge.s32.totalorder %s2709_s15, 2 }
  0xb8   : > { %s2710_s10 = sld [smem:[#allocation44_spill]] (!%p1451_p13) }
  0xb9   : > { %587 = sbr.rel (%p1451_p13) target bundleno = 454 (0x1c6), region = 88  ;;  %s2711_s4 = sld [smem:[#allocation30_spill]] (!%p1451_p13) }
  0xbe   : > { %v619_v1 = vld [vmem:[#allocation9 + $0x78] sm:$0xff]  ;;  %v618_v2 = vld [vmem:[#allocation9 + $0x70] sm:$0xff]  ;;  %v617_v3 = vld [vmem:[#allocation9 + $0x68] sm:$0xff] }
  0xbf   : > { %1466 = vmatpush.msra.mxu2 %v619_v1  ;;  %1467 = vmatpush.msra.mxu3 %v619_v1  ;;  %v616_v4 = vld [vmem:[#allocation9 + $0x60] sm:$0xff]  ;;  %v615_v5 = vld [vmem:[#allocation9 + $0x58] sm:$0xff]  ;;  %v614_v6 = vld [vmem:[#allocation9 + $0x50] sm:$0xff]  ;;  %p1452_p8 = scmp.ne.s32.totalorder %s2711_s4, 1 }
  0xc0   : > { %624 = vmatpush.msra.mxu0 %v619_v1  ;;  %1465 = vmatpush.msra.mxu1 %v619_v1  ;;  %v613_v7 = vld [vmem:[#allocation9 + $0x48] sm:$0xff]  ;;  %v612_v8 = vld [vmem:[#allocation9 + $0x40] sm:$0xff]  ;;  %v611_v9 = vld [vmem:[#allocation9 + $0x38] sm:$0xff]  ;;  %s2712_s30 = sld [smem:[#allocation30_spill]] (!%p1452_p8) }
  0xc1   : > { %1469 = vmatpush.msra.mxu2 %v618_v2  ;;  %1470 = vmatpush.msra.mxu3 %v618_v2  ;;  %v610_v10 = vld [vmem:[#allocation9 + $0x30] sm:$0xff]  ;;  %v609_v11 = vld [vmem:[#allocation9 + $0x28] sm:$0xff]  ;;  %v608_v12 = vld [vmem:[#allocation9 + $0x20] sm:$0xff] }
  0xc2   : > { %625 = vmatpush.msra.mxu0 %v618_v2  ;;  %1468 = vmatpush.msra.mxu1 %v618_v2  ;;  %v607_v13 = vld [vmem:[#allocation9 + $0x18] sm:$0xff]  ;;  %v606_v14 = vld [vmem:[#allocation9 + $0x10] sm:$0xff]  ;;  %v605_v15 = vld [vmem:[#allocation9 + $0x8] sm:$0xff] }
  0xc3   : > { %1472 = vmatpush.msra.mxu2 %v617_v3  ;;  %1473 = vmatpush.msra.mxu3 %v617_v3  ;;  %v604_v16 = vld [vmem:[#allocation9] sm:$0xff]  ;;  %v597_v21 = vld [vmem:[%s2279_s5 + $0x48] sm:$0xff]  ;;  %v598_v25 = vld [vmem:[%s2279_s5 + $0x50] sm:$0xff] }
  0xc4   : > { %626 = vmatpush.msra.mxu0 %v617_v3  ;;  %1471 = vmatpush.msra.mxu1 %v617_v3  ;;  %v596_v17 = vld [vmem:[%s2279_s5 + $0x40] sm:$0xff]  ;;  %v601_v22 = vld [vmem:[%s2279_s5 + $0x68] sm:$0xff]  ;;  %v602_v26 = vld [vmem:[%s2279_s5 + $0x70] sm:$0xff] }
  0xc5   : > { %1475 = vmatpush.msra.mxu2 %v616_v4  ;;  %1476 = vmatpush.msra.mxu3 %v616_v4  ;;  %v600_v18 = vld [vmem:[%s2279_s5 + $0x60] sm:$0xff]  ;;  %v589_v23 = vld [vmem:[%s2279_s5 + $0x8] sm:$0xff]  ;;  %v590_v27 = vld [vmem:[%s2279_s5 + $0x10] sm:$0xff] }
  0xc6   : > { %627 = vmatpush.msra.mxu0 %v616_v4  ;;  %1474 = vmatpush.msra.mxu1 %v616_v4  ;;  %v588_v19 = vld [vmem:[%s2279_s5] sm:$0xff]  ;;  %v593_v24 = vld [vmem:[%s2279_s5 + $0x28] sm:$0xff]  ;;  %v594_v28 = vld [vmem:[%s2279_s5 + $0x30] sm:$0xff]  ;;  %s1453_s13 = sshll.u32 (!%p1452_p8), %s2712_s30, 4 }
  0xc7   : > { %1478 = vmatpush.msra.mxu2 %v615_v5  ;;  %1479 = vmatpush.msra.mxu3 %v615_v5  ;;  %v592_v20 = vld [vmem:[%s2279_s5 + $0x20] sm:$0xff]  ;;  %v599_v29 = vld [vmem:[%s2279_s5 + $0x58] sm:$0xff]  ;;  %v1690_v33 = vld [vmem:[%s2710_s10] ss:$0 sm:$0xff] }
  0xc8   : > { %628 = vmatpush.msra.mxu0 %v615_v5  ;;  %1477 = vmatpush.msra.mxu1 %v615_v5  ;;  %v603_v30 = vld [vmem:[%s2279_s5 + $0x78] sm:$0xff] }
  0xc9   : > { %1481 = vmatpush.msra.mxu2 %v614_v6  ;;  %1482 = vmatpush.msra.mxu3 %v614_v6  ;;  %v591_v31 = vld [vmem:[%s2279_s5 + $0x18] sm:$0xff] }
  0xca   : > { %629 = vmatpush.msra.mxu0 %v614_v6  ;;  %1480 = vmatpush.msra.mxu1 %v614_v6  ;;  %v595_v32 = vld [vmem:[%s2279_s5 + $0x38] sm:$0xff] }
  0xcb   : > { %1484 = vmatpush.msra.mxu2 %v613_v7  ;;  %1485 = vmatpush.msra.mxu3 %v613_v7 }
  0xcc   : > { %630 = vmatpush.msra.mxu0 %v613_v7  ;;  %1483 = vmatpush.msra.mxu1 %v613_v7 }
  0xcd   : > { %1487 = vmatpush.msra.mxu2 %v612_v8  ;;  %1488 = vmatpush.msra.mxu3 %v612_v8 }
  0xce   : > { %631 = vmatpush.msra.mxu0 %v612_v8  ;;  %1486 = vmatpush.msra.mxu1 %v612_v8 }
  0xcf   : > { %1490 = vmatpush.msra.mxu2 %v611_v9  ;;  %1491 = vmatpush.msra.mxu3 %v611_v9 }
  0xd0   : > { %632 = vmatpush.msra.mxu0 %v611_v9  ;;  %1489 = vmatpush.msra.mxu1 %v611_v9 }
  0xd1   : > { %1493 = vmatpush.msra.mxu2 %v610_v10  ;;  %1494 = vmatpush.msra.mxu3 %v610_v10 }
  0xd2   : > { %633 = vmatpush.msra.mxu0 %v610_v10  ;;  %1492 = vmatpush.msra.mxu1 %v610_v10 }
  0xd3   : > { %1496 = vmatpush.msra.mxu2 %v609_v11  ;;  %1497 = vmatpush.msra.mxu3 %v609_v11 }
  0xd4   : > { %634 = vmatpush.msra.mxu0 %v609_v11  ;;  %1495 = vmatpush.msra.mxu1 %v609_v11 }
  0xd5   : > { %1499 = vmatpush.msra.mxu2 %v608_v12  ;;  %1500 = vmatpush.msra.mxu3 %v608_v12 }
  0xd6   : > { %635 = vmatpush.msra.mxu0 %v608_v12  ;;  %1498 = vmatpush.msra.mxu1 %v608_v12 }
  0xd7   : > { %1502 = vmatpush.msra.mxu2 %v607_v13  ;;  %1503 = vmatpush.msra.mxu3 %v607_v13 }
  0xd8   : > { %636 = vmatpush.msra.mxu0 %v607_v13  ;;  %1501 = vmatpush.msra.mxu1 %v607_v13 }
  0xd9   : > { %1505 = vmatpush.msra.mxu2 %v606_v14  ;;  %1506 = vmatpush.msra.mxu3 %v606_v14 }
  0xda   : > { %637 = vmatpush.msra.mxu0 %v606_v14  ;;  %1504 = vmatpush.msra.mxu1 %v606_v14 }
  0xdb   : > { %1508 = vmatpush.msra.mxu2 %v605_v15  ;;  %1509 = vmatpush.msra.mxu3 %v605_v15 }
  0xdc   : > { %638 = vmatpush.msra.mxu0 %v605_v15  ;;  %1507 = vmatpush.msra.mxu1 %v605_v15 }
  0xdd   : > { %1511 = vmatpush.msra.mxu2 %v604_v16  ;;  %1512 = vmatpush.msra.mxu3 %v604_v16 }
  0xde   : > { %664 = vmatmul.f32.vlgmr.msra.gmra.mxu2 %v596_v17  ;;  %676 = vmatmul.f32.vlgmr.msra.gmra.mxu3 %v600_v18 }
  0xdf   : > { %639 = vmatpush.msra.mxu0 %v604_v16  ;;  %1510 = vmatpush.msra.mxu1 %v604_v16 }
  0xe0   : > { %640 = vmatmul.f32.vlgmr.msra.gmra.mxu0 %v588_v19  ;;  %652 = vmatmul.f32.vlgmr.msra.gmra.mxu1 %v592_v20 }
  0xe6   : > { %667 = vmatmul.f32.gmra.mxu2 %v597_v21  ;;  %679 = vmatmul.f32.gmra.mxu3 %v601_v22 }
  0xe8   : > { %643 = vmatmul.f32.gmra.mxu0 %v589_v23  ;;  %655 = vmatmul.f32.gmra.mxu1 %v593_v24 }
  0xee   : > { %670 = vmatmul.f32.gmra.mxu2 %v598_v25  ;;  %682 = vmatmul.f32.gmra.mxu3 %v602_v26 }
  0xf0   : > { %646 = vmatmul.f32.gmra.mxu0 %v590_v27  ;;  %658 = vmatmul.f32.gmra.mxu1 %v594_v28 }
  0xf6   : > { %673 = vmatmul.f32.gmra.mxu2 %v599_v29  ;;  %685 = vmatmul.f32.gmra.mxu3 %v603_v30 }
  0xf8   : > { %649 = vmatmul.f32.gmra.mxu0 %v591_v31  ;;  %661 = vmatmul.f32.gmra.mxu1 %v595_v32 }
 0x15d   : > { %v641_v34 = vpop.f32.mrf.mxu0  ;;  %v653_v35 = vpop.f32.mrf.mxu1 }
 0x15e   : > { %v2332_v36 = vadd.f32 %v1690_v33, %v641_v34  ;;  %v2334_v37 = vadd.f32 %v1690_v33, %v653_v35 }
 0x160   : > { %v689_v38 = vmax.f32 %v2332_v36, 0.0  ;;  %v693_v39 = vmax.f32 %v2334_v37, 0.0 }
 0x161   : > { %v665_v40 = vpop.f32.mrf.mxu2  ;;  %v677_v41 = vpop.f32.mrf.mxu3 }
 0x162   : > { %v2338_v42 = vadd.f32 %v1690_v33, %v665_v40  ;;  %v2340_v43 = vadd.f32 %v1690_v33, %v677_v41 }
 0x164   : > { %v697_v44 = vmax.f32 %v2338_v42, 0.0  ;;  %v701_v45 = vmax.f32 %v2340_v43, 0.0 }
 0x165   : > { %v644_v46 = vpop.f32.mrf.mxu0  ;;  %v656_v47 = vpop.f32.mrf.mxu1 }
 0x166   : > { %v2344_v48 = vadd.f32 %v1690_v33, %v644_v46  ;;  %v2346_v49 = vadd.f32 %v1690_v33, %v656_v47 }
 0x168   : > { %v690_v50 = vmax.f32 %v2344_v48, 0.0  ;;  %v694_v51 = vmax.f32 %v2346_v49, 0.0 }
 0x169   : > { %v668_v52 = vpop.f32.mrf.mxu2  ;;  %v680_v53 = vpop.f32.mrf.mxu3 }
 0x16a   : > { %v2350_v54 = vadd.f32 %v1690_v33, %v668_v52  ;;  %v2352_v55 = vadd.f32 %v1690_v33, %v680_v53 }
 0x16c   : > { %v698_v56 = vmax.f32 %v2350_v54, 0.0  ;;  %v2662_v57 = vmax.f32 %v2352_v55, 0.0 }
 0x16d   : > { %v647_v58 = vpop.f32.mrf.mxu0  ;;  %v659_v59 = vpop.f32.mrf.mxu1 }
 0x16e   : > { %v2356_v60 = vadd.f32 %v1690_v33, %v647_v58  ;;  %v2358_v61 = vadd.f32 %v1690_v33, %v659_v59 }
 0x170   : > { %v691_v62 = vmax.f32 %v2356_v60, 0.0  ;;  %v695_v63 = vmax.f32 %v2358_v61, 0.0 }
 0x171   : > { %v671_v0 = vpop.f32.mrf.mxu2  ;;  %v683_v1 = vpop.f32.mrf.mxu3 }
 0x172   : > { %v2362_v2 = vadd.f32 %v1690_v33, %v671_v0  ;;  %v2364_v3 = vadd.f32 %v1690_v33, %v683_v1 }
 0x174   : > { %v699_v4 = vmax.f32 %v2362_v2, 0.0  ;;  %v2661_v5 = vmax.f32 %v2364_v3, 0.0 }
 0x175   : > { %v650_v6 = vpop.f32.mrf.mxu0  ;;  %v662_v7 = vpop.f32.mrf.mxu1 }
 0x176   : > { %v2368_v8 = vadd.f32 %v1690_v33, %v650_v6  ;;  %v2370_v9 = vadd.f32 %v1690_v33, %v662_v7 }
 0x178   : > { %v692_v10 = vmax.f32 %v2368_v8, 0.0  ;;  %v696_v11 = vmax.f32 %v2370_v9, 0.0  ;;  %708 = sbr.rel (%p1452_p8) target bundleno = 416 (0x1a0), region = 92 }
 0x179   : > { %v674_v12 = vpop.f32.mrf.mxu2  ;;  %v686_v13 = vpop.f32.mrf.mxu3 }
 0x17a   : > { %v2374_v14 = vadd.f32 %v1690_v33, %v674_v12  ;;  %v2376_v15 = vadd.f32 %v1690_v33, %v686_v13 }
 0x17c   : > { %v700_v16 = vmax.f32 %v2374_v14, 0.0  ;;  %v2663_v17 = vmax.f32 %v2376_v15, 0.0 }
 0x17d   : > { %v710_v18 = vlaneseq  ;;  %v713_v19 = vstv %s1453_s13  ;;  %vm803_vm2 = vcmask 1041409   ;;  %vm805_vm3 = vcmask 1042434  }
 0x17e   : > { %vm807_vm4 = vcmask 1043459   ;;  %vm809_vm5 = vcmask 1044484   ;;  %vm811_vm6 = vcmask 1045509   ;;  %vm813_vm7 = vcmask 1046534  }
 0x17f   : > { %v711_v20 = vshrl.u32 %v710_v18, 7  ;;  %vm815_vm8 = vcmask 1047559  }
 0x181   : > { %v712_v21 = vadd.s32 8, %v711_v20  ;;  %v714_v22 = vadd.s32 %v713_v19, %v711_v20 }
 0x183   : > { %v715_v23 = vadd.s32 %v713_v19, %v712_v21  ;;  %vm717_vm0 = vcmp.lt.s32.totalorder %v714_v22, 28 }
 0x184   : > { %v723_v24 = vsel %vm717_vm0, %v689_v38, 0.0  ;;  %v725_v25 = vsel %vm717_vm0, %v691_v62, 0.0  ;;  %v727_v26 = vsel %vm717_vm0, %v693_v39, 0.0  ;;  %v729_v27 = vsel %vm717_vm0, %v695_v63, 0.0 }
 0x185   : > { %vm718_vm1 = vcmp.lt.s32.totalorder %v715_v23, 28  ;;  %v731_v28 = vsel %vm717_vm0, %v697_v44, 0.0  ;;  %v733_v29 = vsel %vm717_vm0, %v699_v4, 0.0  ;;  %v735_v30 = vsel %vm717_vm0, %v701_v45, 0.0 }
 0x186   : > { %v724_v31 = vsel %vm718_vm1, %v690_v50, 0.0  ;;  %v726_v32 = vsel %vm718_vm1, %v692_v10, 0.0  ;;  %v728_v33 = vsel %vm718_vm1, %v694_v51, 0.0  ;;  %v730_v34 = vsel %vm718_vm1, %v696_v11, 0.0 }
 0x187   : > { %v732_v35 = vsel %vm718_vm1, %v698_v56, 0.0  ;;  %v734_v40 = vsel %vm718_vm1, %v700_v16, 0.0  ;;  %v736_v41 = vsel %vm718_vm1, %v2662_v57, 0.0  ;;  %v737_v46 = vsel %vm717_vm0, %v2661_v5, 0.0 }
 0x188   : > { %v738_v47 = vsel %vm718_vm1, %v2663_v17, 0.0  ;;  %v739_v52 = vadd.f32 %v724_v31, %v723_v24  ;;  %v746_v53 = vadd.f32 %v726_v32, %v725_v25  ;;  %v753_v58 = vadd.f32 %v728_v33, %v727_v26 }
 0x189   : > { %v760_v59 = vadd.f32 %v730_v34, %v729_v27  ;;  %v767_v0 = vadd.f32 %v732_v35, %v731_v28  ;;  %v774_v1 = vadd.f32 %v734_v40, %v733_v29  ;;  %v781_v6 = vadd.f32 %v736_v41, %v735_v30 }
 0x18a   : > { %v740_v7 = vrot.slane %v739_v52, 4  ;;  %v747_v12 = vrot.slane %v746_v53, 4  ;;  %v754_v13 = vrot.slane %v753_v58, 4  ;;  %v788_v18 = vadd.f32 %v738_v47, %v737_v46 }
 0x18b   : > { %v761_v19 = vrot.slane %v760_v59, 4  ;;  %v768_v20 = vrot.slane %v767_v0, 4  ;;  %v775_v21 = vrot.slane %v774_v1, 4  ;;  %v782_v23 = vrot.slane %v781_v6, 4 }
 0x18c   : > { %v741_v22 = vadd.f32 %v740_v7, %v739_v52  ;;  %v748_v5 = vadd.f32 %v747_v12, %v746_v53  ;;  %v755_v57 = vadd.f32 %v754_v13, %v753_v58  ;;  %v789_v17 = vrot.slane %v788_v18, 4 }
 0x18d   : > { %v762_v24 = vadd.f32 %v761_v19, %v760_v59  ;;  %v769_v25 = vadd.f32 %v768_v20, %v767_v0  ;;  %v776_v26 = vadd.f32 %v775_v21, %v774_v1  ;;  %v783_v27 = vadd.f32 %v782_v23, %v781_v6 }
 0x18e   : > { %v742_v28 = vrot.slane %v741_v22, 2  ;;  %v749_v29 = vrot.slane %v748_v5, 2  ;;  %v756_v30 = vrot.slane %v755_v57, 2  ;;  %v790_v31 = vadd.f32 %v789_v17, %v788_v18 }
 0x18f   : > { %v763_v32 = vrot.slane %v762_v24, 2  ;;  %v770_v33 = vrot.slane %v769_v25, 2  ;;  %v777_v34 = vrot.slane %v776_v26, 2  ;;  %v784_v35 = vrot.slane %v783_v27, 2 }
 0x190   : > { %v743_v40 = vadd.f32 %v742_v28, %v741_v22  ;;  %v750_v41 = vadd.f32 %v749_v29, %v748_v5  ;;  %v757_v46 = vadd.f32 %v756_v30, %v755_v57  ;;  %v791_v47 = vrot.slane %v790_v31, 2  ;;  %v716_v30 = vld [vmem:[#allocation2] sm:$0xff] }
 0x191   : > { %v764_v52 = vadd.f32 %v763_v32, %v762_v24  ;;  %v771_v53 = vadd.f32 %v770_v33, %v769_v25  ;;  %v778_v58 = vadd.f32 %v777_v34, %v776_v26  ;;  %v785_v7 = vadd.f32 %v784_v35, %v783_v27 }
 0x192   : > { %v744_v59 = vrot.slane %v743_v40, 1  ;;  %v751_v0 = vrot.slane %v750_v41, 1  ;;  %v758_v1 = vrot.slane %v757_v46, 1  ;;  %v792_v6 = vadd.f32 %v791_v47, %v790_v31 }
 0x193   : > { %v765_v12 = vrot.slane %v764_v52, 1  ;;  %v772_v13 = vrot.slane %v771_v53, 1  ;;  %v779_v19 = vrot.slane %v778_v58, 1  ;;  %v786_v17 = vrot.slane %v785_v7, 1 }
 0x194   : > { %v745_v18 = vadd.f32 %v744_v59, %v743_v40  ;;  %v752_v20 = vadd.f32 %v751_v0, %v750_v41  ;;  %v759_v21 = vadd.f32 %v758_v1, %v757_v46  ;;  %v793_v23 = vrot.slane %v792_v6, 1 }
 0x195   : > { %v766_v22 = vadd.f32 %v765_v12, %v764_v52  ;;  %v773_v5 = vadd.f32 %v772_v13, %v771_v53  ;;  %v780_v57 = vadd.f32 %v779_v19, %v778_v58  ;;  %v787_v25 = vadd.f32 %v786_v17, %v785_v7 }
 0x196   : > { %v804_v24 = vsel %vm803_vm2, %v752_v20, %v745_v18  ;;  %v794_v27 = vadd.f32 %v793_v23, %v792_v6 }
 0x197   : > { %v806_v26 = vsel %vm805_vm3, %v759_v21, %v804_v24 }
 0x198   : > { %v808_v28 = vsel %vm807_vm4, %v766_v22, %v806_v26 }
 0x199   : > { %v810_v29 = vsel %vm809_vm5, %v773_v5, %v808_v28 }
 0x19a   : > { %v812_v31 = vsel %vm811_vm6, %v780_v57, %v810_v29 }
 0x19b   : > { %v814_v32 = vsel %vm813_vm7, %v787_v25, %v812_v31 }
 0x19c   : > { %v816_v33 = vsel %vm815_vm8, %v794_v27, %v814_v32 }
 0x19d   : > { %v818_v34 = vadd.f32 %v816_v33, %v716_v30 }
 0x19f   : > { %819 = vst [vmem:[#allocation2] sm:$0xff] %v818_v34 }
 0x1a0 PF: > { %s2713_s26 = sld [smem:[#allocation30_spill]] }
 0x1a6   : > { %p1454_p0 = scmp.eq.s32.totalorder %s2713_s26, 1 }
 0x1a8   : > { %823 = sbr.rel (%p1454_p0) target bundleno = 454 (0x1c6), region = 96 }
 0x1ad   : > { %v825_v35 = vadd.f32 %v690_v50, %v689_v38  ;;  %v832_v40 = vadd.f32 %v692_v10, %v691_v62  ;;  %v839_v41 = vadd.f32 %v694_v51, %v693_v39  ;;  %v846_v46 = vadd.f32 %v696_v11, %v695_v63  ;;  %v824_v34 = vld [vmem:[#allocation2] sm:$0xff] }
 0x1ae   : > { %v853_v36 = vadd.f32 %v698_v56, %v697_v44  ;;  %v860_v38 = vadd.f32 %v700_v16, %v699_v4  ;;  %v2714_v37 = vmax.f32 %v2352_v55, 0.0  ;;  %v2715_v48 = vmax.f32 %v2364_v3, 0.0 }
 0x1af   : > { %v2716_v49 = vmax.f32 %v2376_v15, 0.0  ;;  %v826_v51 = vrot.slane %v825_v35, 4  ;;  %v833_v42 = vrot.slane %v832_v40, 4  ;;  %v840_v60 = vrot.slane %v839_v41, 4 }
 0x1b0   : > { %v867_v39 = vadd.f32 %v2714_v37, %v701_v45  ;;  %v847_v54 = vrot.slane %v846_v46, 4  ;;  %v854_v44 = vrot.slane %v853_v36, 4  ;;  %v861_v56 = vrot.slane %v860_v38, 4 }
 0x1b1   : > { %v874_v50 = vadd.f32 %v2716_v49, %v2715_v48  ;;  %v827_v63 = vadd.f32 %v826_v51, %v825_v35  ;;  %v834_v2 = vadd.f32 %v833_v42, %v832_v40  ;;  %v841_v4 = vadd.f32 %v840_v60, %v839_v41 }
 0x1b2   : > { %v868_v61 = vrot.slane %v867_v39, 4  ;;  %v848_v43 = vadd.f32 %v847_v54, %v846_v46  ;;  %v855_v8 = vadd.f32 %v854_v44, %v853_v36  ;;  %v862_v55 = vadd.f32 %v861_v56, %v860_v38 }
 0x1b3   : > { %v875_v62 = vrot.slane %v874_v50, 4  ;;  %v828_v3 = vrot.slane %v827_v63, 2  ;;  %v835_v10 = vrot.slane %v834_v2, 2  ;;  %v842_v11 = vrot.slane %v841_v4, 2 }
 0x1b4   : > { %v869_v45 = vadd.f32 %v868_v61, %v867_v39  ;;  %v849_v14 = vrot.slane %v848_v43, 2  ;;  %v856_v15 = vrot.slane %v855_v8, 2  ;;  %v863_v16 = vrot.slane %v862_v55, 2 }
 0x1b5   : > { %v876_v9 = vadd.f32 %v875_v62, %v874_v50  ;;  %v829_v53 = vadd.f32 %v828_v3, %v827_v63  ;;  %v836_v58 = vadd.f32 %v835_v10, %v834_v2  ;;  %v843_v7 = vadd.f32 %v842_v11, %v841_v4 }
 0x1b6   : > { %v870_v47 = vrot.slane %v869_v45, 2  ;;  %v850_v59 = vadd.f32 %v849_v14, %v848_v43  ;;  %v857_v0 = vadd.f32 %v856_v15, %v855_v8  ;;  %v864_v1 = vadd.f32 %v863_v16, %v862_v55 }
 0x1b7   : > { %v877_v52 = vrot.slane %v876_v9, 2  ;;  %v830_v13 = vrot.slane %v829_v53, 1  ;;  %v837_v19 = vrot.slane %v836_v58, 1  ;;  %v844_v17 = vrot.slane %v843_v7, 1 }
 0x1b8   : > { %v871_v6 = vadd.f32 %v870_v47, %v869_v45  ;;  %v851_v18 = vrot.slane %v850_v59, 1  ;;  %v858_v20 = vrot.slane %v857_v0, 1  ;;  %v865_v21 = vrot.slane %v864_v1, 1 }
 0x1b9   : > { %v878_v12 = vadd.f32 %v877_v52, %v876_v9  ;;  %v831_v23 = vadd.f32 %v830_v13, %v829_v53  ;;  %v838_v22 = vadd.f32 %v837_v19, %v836_v58  ;;  %v845_v5 = vadd.f32 %v844_v17, %v843_v7 }
 0x1ba   : > { %v872_v57 = vrot.slane %v871_v6, 1  ;;  %v852_v24 = vadd.f32 %v851_v18, %v850_v59  ;;  %v859_v26 = vadd.f32 %v858_v20, %v857_v0  ;;  %vm889_vm9 = vcmask 1041409  }
 0x1bb   : > { %v879_v25 = vrot.slane %v878_v12, 1  ;;  %vm891_vm10 = vcmask 1042434   ;;  %vm893_vm11 = vcmask 1043459   ;;  %v866_v27 = vadd.f32 %v865_v21, %v864_v1 }
 0x1bc   : > { %v890_v28 = vsel %vm889_vm9, %v838_v22, %v831_v23  ;;  %vm895_vm12 = vcmask 1044484   ;;  %v873_v29 = vadd.f32 %v872_v57, %v871_v6  ;;  %vm897_vm13 = vcmask 1045509  }
 0x1bd   : > { %v892_v30 = vsel %vm891_vm10, %v845_v5, %v890_v28  ;;  %v880_v31 = vadd.f32 %v879_v25, %v878_v12  ;;  %vm899_vm14 = vcmask 1046534   ;;  %vm901_vm15 = vcmask 1047559  }
 0x1be   : > { %v894_v32 = vsel %vm893_vm11, %v852_v24, %v892_v30 }
 0x1bf   : > { %v896_v33 = vsel %vm895_vm12, %v859_v26, %v894_v32 }
 0x1c0   : > { %v898_v35 = vsel %vm897_vm13, %v866_v27, %v896_v33 }
 0x1c1   : > { %v900_v40 = vsel %vm899_vm14, %v873_v29, %v898_v35 }
 0x1c2   : > { %v902_v41 = vsel %vm901_vm15, %v880_v31, %v900_v40 }
 0x1c3   : > { %v904_v46 = vadd.f32 %v902_v41, %v824_v34 }
 0x1c5   : > { %905 = vst [vmem:[#allocation2] sm:$0xff] %v904_v46 }
 0x1c6 PF: > { %v2458_v36 = vld [vmem:[%s2287_s27] sm:$0xff]  ;;  %v2461_v38 = vld [vmem:[%s2287_s27 + $0x8] sm:$0xff]  ;;  %v2464_v37 = vld [vmem:[%s2287_s27 + $0x10] sm:$0xff]  ;;  %s2717_s23 = sld [smem:[#allocation30_spill]] }
 0x1c7   : > { %v2467_v39 = vld [vmem:[%s2287_s27 + $0x18] sm:$0xff]  ;;  %v2470_v48 = vld [vmem:[%s2287_s27 + $0x20] sm:$0xff]  ;;  %v2473_v49 = vld [vmem:[%s2287_s27 + $0x28] sm:$0xff] }
 0x1c8   : > { %v2476_v50 = vld [vmem:[%s2287_s27 + $0x30] sm:$0xff]  ;;  %v2479_v51 = vld [vmem:[%s2287_s27 + $0x38] sm:$0xff]  ;;  %v2482_v42 = vld [vmem:[%s2287_s27 + $0x40] sm:$0xff] }
 0x1c9   : > { %v2485_v60 = vld [vmem:[%s2287_s27 + $0x48] sm:$0xff]  ;;  %v2488_v54 = vld [vmem:[%s2287_s27 + $0x50] sm:$0xff]  ;;  %v2491_v44 = vld [vmem:[%s2287_s27 + $0x58] sm:$0xff] }
 0x1ca   : > { %v2494_v56 = vld [vmem:[%s2287_s27 + $0x60] sm:$0xff]  ;;  %v2497_v61 = vld [vmem:[%s2287_s27 + $0x68] sm:$0xff]  ;;  %v2500_v62 = vld [vmem:[%s2287_s27 + $0x70] sm:$0xff] }
 0x1cb   : > { %v2503_v63 = vld [vmem:[%s2287_s27 + $0x78] sm:$0xff] }
 0x1cc   : > { %p1455_p3 = scmp.ne.s32.totalorder %s2717_s23, 2 }
 0x1cd   : > { %s2718_s5 = sld [smem:[#allocation30_spill]] (!%p1455_p3) }
 0x1ce   : > { %925 = sbr.rel (%p1455_p3) target bundleno = 502 (0x1f6), region = 100 }
 0x1d3   : > { %s1456_s18 = sshll.u32 %s2718_s5, 4  ;;  %v927_v2 = vlaneseq  ;;  %vm1020_vm2 = vcmask 1041409   ;;  %vm1022_vm3 = vcmask 1042434   ;;  %vm1024_vm4 = vcmask 1043459  }
 0x1d4   : > { %v930_v4 = vstv %s1456_s18  ;;  %vm1026_vm5 = vcmask 1044484   ;;  %vm1028_vm6 = vcmask 1045509   ;;  %vm1030_vm7 = vcmask 1046534  }
 0x1d5   : > { %v928_v43 = vshrl.u32 %v927_v2, 7  ;;  %vm1032_vm8 = vcmask 1047559  }
 0x1d7   : > { %v929_v8 = vadd.s32 8, %v928_v43  ;;  %v931_v55 = vadd.s32 %v930_v4, %v928_v43 }
 0x1d9   : > { %v932_v45 = vadd.s32 %v930_v4, %v929_v8  ;;  %vm934_vm0 = vcmp.lt.s32.totalorder %v931_v55, 40 }
 0x1da   : > { %v940_v9 = vsel %vm934_vm0, %v2458_v36, 0.0  ;;  %v942_v3 = vsel %vm934_vm0, %v2464_v37, 0.0  ;;  %v944_v10 = vsel %vm934_vm0, %v2470_v48, 0.0  ;;  %v946_v11 = vsel %vm934_vm0, %v2476_v50, 0.0 }
 0x1db   : > { %vm935_vm1 = vcmp.lt.s32.totalorder %v932_v45, 40  ;;  %v948_v14 = vsel %vm934_vm0, %v2482_v42, 0.0  ;;  %v950_v15 = vsel %vm934_vm0, %v2488_v54, 0.0  ;;  %v952_v16 = vsel %vm934_vm0, %v2494_v56, 0.0 }
 0x1dc   : > { %v941_v47 = vsel %vm935_vm1, %v2461_v38, 0.0  ;;  %v943_v52 = vsel %vm935_vm1, %v2467_v39, 0.0  ;;  %v945_v53 = vsel %vm935_vm1, %v2473_v49, 0.0  ;;  %v947_v58 = vsel %vm935_vm1, %v2479_v51, 0.0 }
 0x1dd   : > { %v949_v7 = vsel %vm935_vm1, %v2485_v60, 0.0  ;;  %v951_v59 = vsel %vm935_vm1, %v2491_v44, 0.0  ;;  %v953_v0 = vsel %vm935_vm1, %v2497_v61, 0.0  ;;  %v954_v1 = vsel %vm934_vm0, %v2500_v62, 0.0 }
 0x1de   : > { %v955_v6 = vsel %vm935_vm1, %v2503_v63, 0.0  ;;  %v956_v12 = vadd.f32 %v941_v47, %v940_v9  ;;  %v963_v13 = vadd.f32 %v943_v52, %v942_v3  ;;  %v970_v19 = vadd.f32 %v945_v53, %v944_v10 }
 0x1df   : > { %v977_v17 = vadd.f32 %v947_v58, %v946_v11  ;;  %v984_v18 = vadd.f32 %v949_v7, %v948_v14  ;;  %v991_v20 = vadd.f32 %v951_v59, %v950_v15  ;;  %v998_v21 = vadd.f32 %v953_v0, %v952_v16 }
 0x1e0   : > { %v957_v23 = vrot.slane %v956_v12, 4  ;;  %v964_v22 = vrot.slane %v963_v13, 4  ;;  %v971_v5 = vrot.slane %v970_v19, 4  ;;  %v1005_v57 = vadd.f32 %v955_v6, %v954_v1 }
 0x1e1   : > { %v978_v24 = vrot.slane %v977_v17, 4  ;;  %v985_v25 = vrot.slane %v984_v18, 4  ;;  %v992_v26 = vrot.slane %v991_v20, 4  ;;  %v999_v27 = vrot.slane %v998_v21, 4 }
 0x1e2   : > { %v958_v28 = vadd.f32 %v957_v23, %v956_v12  ;;  %v965_v29 = vadd.f32 %v964_v22, %v963_v13  ;;  %v972_v30 = vadd.f32 %v971_v5, %v970_v19  ;;  %v1006_v31 = vrot.slane %v1005_v57, 4 }
 0x1e3   : > { %v979_v32 = vadd.f32 %v978_v24, %v977_v17  ;;  %v986_v33 = vadd.f32 %v985_v25, %v984_v18  ;;  %v993_v34 = vadd.f32 %v992_v26, %v991_v20  ;;  %v1000_v35 = vadd.f32 %v999_v27, %v998_v21  ;;  %v933_v25 = vld [vmem:[#allocation3] sm:$0xff] }
 0x1e4   : > { %v959_v40 = vrot.slane %v958_v28, 2  ;;  %v966_v41 = vrot.slane %v965_v29, 2  ;;  %v973_v46 = vrot.slane %v972_v30, 2  ;;  %v1007_v2 = vadd.f32 %v1006_v31, %v1005_v57 }
 0x1e5   : > { %v980_v4 = vrot.slane %v979_v32, 2  ;;  %v987_v43 = vrot.slane %v986_v33, 2  ;;  %v994_v8 = vrot.slane %v993_v34, 2  ;;  %v1001_v55 = vrot.slane %v1000_v35, 2 }
 0x1e6   : > { %v960_v45 = vadd.f32 %v959_v40, %v958_v28  ;;  %v967_v9 = vadd.f32 %v966_v41, %v965_v29  ;;  %v974_v3 = vadd.f32 %v973_v46, %v972_v30  ;;  %v1008_v10 = vrot.slane %v1007_v2, 2 }
 0x1e7   : > { %v981_v11 = vadd.f32 %v980_v4, %v979_v32  ;;  %v988_v14 = vadd.f32 %v987_v43, %v986_v33  ;;  %v995_v15 = vadd.f32 %v994_v8, %v993_v34  ;;  %v1002_v16 = vadd.f32 %v1001_v55, %v1000_v35 }
 0x1e8   : > { %v961_v47 = vrot.slane %v960_v45, 1  ;;  %v968_v52 = vrot.slane %v967_v9, 1  ;;  %v975_v53 = vrot.slane %v974_v3, 1  ;;  %v1009_v58 = vadd.f32 %v1008_v10, %v1007_v2 }
 0x1e9   : > { %v982_v7 = vrot.slane %v981_v11, 1  ;;  %v989_v59 = vrot.slane %v988_v14, 1  ;;  %v996_v0 = vrot.slane %v995_v15, 1  ;;  %v1003_v1 = vrot.slane %v1002_v16, 1 }
 0x1ea   : > { %v962_v6 = vadd.f32 %v961_v47, %v960_v45  ;;  %v969_v12 = vadd.f32 %v968_v52, %v967_v9  ;;  %v976_v13 = vadd.f32 %v975_v53, %v974_v3  ;;  %v1010_v19 = vrot.slane %v1009_v58, 1 }
 0x1eb   : > { %v983_v17 = vadd.f32 %v982_v7, %v981_v11  ;;  %v990_v18 = vadd.f32 %v989_v59, %v988_v14  ;;  %v997_v20 = vadd.f32 %v996_v0, %v995_v15  ;;  %v1004_v23 = vadd.f32 %v1003_v1, %v1002_v16 }
 0x1ec   : > { %v1021_v21 = vsel %vm1020_vm2, %v969_v12, %v962_v6  ;;  %v1011_v5 = vadd.f32 %v1010_v19, %v1009_v58 }
 0x1ed   : > { %v1023_v22 = vsel %vm1022_vm3, %v976_v13, %v1021_v21 }
 0x1ee   : > { %v1025_v57 = vsel %vm1024_vm4, %v983_v17, %v1023_v22 }
 0x1ef   : > { %v1027_v24 = vsel %vm1026_vm5, %v990_v18, %v1025_v57 }
 0x1f0   : > { %v1029_v26 = vsel %vm1028_vm6, %v997_v20, %v1027_v24 }
 0x1f1   : > { %v1031_v27 = vsel %vm1030_vm7, %v1004_v23, %v1029_v26 }
 0x1f2   : > { %v1033_v28 = vsel %vm1032_vm8, %v1011_v5, %v1031_v27 }
 0x1f3   : > { %v1035_v29 = vadd.f32 %v1033_v28, %v933_v25 }
 0x1f5   : > { %1036 = vst [vmem:[#allocation3] sm:$0xff] %v1035_v29 }
 0x1f6 PF: > { %s2719_s24 = sld [smem:[#allocation30_spill]] }
 0x1fc   : > { %p1457_p4 = scmp.eq.s32.totalorder %s2719_s24, 2 }
 0x1fe   : > { %1040 = sbr.rel (%p1457_p4) target bundleno = 539 (0x21b), region = 104 }
 0x203   : > { %v1042_v30 = vadd.f32 %v2461_v38, %v2458_v36  ;;  %v1049_v31 = vadd.f32 %v2467_v39, %v2464_v37  ;;  %v1056_v32 = vadd.f32 %v2473_v49, %v2470_v48  ;;  %v1063_v33 = vadd.f32 %v2479_v51, %v2476_v50  ;;  %v1041_v26 = vld [vmem:[#allocation3] sm:$0xff] }
 0x204   : > { %v1070_v34 = vadd.f32 %v2485_v60, %v2482_v42  ;;  %v1077_v35 = vadd.f32 %v2491_v44, %v2488_v54  ;;  %v1084_v40 = vadd.f32 %v2497_v61, %v2494_v56  ;;  %v1091_v36 = vadd.f32 %v2503_v63, %v2500_v62 }
 0x205   : > { %v1043_v38 = vrot.slane %v1042_v30, 4  ;;  %v1050_v37 = vrot.slane %v1049_v31, 4  ;;  %v1057_v39 = vrot.slane %v1056_v32, 4  ;;  %v1064_v41 = vrot.slane %v1063_v33, 4 }
 0x206   : > { %v1071_v48 = vrot.slane %v1070_v34, 4  ;;  %v1078_v49 = vrot.slane %v1077_v35, 4  ;;  %v1085_v46 = vrot.slane %v1084_v40, 4  ;;  %v1092_v50 = vrot.slane %v1091_v36, 4 }
 0x207   : > { %v1044_v51 = vadd.f32 %v1043_v38, %v1042_v30  ;;  %v1051_v2 = vadd.f32 %v1050_v37, %v1049_v31  ;;  %v1058_v42 = vadd.f32 %v1057_v39, %v1056_v32  ;;  %v1065_v60 = vadd.f32 %v1064_v41, %v1063_v33 }
 0x208   : > { %v1072_v4 = vadd.f32 %v1071_v48, %v1070_v34  ;;  %v1079_v54 = vadd.f32 %v1078_v49, %v1077_v35  ;;  %v1086_v44 = vadd.f32 %v1085_v46, %v1084_v40  ;;  %v1093_v43 = vadd.f32 %v1092_v50, %v1091_v36 }
 0x209   : > { %v1045_v56 = vrot.slane %v1044_v51, 2  ;;  %v1052_v61 = vrot.slane %v1051_v2, 2  ;;  %v1059_v8 = vrot.slane %v1058_v42, 2  ;;  %v1066_v62 = vrot.slane %v1065_v60, 2 }
 0x20a   : > { %v1073_v63 = vrot.slane %v1072_v4, 2  ;;  %v1080_v55 = vrot.slane %v1079_v54, 2  ;;  %v1087_v45 = vrot.slane %v1086_v44, 2  ;;  %v1094_v9 = vrot.slane %v1093_v43, 2 }
 0x20b   : > { %v1046_v3 = vadd.f32 %v1045_v56, %v1044_v51  ;;  %v1053_v10 = vadd.f32 %v1052_v61, %v1051_v2  ;;  %v1060_v11 = vadd.f32 %v1059_v8, %v1058_v42  ;;  %v1067_v14 = vadd.f32 %v1066_v62, %v1065_v60 }
 0x20c   : > { %v1074_v15 = vadd.f32 %v1073_v63, %v1072_v4  ;;  %v1081_v16 = vadd.f32 %v1080_v55, %v1079_v54  ;;  %v1088_v47 = vadd.f32 %v1087_v45, %v1086_v44  ;;  %v1095_v52 = vadd.f32 %v1094_v9, %v1093_v43 }
 0x20d   : > { %v1047_v53 = vrot.slane %v1046_v3, 1  ;;  %v1054_v58 = vrot.slane %v1053_v10, 1  ;;  %v1061_v7 = vrot.slane %v1060_v11, 1  ;;  %v1068_v59 = vrot.slane %v1067_v14, 1 }
 0x20e   : > { %v1075_v0 = vrot.slane %v1074_v15, 1  ;;  %v1082_v1 = vrot.slane %v1081_v16, 1  ;;  %v1089_v19 = vrot.slane %v1088_v47, 1  ;;  %v1096_v18 = vrot.slane %v1095_v52, 1 }
 0x20f   : > { %v1048_v6 = vadd.f32 %v1047_v53, %v1046_v3  ;;  %v1055_v12 = vadd.f32 %v1054_v58, %v1053_v10  ;;  %v1062_v13 = vadd.f32 %v1061_v7, %v1060_v11  ;;  %v1069_v17 = vadd.f32 %v1068_v59, %v1067_v14 }
 0x210   : > { %v1076_v20 = vadd.f32 %v1075_v0, %v1074_v15  ;;  %vm1106_vm9 = vcmask 1041409   ;;  %vm1108_vm10 = vcmask 1042434   ;;  %vm1110_vm11 = vcmask 1043459  }
 0x211   : > { %v1083_v21 = vadd.f32 %v1082_v1, %v1081_v16  ;;  %v1107_v23 = vsel %vm1106_vm9, %v1055_v12, %v1048_v6  ;;  %vm1112_vm12 = vcmask 1044484   ;;  %v1090_v22 = vadd.f32 %v1089_v19, %v1088_v47 }
 0x212   : > { %v1109_v5 = vsel %vm1108_vm10, %v1062_v13, %v1107_v23  ;;  %vm1114_vm13 = vcmask 1045509   ;;  %v1097_v57 = vadd.f32 %v1096_v18, %v1095_v52  ;;  %vm1116_vm14 = vcmask 1046534  }
 0x213   : > { %v1111_v24 = vsel %vm1110_vm11, %v1069_v17, %v1109_v5  ;;  %vm1118_vm15 = vcmask 1047559  }
 0x214   : > { %v1113_v25 = vsel %vm1112_vm12, %v1076_v20, %v1111_v24 }
 0x215   : > { %v1115_v27 = vsel %vm1114_vm13, %v1083_v21, %v1113_v25 }
 0x216   : > { %v1117_v28 = vsel %vm1116_vm14, %v1090_v22, %v1115_v27 }
 0x217   : > { %v1119_v29 = vsel %vm1118_vm15, %v1097_v57, %v1117_v28 }
 0x218   : > { %v1121_v30 = vadd.f32 %v1119_v29, %v1041_v26 }
 0x21a   : > { %1122 = vst [vmem:[#allocation3] sm:$0xff] %v1121_v30 }
 0x21b PF: > { %1125 = sbr.rel (%p1455_p3) target bundleno = 842 (0x34a), region = 108  ;;  %s2721_s9 = sld [smem:[#allocation47_spill]] (!%p1455_p3) }
 0x21c   : > { %s2722_s25 = sld [smem:[#allocation48_spill]] (!%p1455_p3) }
 0x220   : > { %v1161_v31 = vld [vmem:[#allocation12 + $0x78] sm:$0xff]  ;;  %v1160_v33 = vld [vmem:[#allocation12 + $0x70] sm:$0xff]  ;;  %v1159_v35 = vld [vmem:[#allocation12 + $0x68] sm:$0xff] }
 0x221   : > { %v1145_v32 = vld [vmem:[#allocation10 + $0x78] sm:$0xff]  ;;  %1162 = vmatpush.msra.mxu0 %v1161_v31  ;;  %v1144_v34 = vld [vmem:[#allocation10 + $0x70] sm:$0xff]  ;;  %v1143_v40 = vld [vmem:[#allocation10 + $0x68] sm:$0xff] }
 0x222   : > { %1182 = vmatpush.msra.mxu1 %v1145_v32  ;;  %v1158_v36 = vld [vmem:[#allocation12 + $0x60] sm:$0xff]  ;;  %v1157_v37 = vld [vmem:[#allocation12 + $0x58] sm:$0xff]  ;;  %v1156_v41 = vld [vmem:[#allocation12 + $0x50] sm:$0xff] }
 0x223   : > { %1163 = vmatpush.msra.mxu0 %v1160_v33  ;;  %v1142_v38 = vld [vmem:[#allocation10 + $0x60] sm:$0xff]  ;;  %v1141_v39 = vld [vmem:[#allocation10 + $0x58] sm:$0xff]  ;;  %v1140_v48 = vld [vmem:[#allocation10 + $0x50] sm:$0xff] }
 0x224   : > { %1183 = vmatpush.msra.mxu1 %v1144_v34  ;;  %v1155_v49 = vld [vmem:[#allocation12 + $0x48] sm:$0xff]  ;;  %v1222_v50 = vld [vmem:[#allocation13 + $0x78] sm:$0xff]  ;;  %v1221_v51 = vld [vmem:[#allocation13 + $0x70] sm:$0xff] }
 0x225   : > { %1164 = vmatpush.msra.mxu0 %v1159_v35  ;;  %v1139_v46 = vld [vmem:[#allocation10 + $0x48] sm:$0xff]  ;;  %v1154_v2 = vld [vmem:[#allocation12 + $0x40] sm:$0xff]  ;;  %1227 = vmatpush.msra.mxu2 %v1222_v50  ;;  %v1153_v4 = vld [vmem:[#allocation12 + $0x38] sm:$0xff] }
 0x226   : > { %1184 = vmatpush.msra.mxu1 %v1143_v40  ;;  %v1138_v42 = vld [vmem:[#allocation10 + $0x40] sm:$0xff]  ;;  %v1220_v60 = vld [vmem:[#allocation13 + $0x68] sm:$0xff]  ;;  %v1137_v54 = vld [vmem:[#allocation10 + $0x38] sm:$0xff] }
 0x227   : > { %1165 = vmatpush.msra.mxu0 %v1158_v36  ;;  %1228 = vmatpush.msra.mxu2 %v1221_v51  ;;  %v1219_v44 = vld [vmem:[#allocation13 + $0x60] sm:$0xff]  ;;  %v1152_v43 = vld [vmem:[#allocation12 + $0x30] sm:$0xff]  ;;  %v1218_v61 = vld [vmem:[#allocation13 + $0x58] sm:$0xff] }
 0x228   : > { %1185 = vmatpush.msra.mxu1 %v1142_v38  ;;  %v1136_v56 = vld [vmem:[#allocation10 + $0x30] sm:$0xff]  ;;  %v1151_v8 = vld [vmem:[#allocation12 + $0x28] sm:$0xff]  ;;  %v1150_v55 = vld [vmem:[#allocation12 + $0x20] sm:$0xff] }
 0x229   : > { %1166 = vmatpush.msra.mxu0 %v1157_v37  ;;  %1229 = vmatpush.msra.mxu2 %v1220_v60  ;;  %v1135_v62 = vld [vmem:[#allocation10 + $0x28] sm:$0xff]  ;;  %v1217_v63 = vld [vmem:[#allocation13 + $0x50] sm:$0xff]  ;;  %v1134_v45 = vld [vmem:[#allocation10 + $0x20] sm:$0xff] }
 0x22a   : > { %1186 = vmatpush.msra.mxu1 %v1141_v39  ;;  %v1216_v9 = vld [vmem:[#allocation13 + $0x48] sm:$0xff]  ;;  %v1149_v3 = vld [vmem:[#allocation12 + $0x18] sm:$0xff]  ;;  %v1215_v11 = vld [vmem:[#allocation13 + $0x40] sm:$0xff] }
 0x22b   : > { %1167 = vmatpush.msra.mxu0 %v1156_v41  ;;  %1230 = vmatpush.msra.mxu2 %v1219_v44  ;;  %v1133_v10 = vld [vmem:[#allocation10 + $0x18] sm:$0xff]  ;;  %v1148_v14 = vld [vmem:[#allocation12 + $0x10] sm:$0xff]  ;;  %v1147_v53 = vld [vmem:[#allocation12 + $0x8] sm:$0xff] }
 0x22c   : > { %1187 = vmatpush.msra.mxu1 %v1140_v48  ;;  %v1132_v15 = vld [vmem:[#allocation10 + $0x10] sm:$0xff]  ;;  %v1128_v16 = vld [vmem:[#allocation3] sm:$0xff]  ;;  %v1131_v58 = vld [vmem:[#allocation10 + $0x8] sm:$0xff] }
 0x22d   : > { %1168 = vmatpush.msra.mxu0 %v1155_v49  ;;  %1231 = vmatpush.msra.mxu2 %v1218_v61  ;;  %v1126_v47 = vld [vmem:[#allocation2] sm:$0xff]  ;;  %v1214_v52 = vld [vmem:[#allocation13 + $0x38] sm:$0xff]  ;;  %v1146_v59 = vld [vmem:[#allocation12] sm:$0xff]  ;;  %v1129_v1 = vmul.f32 0.025, %v1128_v16 }
 0x22e   : > { %1188 = vmatpush.msra.mxu1 %v1139_v46  ;;  %v1213_v7 = vld [vmem:[#allocation13 + $0x30] sm:$0xff]  ;;  %v1130_v0 = vld [vmem:[#allocation10] sm:$0xff]  ;;  %v1127_v6 = vmul.f32 0.035714287, %v1126_v47  ;;  %v1212_v12 = vld [vmem:[#allocation13 + $0x28] sm:$0xff] }
 0x22f   : > { %1169 = vmatpush.msra.mxu0 %v1154_v2  ;;  %1232 = vmatpush.msra.mxu2 %v1217_v63  ;;  %v1211_v13 = vld [vmem:[#allocation13 + $0x20] sm:$0xff]  ;;  %v1210_v19 = vld [vmem:[#allocation13 + $0x18] sm:$0xff]  ;;  %v1209_v17 = vld [vmem:[#allocation13 + $0x10] sm:$0xff] }
 0x230   : > { %1189 = vmatpush.msra.mxu1 %v1138_v42  ;;  %v1208_v18 = vld [vmem:[#allocation13 + $0x8] sm:$0xff]  ;;  %v1207_v20 = vld [vmem:[#allocation13] sm:$0xff]  ;;  %v1691_v21 = vld [vmem:[%s2721_s9] ss:$0 sm:$0xff] }
 0x231   : > { %1170 = vmatpush.msra.mxu0 %v1153_v4  ;;  %1233 = vmatpush.msra.mxu2 %v1216_v9  ;;  %v1692_v24 = vld [vmem:[%s2722_s25] ss:$0 sm:$0xff] }
 0x232   : > { %1190 = vmatpush.msra.mxu1 %v1137_v54 }
 0x233   : > { %1171 = vmatpush.msra.mxu0 %v1152_v43  ;;  %1234 = vmatpush.msra.mxu2 %v1215_v11 }
 0x234   : > { %1191 = vmatpush.msra.mxu1 %v1136_v56 }
 0x235   : > { %1172 = vmatpush.msra.mxu0 %v1151_v8  ;;  %1235 = vmatpush.msra.mxu2 %v1214_v52 }
 0x236   : > { %1192 = vmatpush.msra.mxu1 %v1135_v62 }
 0x237   : > { %1173 = vmatpush.msra.mxu0 %v1150_v55  ;;  %1236 = vmatpush.msra.mxu2 %v1213_v7 }
 0x238   : > { %1193 = vmatpush.msra.mxu1 %v1134_v45 }
 0x239   : > { %1174 = vmatpush.msra.mxu0 %v1149_v3  ;;  %1237 = vmatpush.msra.mxu2 %v1212_v12 }
 0x23a   : > { %1194 = vmatpush.msra.mxu1 %v1133_v10 }
 0x23b   : > { %1175 = vmatpush.msra.mxu0 %v1148_v14  ;;  %1238 = vmatpush.msra.mxu2 %v1211_v13 }
 0x23c   : > { %1195 = vmatpush.msra.mxu1 %v1132_v15 }
 0x23d   : > { %1176 = vmatpush.msra.mxu0 %v1147_v53  ;;  %1239 = vmatpush.msra.mxu2 %v1210_v19 }
 0x23e   : > { %1196 = vmatpush.msra.mxu1 %v1131_v58 }
 0x23f   : > { %1177 = vmatpush.msra.mxu0 %v1146_v59  ;;  %1240 = vmatpush.msra.mxu2 %v1209_v17 }
 0x240   : > { %1197 = vmatpush.msra.mxu1 %v1130_v0  ;;  %1178 = vmatmul.f32.vlgmr.msra.gmra.mxu0 %v1129_v1 }
 0x241   : > { %1198 = vmatmul.f32.vlgmr.msra.gmra.mxu1 %v1127_v6  ;;  %1241 = vmatpush.msra.mxu2 %v1208_v18 }
 0x243   : > { %1242 = vmatpush.msra.mxu2 %v1207_v20 }
 0x2bd   : > { %v1179_v23 = vpop.f32.mrf.mxu0 }
 0x2be   : > { %v1199_v22 = vpop.f32.mrf.mxu1 }
 0x2bf   : > { %v1200_v5 = vadd.f32 %v1199_v22, %v1179_v23 }
 0x2c1   : > { %v1206_v57 = vadd.f32 %v1691_v21, %v1200_v5 }
 0x2c3   : > { %1243 = vmatmul.f32.vlgmr.msra.gmra.mxu2 %v1206_v57 }
 0x346   : > { %v1244_v25 = vpop.f32.mrf.mxu2 }
 0x347   : > { %v1245_v26 = vadd.f32 %v1692_v24, %v1244_v25 }
 0x349   : > { %1247 = vst [vmem:[%s558_s8] sm:$0xff] %v1245_v26 }
 0x34a PF: > { %s2723_s11 = sld [smem:[#allocation31_spill]]  ;;  %s1261_s23 = sshll.u32 %s558_s8, 4  ;;  %s1262_s23 = int_to_ptr.vmem [resolvable:$true] %s1261_s23 }
 0x34b   : > { %s2726_s30 = sld [smem:[#allocation49_spill]]  ;;  %s1249_s18 = scalar_lea.sflag [#allocation6], %s556_s3 }
 0x350   : > { %s1460_s12 = sshll.u32 %s2723_s11, 3 }
 0x351   : > { %s2727_s26 = smov %s2726_s30  ;;  %s1259_s13 = scalar_lea.hbm %s2726_s30, %s1460_s12 }
 0x352   : > { %s1263_s5 = sshll.u32 %s1259_s13, 4  ;;  %s1833_s9 = scalar_lea.hbm %s2727_s26, 16  ;;  %s1264_s5 = int_to_ptr.hbm [resolvable:$true] %s1263_s5 }
 0x353   : > { %s1827_s24 = sshra.s32 %s1264_s5, 4  ;;  %s1828_s24 = int_to_ptr.hbm [resolvable:$true] %s1827_s24 }
 0x354   : > { %s1829_s0 = scalar_lea.hbm %s1828_s24, 8  ;;  %p1834_p11 = scmp.lt.s32.totalorder %s1828_s24, %s2727_s26 }
 0x355   : > { %p1830_p6 = scmp.ne.s32.totalorder %s1828_s24, %s1829_s0  ;;  %p1835_p1 = scmp.lt.s32.totalorder %s1833_s9, %s1829_s0 }
 0x357   : > { %p1831_p7 = pnand %p1830_p6, %p2191_p10  ;;  %p1836_p5 = por %p1835_p1, %p1834_p11 }
 0x359   : > { %p1832_p9 = pneg %p1831_p7 }
 0x35b   : > { %p1837_p2 = pnand %p1836_p5, %p1832_p9 }
 0x35d   : > { %1840 = shalt.err (!%p1837_p2)
}
 0x35e   : > { %1532 = dma.vmem_to_hbm [thread:$0]  (%p2191_p10), %s1262_s23, 128, %s1264_s5, %s1249_s18  }
 0x35f PF: > { %s2728_s3 = sld [smem:[#allocation26_spill]]  ;;  %p1559_p13 = scmp.ge.s32.totalorder %s1975_s22, 2 }
 0x361   : > { %p1548_p8 = pnand %p1559_p13, %p2196_p12 }
 0x363   : > { %p1549_p0 = pneg %p1548_p8 }
 0x365   : > { %s1275_s8 = sand.u32 1, %s2728_s3  }
 0x366   : > { %s1276_s25 = scalar_lea.sflag [#allocation6], %s1275_s8 }
 0x367   : > { %1918 = dma.done.wait (%p1549_p0), %s1276_s25, 128  }
 0x368   : > { %1920 = vsyncadd (%p1549_p0), %s1276_s25, 4294967168  ;;  %s30_s22 = sadd.s32 1, %s1975_s22   ;;  %s2731_s30 = sld [smem:[#allocation27_spill]] }
 0x369   : > { %p2585_p3 = scmp.ge.s32.totalorder %s30_s22, 8   ;;  %s2732_s10 = sld [smem:[#allocation28_spill]] }
 0x36a   : > { %s2733_s15 = sld [smem:[#allocation39_spill]]  ;;  %s2741_s13 = smov %s1943_s14 }
 0x36b   : > { %s2734_s12 = sld [smem:[#allocation29_spill]]  ;;  %s2746_s18 = smov %s1967_s20 }
 0x36c   : > { %s2735_s6 = sld [smem:[#allocation37_spill]]  ;;  %s2747_s19 = smov %s1971_s21 }
 0x36d   : > { %s2736_s4 = sld [smem:[#allocation36_spill]] }
 0x36e   : > { %s2737_s23 = sld [smem:[#allocation33_spill]] }
 0x36f   : > { %s2738_s5 = sld [smem:[#allocation34_spill]] }
 0x370   : > { %s2740_s11 = smov %s2733_s15  ;;  %s2743_s15 = smov %s1951_s16 }
 0x371   : > { %s2744_s16 = smov %s1955_s17  ;;  %29 = sbr.rel (!%p2585_p3) target bundleno = 23 (0x17), region = 168 }
 0x372   : > { %s2742_s14 = smov %s2735_s6 }
 0x373   : > { %s2745_s17 = smov %s2736_s4 }
 0x374   : > { %s2748_s20 = smov %s2737_s23 }
 0x375   : > { %s2749_s21 = smov %s2738_s5 }
 0x376   :  { %1282 = vsyncpa [#allocation5], 1 }
 0x377   :  { %1284 = vsyncpa [#allocation5 + $0x1], 1 }
 0x378   :  { %1285 = vsyncpa [#allocation8], 1 }
 0x379   :  { %1287 = vsyncpa [#allocation8 + $0x1], 1 }
 0x37a   :  { %1288 = vsyncpa [#allocation11], 1 }
 0x37b   :  { %1289 = vsyncpa [#allocation14], 1 }
 0x37c   :  { %1290 = vsyncpa [#allocation6], 1 }
 0x37d   :  { %1292 = vsyncpa [#allocation6 + $0x1], 1 }

</bundles_post_ra>
